<compile_context>
chip_gen: v5e
topology: v5e:2x2
jax: 0.10.0
libtpu: 0.0.40
codegen_flags: <defaults>
</compile_context>

<pallas_src>
import jax
import jax.numpy as jnp
from jax import lax
from jax.experimental import pallas as pl
from jax.experimental.pallas import tpu as pltpu


# ------------------------------ Pallas kernel ------------------------------

def _bottleneck_kernel(x_ref, w1_ref, b1_ref, w2a_ref, b2a_ref,
                       w2b_ref, b2b_ref, w3_ref, b3_ref, o_ref,
                       h1p_ref, pat_ref, h2ap_ref, patt_ref):
    # x_ref   : (1, T, H, W, Cin)      input block (also the residual)
    # w1_ref  : (Cin, P)     b1_ref  : (1, P)      BN scale folded into weights
    # w2a_ref : (9*P, P)     b2a_ref : (1, P)      1x3x3 conv, im2col layout
    # w2b_ref : (3*P, P)     b2b_ref : (1, P)      3x1x1 conv, im2col layout
    # w3_ref  : (P, Cout)    b3_ref  : (1, Cout)
    # o_ref   : (1, T, H, W, Cout)
    # scratch : h1p  (T, H+2, W+2, P)   spatially padded conv1 output
    #           pat  (T*H*W, 9*P)       spatial im2col patches
    #           h2ap (T+2, H*W, P)      temporally padded conv2a output
    #           patt (T*H*W, 3*P)       temporal im2col patches
    _, T, H, W, Cin = x_ref.shape
    P = w1_ref.shape[1]
    Cout = w3_ref.shape[1]
    HW = H * W
    M = T * HW

    x2d = x_ref[...].reshape(M, Cin)

    # ---- conv1 (1x1x1) + bn1 + relu -----------------------------------
    h1 = jnp.maximum(
        jnp.dot(x2d, w1_ref[...], preferred_element_type=jnp.float32)
        + b1_ref[...], 0.0)                                   # (M, P)

    # ---- conv2a (1x3x3, pad 1) + bn + relu ----------------------------
    # zero-pad H/W inside VMEM, then one K=9*P matmul via im2col.
    h1p_ref[...] = jnp.zeros_like(h1p_ref)
    h1p_ref[:, 1:H + 1, 1:W + 1, :] = h1.reshape(T, H, W, P)
    for dh in range(3):
        for dw in range(3):
            k = dh * 3 + dw
            pat_ref[:, k * P:(k + 1) * P] = (
                h1p_ref[:, dh:dh + H, dw:dw + W, :].reshape(M, P))
    h2a = jnp.maximum(
        jnp.dot(pat_ref[...], w2a_ref[...], preferred_element_type=jnp.float32)
        + b2a_ref[...], 0.0)                                  # (M, P)

    # ---- conv2b (3x1x1, pad 1) + bn + relu ----------------------------
    # zero-pad T inside VMEM, then one K=3*P matmul via im2col.
    h2ap_ref[...] = jnp.zeros_like(h2ap_ref)
    h2ap_ref[1:T + 1, :, :] = h2a.reshape(T, HW, P)
    for dt in range(3):
        patt_ref[:, dt * P:(dt + 1) * P] = h2ap_ref[dt:dt + T].reshape(M, P)
    h2b = jnp.maximum(
        jnp.dot(patt_ref[...], w2b_ref[...], preferred_element_type=jnp.float32)
        + b2b_ref[...], 0.0)                                  # (M, P)

    # ---- conv3 (1x1x1) + bn2 + relu, then residual add + final relu ---
    y = jnp.maximum(
        jnp.dot(h2b, w3_ref[...], preferred_element_type=jnp.float32)
        + b3_ref[...], 0.0)                                   # (M, Cout)
    out = jnp.maximum(y + x2d, 0.0)                           # Cin == Cout here
    o_ref[...] = out.reshape(o_ref.shape).astype(o_ref.dtype)


# ------------------------------ wrapper ------------------------------------

def fold_bn(stats, eps):
    gamma, beta, mean, var = stats
    scale = gamma / jnp.sqrt(var + eps)
    bias = beta - mean * scale
    return scale.reshape(1, -1), bias.reshape(1, -1)


def bottleneck_forward(x_ncdhw, p):
    # TODO(synk): stride>1 / downsample path not implemented (module defaults:
    #             stride=1, downsample=None, so residual needs Cin == 4*planes).
    eps_default, eps_st = 1e-5, 1e-3

    # Boundary layout glue only (NCDHW -> NDHWC).
    x = jnp.transpose(x_ncdhw, (0, 2, 3, 4, 1))
    N, T, H, W, Cin = x.shape
    P = p['w1'].shape[0]               # planes
    Cout = p['w3'].shape[0]            # 4 * planes
    assert Cout == Cin, "no-downsample path requires in_planes == 4*planes"

    s1, b1 = fold_bn(p['bn1'], eps_default)
    s2a, b2a = fold_bn(p['bn2a'], eps_st)
    s2b, b2b = fold_bn(p['bn2b'], eps_st)
    s3, b3 = fold_bn(p['bn_out'], eps_default)

    # PyTorch Conv3d weights are OIDHW; convert to channels-last matmul /
    # im2col layout and fold the BN scale into the weights.
    w1 = p['w1'][:, :, 0, 0, 0].T * s1                                # (Cin, P)
    w2a = (jnp.transpose(p['w2a'][:, :, 0, :, :], (2, 3, 1, 0))
           .reshape(9 * P, P) * s2a)                                  # (9P, P)
    w2b = (jnp.transpose(p['w2b'][:, :, :, 0, 0], (2, 1, 0))
           .reshape(3 * P, P) * s2b)                                  # (3P, P)
    w3 = p['w3'][:, :, 0, 0, 0].T * s3                                # (P, Cout)

    full2 = lambda n: (0, 0)
    in_specs = [
        pl.BlockSpec((1, T, H, W, Cin), lambda n: (n, 0, 0, 0, 0)),
        pl.BlockSpec((Cin, P), full2),
        pl.BlockSpec((1, P), full2),
        pl.BlockSpec((9 * P, P), full2),
        pl.BlockSpec((1, P), full2),
        pl.BlockSpec((3 * P, P), full2),
        pl.BlockSpec((1, P), full2),
        pl.BlockSpec((P, Cout), full2),
        pl.BlockSpec((1, Cout), full2),
    ]
    out_specs = pl.BlockSpec((1, T, H, W, Cout), lambda n: (n, 0, 0, 0, 0))

    # TODO(synk): for large T*H*W*C, tile T with a 1-frame halo (recompute the
    #             halo frames) instead of one full sample per grid step; and
    #             pad/pack channels toward 128 lanes for unmasked stores.
    scratch_shapes = [
        pltpu.VMEM((T, H + 2, W + 2, P), jnp.float32),
        pltpu.VMEM((T * H * W, 9 * P), jnp.float32),
        pltpu.VMEM((T + 2, H * W, P), jnp.float32),
        pltpu.VMEM((T * H * W, 3 * P), jnp.float32),
    ]

    flops = 2 * N * T * H * W * (Cin * P + 9 * P * P + 3 * P * P + P * Cout)
    bytes_accessed = 4 * (x.size + N * T * H * W * Cout
                          + w1.size + w2a.size + w2b.size + w3.size
                          + 3 * P + Cout)
    cost = pl.CostEstimate(flops=flops, transcendentals=0,
                           bytes_accessed=bytes_accessed)

    out = pl.pallas_call(
        _bottleneck_kernel,
        out_shape=jax.ShapeDtypeStruct((N, T, H, W, Cout), x.dtype),
        grid=(N,),
        in_specs=in_specs,
        out_specs=out_specs,
        scratch_shapes=scratch_shapes,
        compiler_params=pltpu.CompilerParams(
            dimension_semantics=("parallel",)),
        cost_estimate=cost,
    )(x, w1, b1, w2a, b2a, w2b, b2b, w3, b3)

    return jnp.transpose(out, (0, 4, 1, 2, 3))   # back to NCDHW


# -------------------------- params & reference -----------------------------

def make_params(key, in_planes, planes):
    expansion = 4
    ks = jax.random.split(key, 8)

    def w(k, shape):
        return 0.1 * jax.random.normal(k, shape, jnp.float32)

    def bn(k, c):
        k1, k2, k3, k4 = jax.random.split(k, 4)
        return (jax.random.uniform(k1, (c,), jnp.float32, 0.5, 1.5),   # gamma
                0.1 * jax.random.normal(k2, (c,), jnp.float32),        # beta
                0.1 * jax.random.normal(k3, (c,), jnp.float32),        # mean
                jax.random.uniform(k4, (c,), jnp.float32, 0.5, 1.5))   # var

    return dict(
        w1=w(ks[0], (planes, in_planes, 1, 1, 1)),
        bn1=bn(ks[1], planes),
        w2a=w(ks[2], (planes, planes, 1, 3, 3)),
        bn2a=bn(ks[3], planes),
        w2b=w(ks[4], (planes, planes, 3, 1, 1)),
        bn2b=bn(ks[5], planes),
        w3=w(ks[6], (expansion * planes, planes, 1, 1, 1)),
        bn_out=bn(ks[7], expansion * planes),
    )


def ref_forward(x, p):
    eps_default, eps_st = 1e-5, 1e-3

    def conv3d(x, w, padding=((0, 0), (0, 0), (0, 0))):
        return lax.conv_general_dilated(
            x, w, window_strides=(1, 1, 1), padding=padding,
            dimension_numbers=('NCDHW', 'OIDHW', 'NCDHW'))

    def bn(x, stats, eps):
        g, b, m, v = [a.reshape(1, -1, 1, 1, 1) for a in stats]
        return (x - m) * (g / jnp.sqrt(v + eps)) + b

    out = jax.nn.relu(bn(conv3d(x, p['w1']), p['bn1'], eps_default))
    out = jax.nn.relu(bn(conv3d(out, p['w2a'], ((0, 0), (1, 1), (1, 1))),
                         p['bn2a'], eps_st))
    out = jax.nn.relu(bn(conv3d(out, p['w2b'], ((1, 1), (0, 0), (0, 0))),
                         p['bn2b'], eps_st))
    out = jax.nn.relu(bn(conv3d(out, p['w3']), p['bn_out'], eps_default))
    return jax.nn.relu(out + x)


if __name__ == "__main__":
    key = jax.random.PRNGKey(0)
    kx, kp = jax.random.split(key)
    in_planes, planes = 32, 8          # expansion*planes == in_planes => no downsample
    N, T, H, W = 2, 4, 8, 8
    x = jax.random.normal(kx, (N, in_planes, T, H, W), jnp.float32)
    params = make_params(kp, in_planes, planes)

    fwd = jax.jit(bottleneck_forward)
    out = jax.block_until_ready(fwd(x, params))
    ref = jax.block_until_ready(ref_forward(x, params))

    assert out.shape == (N, 4 * planes, T, H, W), out.shape
    rel_err = float(jnp.max(jnp.abs(out - ref)) / (jnp.max(jnp.abs(ref)) + 1e-6))
    assert rel_err < 2e-2, f"mismatch vs reference: rel err {rel_err}"
    print("KERNEL_OK")
</pallas_src>

<mosaic_0001>
module attributes {stable_mosaic.version = 11 : i64} {
  func.func @_bottleneck_kernel(%arg0: i32, %arg1: memref<1x4x8x8x32xf32, #tpu.memory_space<vmem>>, %arg2: memref<32x8xf32, #tpu.memory_space<vmem>>, %arg3: memref<1x8xf32, #tpu.memory_space<vmem>>, %arg4: memref<72x8xf32, #tpu.memory_space<vmem>>, %arg5: memref<1x8xf32, #tpu.memory_space<vmem>>, %arg6: memref<24x8xf32, #tpu.memory_space<vmem>>, %arg7: memref<1x8xf32, #tpu.memory_space<vmem>>, %arg8: memref<8x32xf32, #tpu.memory_space<vmem>>, %arg9: memref<1x32xf32, #tpu.memory_space<vmem>>, %arg10: memref<1x4x8x8x32xf32, #tpu.memory_space<vmem>>, %arg11: memref<4x10x10x8xf32, #tpu.memory_space<vmem>>, %arg12: memref<256x72xf32, #tpu.memory_space<vmem>>, %arg13: memref<6x64x8xf32, #tpu.memory_space<vmem>>, %arg14: memref<256x24xf32, #tpu.memory_space<vmem>>) attributes {dimension_semantics = [#tpu.dimension_semantics<parallel>], iteration_bounds = array<i64: 2>, scalar_prefetch = 0 : i64, scratch_operands = 4 : i64, tpu.core_type = #tpu.core_type<tc>, window_params = [{transform_indices = @transform_0, window_bounds = array<i64: 1, 4, 8, 8, 32>}, {pipeline_mode = #tpu.pipeline_mode<synchronous>, transform_indices = @transform_1, window_bounds = array<i64: 32, 8>}, {pipeline_mode = #tpu.pipeline_mode<synchronous>, transform_indices = @transform_2, window_bounds = array<i64: 1, 8>}, {pipeline_mode = #tpu.pipeline_mode<synchronous>, transform_indices = @transform_3, window_bounds = array<i64: 72, 8>}, {pipeline_mode = #tpu.pipeline_mode<synchronous>, transform_indices = @transform_4, window_bounds = array<i64: 1, 8>}, {pipeline_mode = #tpu.pipeline_mode<synchronous>, transform_indices = @transform_5, window_bounds = array<i64: 24, 8>}, {pipeline_mode = #tpu.pipeline_mode<synchronous>, transform_indices = @transform_6, window_bounds = array<i64: 1, 8>}, {pipeline_mode = #tpu.pipeline_mode<synchronous>, transform_indices = @transform_7, window_bounds = array<i64: 8, 32>}, {pipeline_mode = #tpu.pipeline_mode<synchronous>, transform_indices = @transform_8, window_bounds = array<i64: 1, 32>}, {transform_indices = @transform_9, window_bounds = array<i64: 1, 4, 8, 8, 32>}]} {
    %c0 = arith.constant 0 : index
    %c0_0 = arith.constant 0 : index
    %c0_1 = arith.constant 0 : index
    %c0_2 = arith.constant 0 : index
    %c0_3 = arith.constant 0 : index
    %0 = vector.load %arg1[%c0, %c0_0, %c0_1, %c0_2, %c0_3] : memref<1x4x8x8x32xf32, #tpu.memory_space<vmem>>, vector<1x4x8x8x32xf32>
    %1 = vector.shape_cast %0 : vector<1x4x8x8x32xf32> to vector<256x32xf32>
    %c0_4 = arith.constant 0 : index
    %c0_5 = arith.constant 0 : index
    %2 = vector.load %arg2[%c0_4, %c0_5] : memref<32x8xf32, #tpu.memory_space<vmem>>, vector<32x8xf32>
    %cst = arith.constant dense<0.000000e+00> : vector<256x8xf32>
    %3 = tpu.matmul %1, %2, %cst {dimension_numbers = #tpu.dot_dimension_numbers<[1], [0], [0], [1], [0, 0, 1, 1], [], []>} : vector<256x32xf32>, vector<32x8xf32>, vector<256x8xf32> -> vector<256x8xf32>
    %c0_6 = arith.constant 0 : index
    %c0_7 = arith.constant 0 : index
    %4 = vector.load %arg3[%c0_6, %c0_7] : memref<1x8xf32, #tpu.memory_space<vmem>>, vector<1x8xf32>
    %5 = vector.broadcast %4 : vector<1x8xf32> to vector<256x8xf32>
    %6 = arith.addf %3, %5 : vector<256x8xf32>
    %cst_8 = arith.constant 0.000000e+00 : f32
    %7 = vector.broadcast %cst_8 : f32 to vector<256x8xf32>
    %8 = arith.maximumf %6, %7 : vector<256x8xf32>
    %cst_9 = arith.constant 0.000000e+00 : f32
    %9 = vector.broadcast %cst_9 : f32 to vector<4x10x10x8xf32>
    %c0_10 = arith.constant 0 : index
    %c0_11 = arith.constant 0 : index
    %c0_12 = arith.constant 0 : index
    %c0_13 = arith.constant 0 : index
    %10 = vector.load %arg11[%c0_10, %c0_11, %c0_12, %c0_13] : memref<4x10x10x8xf32, #tpu.memory_space<vmem>>, vector<4x10x10x8xf32>
    tpu.vector_store %arg11[%c0_10, %c0_11, %c0_12, %c0_13], %9 {strides = array<i32>} : memref<4x10x10x8xf32, #tpu.memory_space<vmem>>, vector<4x10x10x8xf32>,
    %11 = vector.shape_cast %8 : vector<256x8xf32> to vector<4x8x8x8xf32>
    %c0_14 = arith.constant 0 : index
    %c1 = arith.constant 1 : index
    %c1_15 = arith.constant 1 : index
    %c0_16 = arith.constant 0 : index
    %12 = vector.load %arg11[%c0_14, %c1, %c1_15, %c0_16] : memref<4x10x10x8xf32, #tpu.memory_space<vmem>>, vector<4x8x8x8xf32>
    tpu.vector_store %arg11[%c0_14, %c1, %c1_15, %c0_16], %11 {strides = array<i32>} : memref<4x10x10x8xf32, #tpu.memory_space<vmem>>, vector<4x8x8x8xf32>,
    %c0_17 = arith.constant 0 : index
    %c0_18 = arith.constant 0 : index
    %c0_19 = arith.constant 0 : index
    %c0_20 = arith.constant 0 : index
    %13 = vector.load %arg11[%c0_17, %c0_18, %c0_19, %c0_20] : memref<4x10x10x8xf32, #tpu.memory_space<vmem>>, vector<4x8x8x8xf32>
    %14 = vector.shape_cast %13 : vector<4x8x8x8xf32> to vector<256x8xf32>
    %c0_21 = arith.constant 0 : index
    %c0_22 = arith.constant 0 : index
    %15 = vector.load %arg12[%c0_21, %c0_22] : memref<256x72xf32, #tpu.memory_space<vmem>>, vector<256x8xf32>
    tpu.vector_store %arg12[%c0_21, %c0_22], %14 {strides = array<i32>} : memref<256x72xf32, #tpu.memory_space<vmem>>, vector<256x8xf32>,
    %c0_23 = arith.constant 0 : index
    %c0_24 = arith.constant 0 : index
    %c1_25 = arith.constant 1 : index
    %c0_26 = arith.constant 0 : index
    %16 = vector.load %arg11[%c0_23, %c0_24, %c1_25, %c0_26] : memref<4x10x10x8xf32, #tpu.memory_space<vmem>>, vector<4x8x8x8xf32>
    %17 = vector.shape_cast %16 : vector<4x8x8x8xf32> to vector<256x8xf32>
    %c0_27 = arith.constant 0 : index
    %c8 = arith.constant 8 : index
    %18 = vector.load %arg12[%c0_27, %c8] : memref<256x72xf32, #tpu.memory_space<vmem>>, vector<256x8xf32>
    tpu.vector_store %arg12[%c0_27, %c8], %17 {strides = array<i32>} : memref<256x72xf32, #tpu.memory_space<vmem>>, vector<256x8xf32>,
    %c0_28 = arith.constant 0 : index
    %c0_29 = arith.constant 0 : index
    %c2 = arith.constant 2 : index
    %c0_30 = arith.constant 0 : index
    %19 = vector.load %arg11[%c0_28, %c0_29, %c2, %c0_30] : memref<4x10x10x8xf32, #tpu.memory_space<vmem>>, vector<4x8x8x8xf32>
    %20 = vector.shape_cast %19 : vector<4x8x8x8xf32> to vector<256x8xf32>
    %c0_31 = arith.constant 0 : index
    %c16 = arith.constant 16 : index
    %21 = vector.load %arg12[%c0_31, %c16] : memref<256x72xf32, #tpu.memory_space<vmem>>, vector<256x8xf32>
    tpu.vector_store %arg12[%c0_31, %c16], %20 {strides = array<i32>} : memref<256x72xf32, #tpu.memory_space<vmem>>, vector<256x8xf32>,
    %c0_32 = arith.constant 0 : index
    %c1_33 = arith.constant 1 : index
    %c0_34 = arith.constant 0 : index
    %c0_35 = arith.constant 0 : index
    %22 = vector.load %arg11[%c0_32, %c1_33, %c0_34, %c0_35] : memref<4x10x10x8xf32, #tpu.memory_space<vmem>>, vector<4x8x8x8xf32>
    %23 = vector.shape_cast %22 : vector<4x8x8x8xf32> to vector<256x8xf32>
    %c0_36 = arith.constant 0 : index
    %c24 = arith.constant 24 : index
    %24 = vector.load %arg12[%c0_36, %c24] : memref<256x72xf32, #tpu.memory_space<vmem>>, vector<256x8xf32>
    tpu.vector_store %arg12[%c0_36, %c24], %23 {strides = array<i32>} : memref<256x72xf32, #tpu.memory_space<vmem>>, vector<256x8xf32>,
    %c0_37 = arith.constant 0 : index
    %c1_38 = arith.constant 1 : index
    %c1_39 = arith.constant 1 : index
    %c0_40 = arith.constant 0 : index
    %25 = vector.load %arg11[%c0_37, %c1_38, %c1_39, %c0_40] : memref<4x10x10x8xf32, #tpu.memory_space<vmem>>, vector<4x8x8x8xf32>
    %26 = vector.shape_cast %25 : vector<4x8x8x8xf32> to vector<256x8xf32>
    %c0_41 = arith.constant 0 : index
    %c32 = arith.constant 32 : index
    %27 = vector.load %arg12[%c0_41, %c32] : memref<256x72xf32, #tpu.memory_space<vmem>>, vector<256x8xf32>
    tpu.vector_store %arg12[%c0_41, %c32], %26 {strides = array<i32>} : memref<256x72xf32, #tpu.memory_space<vmem>>, vector<256x8xf32>,
    %c0_42 = arith.constant 0 : index
    %c1_43 = arith.constant 1 : index
    %c2_44 = arith.constant 2 : index
    %c0_45 = arith.constant 0 : index
    %28 = vector.load %arg11[%c0_42, %c1_43, %c2_44, %c0_45] : memref<4x10x10x8xf32, #tpu.memory_space<vmem>>, vector<4x8x8x8xf32>
    %29 = vector.shape_cast %28 : vector<4x8x8x8xf32> to vector<256x8xf32>
    %c0_46 = arith.constant 0 : index
    %c40 = arith.constant 40 : index
    %30 = vector.load %arg12[%c0_46, %c40] : memref<256x72xf32, #tpu.memory_space<vmem>>, vector<256x8xf32>
    tpu.vector_store %arg12[%c0_46, %c40], %29 {strides = array<i32>} : memref<256x72xf32, #tpu.memory_space<vmem>>, vector<256x8xf32>,
    %c0_47 = arith.constant 0 : index
    %c2_48 = arith.constant 2 : index
    %c0_49 = arith.constant 0 : index
    %c0_50 = arith.constant 0 : index
    %31 = vector.load %arg11[%c0_47, %c2_48, %c0_49, %c0_50] : memref<4x10x10x8xf32, #tpu.memory_space<vmem>>, vector<4x8x8x8xf32>
    %32 = vector.shape_cast %31 : vector<4x8x8x8xf32> to vector<256x8xf32>
    %c0_51 = arith.constant 0 : index
    %c48 = arith.constant 48 : index
    %33 = vector.load %arg12[%c0_51, %c48] : memref<256x72xf32, #tpu.memory_space<vmem>>, vector<256x8xf32>
    tpu.vector_store %arg12[%c0_51, %c48], %32 {strides = array<i32>} : memref<256x72xf32, #tpu.memory_space<vmem>>, vector<256x8xf32>,
    %c0_52 = arith.constant 0 : index
    %c2_53 = arith.constant 2 : index
    %c1_54 = arith.constant 1 : index
    %c0_55 = arith.constant 0 : index
    %34 = vector.load %arg11[%c0_52, %c2_53, %c1_54, %c0_55] : memref<4x10x10x8xf32, #tpu.memory_space<vmem>>, vector<4x8x8x8xf32>
    %35 = vector.shape_cast %34 : vector<4x8x8x8xf32> to vector<256x8xf32>
    %c0_56 = arith.constant 0 : index
    %c56 = arith.constant 56 : index
    %36 = vector.load %arg12[%c0_56, %c56] : memref<256x72xf32, #tpu.memory_space<vmem>>, vector<256x8xf32>
    tpu.vector_store %arg12[%c0_56, %c56], %35 {strides = array<i32>} : memref<256x72xf32, #tpu.memory_space<vmem>>, vector<256x8xf32>,
    %c0_57 = arith.constant 0 : index
    %c2_58 = arith.constant 2 : index
    %c2_59 = arith.constant 2 : index
    %c0_60 = arith.constant 0 : index
    %37 = vector.load %arg11[%c0_57, %c2_58, %c2_59, %c0_60] : memref<4x10x10x8xf32, #tpu.memory_space<vmem>>, vector<4x8x8x8xf32>
    %38 = vector.shape_cast %37 : vector<4x8x8x8xf32> to vector<256x8xf32>
    %c0_61 = arith.constant 0 : index
    %c64 = arith.constant 64 : index
    %39 = vector.load %arg12[%c0_61, %c64] : memref<256x72xf32, #tpu.memory_space<vmem>>, vector<256x8xf32>
    tpu.vector_store %arg12[%c0_61, %c64], %38 {strides = array<i32>} : memref<256x72xf32, #tpu.memory_space<vmem>>, vector<256x8xf32>,
    %c0_62 = arith.constant 0 : index
    %c0_63 = arith.constant 0 : index
    %40 = vector.load %arg12[%c0_62, %c0_63] : memref<256x72xf32, #tpu.memory_space<vmem>>, vector<256x72xf32>
    %c0_64 = arith.constant 0 : index
    %c0_65 = arith.constant 0 : index
    %41 = vector.load %arg4[%c0_64, %c0_65] : memref<72x8xf32, #tpu.memory_space<vmem>>, vector<72x8xf32>
    %cst_66 = arith.constant dense<0.000000e+00> : vector<256x8xf32>
    %42 = tpu.matmul %40, %41, %cst_66 {dimension_numbers = #tpu.dot_dimension_numbers<[1], [0], [0], [1], [0, 0, 1, 1], [], []>} : vector<256x72xf32>, vector<72x8xf32>, vector<256x8xf32> -> vector<256x8xf32>
    %c0_67 = arith.constant 0 : index
    %c0_68 = arith.constant 0 : index
    %43 = vector.load %arg5[%c0_67, %c0_68] : memref<1x8xf32, #tpu.memory_space<vmem>>, vector<1x8xf32>
    %44 = vector.broadcast %43 : vector<1x8xf32> to vector<256x8xf32>
    %45 = arith.addf %42, %44 : vector<256x8xf32>
    %cst_69 = arith.constant 0.000000e+00 : f32
    %46 = vector.broadcast %cst_69 : f32 to vector<256x8xf32>
    %47 = arith.maximumf %45, %46 : vector<256x8xf32>
    %cst_70 = arith.constant 0.000000e+00 : f32
    %48 = vector.broadcast %cst_70 : f32 to vector<6x64x8xf32>
    %c0_71 = arith.constant 0 : index
    %c0_72 = arith.constant 0 : index
    %c0_73 = arith.constant 0 : index
    %49 = vector.load %arg13[%c0_71, %c0_72, %c0_73] : memref<6x64x8xf32, #tpu.memory_space<vmem>>, vector<6x64x8xf32>
    tpu.vector_store %arg13[%c0_71, %c0_72, %c0_73], %48 {strides = array<i32>} : memref<6x64x8xf32, #tpu.memory_space<vmem>>, vector<6x64x8xf32>,
    %50 = vector.shape_cast %47 : vector<256x8xf32> to vector<4x64x8xf32>
    %c1_74 = arith.constant 1 : index
    %c0_75 = arith.constant 0 : index
    %c0_76 = arith.constant 0 : index
    %51 = vector.load %arg13[%c1_74, %c0_75, %c0_76] : memref<6x64x8xf32, #tpu.memory_space<vmem>>, vector<4x64x8xf32>
    tpu.vector_store %arg13[%c1_74, %c0_75, %c0_76], %50 {strides = array<i32>} : memref<6x64x8xf32, #tpu.memory_space<vmem>>, vector<4x64x8xf32>,
    %c0_77 = arith.constant 0 : index
    %c0_78 = arith.constant 0 : index
    %c0_79 = arith.constant 0 : index
    %52 = vector.load %arg13[%c0_77, %c0_78, %c0_79] : memref<6x64x8xf32, #tpu.memory_space<vmem>>, vector<4x64x8xf32>
    %53 = vector.shape_cast %52 : vector<4x64x8xf32> to vector<256x8xf32>
    %c0_80 = arith.constant 0 : index
    %c0_81 = arith.constant 0 : index
    %54 = vector.load %arg14[%c0_80, %c0_81] : memref<256x24xf32, #tpu.memory_space<vmem>>, vector<256x8xf32>
    tpu.vector_store %arg14[%c0_80, %c0_81], %53 {strides = array<i32>} : memref<256x24xf32, #tpu.memory_space<vmem>>, vector<256x8xf32>,
    %c1_82 = arith.constant 1 : index
    %c0_83 = arith.constant 0 : index
    %c0_84 = arith.constant 0 : index
    %55 = vector.load %arg13[%c1_82, %c0_83, %c0_84] : memref<6x64x8xf32, #tpu.memory_space<vmem>>, vector<4x64x8xf32>
    %56 = vector.shape_cast %55 : vector<4x64x8xf32> to vector<256x8xf32>
    %c0_85 = arith.constant 0 : index
    %c8_86 = arith.constant 8 : index
    %57 = vector.load %arg14[%c0_85, %c8_86] : memref<256x24xf32, #tpu.memory_space<vmem>>, vector<256x8xf32>
    tpu.vector_store %arg14[%c0_85, %c8_86], %56 {strides = array<i32>} : memref<256x24xf32, #tpu.memory_space<vmem>>, vector<256x8xf32>,
    %c2_87 = arith.constant 2 : index
    %c0_88 = arith.constant 0 : index
    %c0_89 = arith.constant 0 : index
    %58 = vector.load %arg13[%c2_87, %c0_88, %c0_89] : memref<6x64x8xf32, #tpu.memory_space<vmem>>, vector<4x64x8xf32>
    %59 = vector.shape_cast %58 : vector<4x64x8xf32> to vector<256x8xf32>
    %c0_90 = arith.constant 0 : index
    %c16_91 = arith.constant 16 : index
    %60 = vector.load %arg14[%c0_90, %c16_91] : memref<256x24xf32, #tpu.memory_space<vmem>>, vector<256x8xf32>
    tpu.vector_store %arg14[%c0_90, %c16_91], %59 {strides = array<i32>} : memref<256x24xf32, #tpu.memory_space<vmem>>, vector<256x8xf32>,
    %c0_92 = arith.constant 0 : index
    %c0_93 = arith.constant 0 : index
    %61 = vector.load %arg14[%c0_92, %c0_93] : memref<256x24xf32, #tpu.memory_space<vmem>>, vector<256x24xf32>
    %c0_94 = arith.constant 0 : index
    %c0_95 = arith.constant 0 : index
    %62 = vector.load %arg6[%c0_94, %c0_95] : memref<24x8xf32, #tpu.memory_space<vmem>>, vector<24x8xf32>
    %cst_96 = arith.constant dense<0.000000e+00> : vector<256x8xf32>
    %63 = tpu.matmul %61, %62, %cst_96 {dimension_numbers = #tpu.dot_dimension_numbers<[1], [0], [0], [1], [0, 0, 1, 1], [], []>} : vector<256x24xf32>, vector<24x8xf32>, vector<256x8xf32> -> vector<256x8xf32>
    %c0_97 = arith.constant 0 : index
    %c0_98 = arith.constant 0 : index
    %64 = vector.load %arg7[%c0_97, %c0_98] : memref<1x8xf32, #tpu.memory_space<vmem>>, vector<1x8xf32>
    %65 = vector.broadcast %64 : vector<1x8xf32> to vector<256x8xf32>
    %66 = arith.addf %63, %65 : vector<256x8xf32>
    %cst_99 = arith.constant 0.000000e+00 : f32
    %67 = vector.broadcast %cst_99 : f32 to vector<256x8xf32>
    %68 = arith.maximumf %66, %67 : vector<256x8xf32>
    %c0_100 = arith.constant 0 : index
    %c0_101 = arith.constant 0 : index
    %69 = vector.load %arg8[%c0_100, %c0_101] : memref<8x32xf32, #tpu.memory_space<vmem>>, vector<8x32xf32>
    %cst_102 = arith.constant dense<0.000000e+00> : vector<256x32xf32>
    %70 = tpu.matmul %68, %69, %cst_102 {dimension_numbers = #tpu.dot_dimension_numbers<[1], [0], [0], [1], [0, 0, 1, 1], [], []>} : vector<256x8xf32>, vector<8x32xf32>, vector<256x32xf32> -> vector<256x32xf32>
    %c0_103 = arith.constant 0 : index
    %c0_104 = arith.constant 0 : index
    %71 = vector.load %arg9[%c0_103, %c0_104] : memref<1x32xf32, #tpu.memory_space<vmem>>, vector<1x32xf32>
    %72 = vector.broadcast %71 : vector<1x32xf32> to vector<256x32xf32>
    %73 = arith.addf %70, %72 : vector<256x32xf32>
    %cst_105 = arith.constant 0.000000e+00 : f32
    %74 = vector.broadcast %cst_105 : f32 to vector<256x32xf32>
    %75 = arith.maximumf %73, %74 : vector<256x32xf32>
    %76 = arith.addf %75, %1 : vector<256x32xf32>
    %cst_106 = arith.constant 0.000000e+00 : f32
    %77 = vector.broadcast %cst_106 : f32 to vector<256x32xf32>
    %78 = arith.maximumf %76, %77 : vector<256x32xf32>
    %79 = vector.shape_cast %78 : vector<256x32xf32> to vector<1x4x8x8x32xf32>
    %c0_107 = arith.constant 0 : index
    %c0_108 = arith.constant 0 : index
    %c0_109 = arith.constant 0 : index
    %c0_110 = arith.constant 0 : index
    %c0_111 = arith.constant 0 : index
    %80 = vector.load %arg10[%c0_107, %c0_108, %c0_109, %c0_110, %c0_111] : memref<1x4x8x8x32xf32, #tpu.memory_space<vmem>>, vector<1x4x8x8x32xf32>
    tpu.vector_store %arg10[%c0_107, %c0_108, %c0_109, %c0_110, %c0_111], %79 {strides = array<i32>} : memref<1x4x8x8x32xf32, #tpu.memory_space<vmem>>, vector<1x4x8x8x32xf32>,
    return
  }
  func.func @transform_0(%arg0: i32) -> (i32, i32, i32, i32, i32) {
    %c0_i32 = arith.constant 0 : i32
    %c0_i32_0 = arith.constant 0 : i32
    %c0_i32_1 = arith.constant 0 : i32
    %c0_i32_2 = arith.constant 0 : i32
    %c0_i32_3 = arith.constant 0 : i32
    return %arg0, %c0_i32, %c0_i32_0, %c0_i32_1, %c0_i32_2 : i32, i32, i32, i32, i32
  }
  func.func @transform_1(%arg0: i32) -> (i32, i32) {
    %c0_i32 = arith.constant 0 : i32
    %c0_i32_0 = arith.constant 0 : i32
    %c0_i32_1 = arith.constant 0 : i32
    return %c0_i32, %c0_i32_0 : i32, i32
  }
  func.func @transform_2(%arg0: i32) -> (i32, i32) {
    %c0_i32 = arith.constant 0 : i32
    %c0_i32_0 = arith.constant 0 : i32
    %c0_i32_1 = arith.constant 0 : i32
    return %c0_i32, %c0_i32_0 : i32, i32
  }
  func.func @transform_3(%arg0: i32) -> (i32, i32) {
    %c0_i32 = arith.constant 0 : i32
    %c0_i32_0 = arith.constant 0 : i32
    %c0_i32_1 = arith.constant 0 : i32
    return %c0_i32, %c0_i32_0 : i32, i32
  }
  func.func @transform_4(%arg0: i32) -> (i32, i32) {
    %c0_i32 = arith.constant 0 : i32
    %c0_i32_0 = arith.constant 0 : i32
    %c0_i32_1 = arith.constant 0 : i32
    return %c0_i32, %c0_i32_0 : i32, i32
  }
  func.func @transform_5(%arg0: i32) -> (i32, i32) {
    %c0_i32 = arith.constant 0 : i32
    %c0_i32_0 = arith.constant 0 : i32
    %c0_i32_1 = arith.constant 0 : i32
    return %c0_i32, %c0_i32_0 : i32, i32
  }
  func.func @transform_6(%arg0: i32) -> (i32, i32) {
    %c0_i32 = arith.constant 0 : i32
    %c0_i32_0 = arith.constant 0 : i32
    %c0_i32_1 = arith.constant 0 : i32
    return %c0_i32, %c0_i32_0 : i32, i32
  }
  func.func @transform_7(%arg0: i32) -> (i32, i32) {
    %c0_i32 = arith.constant 0 : i32
    %c0_i32_0 = arith.constant 0 : i32
    %c0_i32_1 = arith.constant 0 : i32
    return %c0_i32, %c0_i32_0 : i32, i32
  }
  func.func @transform_8(%arg0: i32) -> (i32, i32) {
    %c0_i32 = arith.constant 0 : i32
    %c0_i32_0 = arith.constant 0 : i32
    %c0_i32_1 = arith.constant 0 : i32
    return %c0_i32, %c0_i32_0 : i32, i32
  }
  func.func @transform_9(%arg0: i32) -> (i32, i32, i32, i32, i32) {
    %c0_i32 = arith.constant 0 : i32
    %c0_i32_0 = arith.constant 0 : i32
    %c0_i32_1 = arith.constant 0 : i32
    %c0_i32_2 = arith.constant 0 : i32
    %c0_i32_3 = arith.constant 0 : i32
    return %arg0, %c0_i32, %c0_i32_0, %c0_i32_1, %c0_i32_2 : i32, i32, i32, i32, i32
  }
}

</mosaic_0001>

<bundles_post_ra>
// kernel: bottleneck_forward.1
= control target key start
LH: loop header
LB: loop body
LE: loop exit
PB: predicated region body
PF: predicated region fallthrough
CT: control target
= control target key end

     0   :  { %14 = vsyncpa [#allocation7], 0  ;;  %s6226_s0 = inlined_call_operand.vmem [shape: f32[2,4,8,8,32], index: 0, kind: input, shape index: {}]   ;;  %s6227_s1 = inlined_call_operand.vmem [shape: f32[32,8], index: 1, kind: input, shape index: {}]   ;;  %s6228_s2 = inlined_call_operand.vmem [shape: f32[1,8], index: 2, kind: input, shape index: {}]   ;;  %s6229_s3 = inlined_call_operand.vmem [shape: f32[72,8], index: 3, kind: input, shape index: {}]   ;;  %s6230_s4 = inlined_call_operand.vmem [shape: f32[1,8], index: 4, kind: input, shape index: {}]   ;;  %s6231_s5 = inlined_call_operand.vmem [shape: f32[24,8], index: 5, kind: input, shape index: {}]   ;;  %s6232_s6 = inlined_call_operand.vmem [shape: f32[1,8], index: 6, kind: input, shape index: {}]   ;;  %s6233_s7 = inlined_call_operand.vmem [shape: f32[8,32], index: 7, kind: input, shape index: {}]   ;;  %s6234_s8 = inlined_call_operand.vmem [shape: f32[1,32], index: 8, kind: input, shape index: {}]   ;;  %s6235_s9 = inlined_call_operand.hbm [shape: f32[2,4,8,8,32], index: 9, kind: output, shape index: {}]  }
   0x1   :  { %16 = vsyncpa [#allocation7 + $0x1], 0  ;;  %s4209_s30 = smov 0   ;;  %s4211_s10 = smov 0  }
   0x2   :  { %s4213_s11 = smov 0   ;;  %s4215_s12 = smov 0  }
   0x3 LB: > { %s4230_s13 = sadd.s32 4294967295, %s4147_s12   ;;  %s3855_s14 = sadd.s32 4294967294, %s4147_s12   ;;  %s4147_s12 = sphi %s4215_s12, %s6259_s12   ;;  %s4143_s11 = sphi %s4213_s11, %s6258_s11   ;;  %s4139_s10 = sphi %s4211_s10, %s6257_s10   ;;  %s4135_s30 = sphi %s4209_s30, %s6256_s30  }
   0x4   : > { %s4234_s15 = sadd.s32 1, %s4147_s12   ;;  %s223_s16 = sadd.s32 1, %s4143_s11 }
   0x5   : > { %s220_s17 = ssub.s32 %s4147_s12, %s4234_s15  ;;  %p233_p0 = scmp.ne.s32.totalorder %s4143_s11, %s4139_s10 }
   0x6   : > { %p221_p1 = scmp.eq.s32.totalorder %s220_s17, 0  ;;  %p234_p2 = scmp.eq.s32.totalorder %s4230_s13, 1 }
   0x7   : > { %p239_p3 = scmp.ne.s32.totalorder %s4139_s10, %s4135_s30  ;;  %p240_p4 = scmp.eq.s32.totalorder %s3855_s14, 1 }
   0x8   : > { %s4245_s18 = scalar_select %p221_p1, %s4143_s11, %s223_s16  }
   0x9   : > { %p4247_p5 = por %p234_p2, %p233_p0  ;;  %p4251_p6 = por %p240_p4, %p239_p3 }
   0xa   : > { %p3858_p7 = scmp.ge.s32.totalorder %s4147_s12, 1  ;;  %p290_p8 = scmp.lt.s32.totalorder %s4147_s12, 3 }
   0xc   : > { %p291_p9 = pnand %p3858_p7, %p290_p8 }
   0xd   : > { %p326_p10 = scmp.lt.s32.totalorder (!%p291_p9), %s4230_s13, 1  ;;  %s4150_s22 = smov (!%p291_p9), 8  }
   0xe   : > { %294 = sbr.rel (%p291_p9) target bundleno = 1553 (0x611), region = 56  ;;  %s6238_s23 = smov (!%p291_p9), 16  }
   0xf   : > { %s6244_s24 = smov (!%p291_p9), 56   ;;  %s6246_s25 = smov (!%p291_p9), 64  }
  0x10   : > { %s6242_s26 = smov (!%p291_p9), 48   ;;  %s4155_s29 = smov (!%p291_p9), 40  }
  0x11   : > { %s6236_s16 = smov (!%p291_p9), 24   ;;  %s6251_s17 = smov (!%p291_p9), 24  }
  0x12   : > { %s6253_s28 = smov (!%p291_p9), 56  }
  0x13   : > { %v366_v0 = vld [vmem:[%s6227_s1 + $0x18] sm:$0xff]  ;;  %v365_v1 = vld [vmem:[%s6227_s1 + $0x10] sm:$0xff]  ;;  %v364_v2 = vld [vmem:[%s6227_s1 + $0x8] sm:$0xff]  ;;  %s327_s27 = scalar_select %p326_p10, %s4230_s13, 1  ;;  %vm371_vm0 = vcmask 261120   ;;  %vm613_vm1 = vcmask 64512  }
  0x14   : > { %480 = vmatpush.msra.mxu0 %v366_v0  ;;  %v363_v3 = vld [vmem:[%s6227_s1] sm:$0xff]  ;;  %vm615_vm2 = vcmask 58368   ;;  %v4149_v6 = vmov 0.0   ;;  %vm952_vm3 = vcmask 130112   ;;  %vm1145_vm4 = vcmask 195712  }
  0x15   : > { %s3995_s14 = sshll.u32 %s327_s27, 8  ;;  %655 = vst.msk [vmem:[#allocation2 + $0x140] sm:$0xff] %vm613_vm1, %v4149_v6  ;;  %v4540_v23 = vld [vmem:[%s6228_s2] ss:$0 sm:$0xff]  ;;  %s6252_s27 = smov 16   ;;  %vm1338_vm5 = vcmask 261312  }
  0x16   : > { %481 = vmatpush.msra.mxu0 %v365_v1  ;;  %s4274_s21 = scalar_lea.vmem %s6226_s0, %s3995_s14  ;;  %656 = vst.msk [vmem:[#allocation2 + $0x148] sm:$0x3] %vm615_vm2, %v4149_v6  ;;  %s6240_s14 = smov 32   ;;  %vm1531_vm6 = vcmask 326912   ;;  %vm1724_vm7 = vcmask 392512   ;;  %vm1918_vm8 = vcmask 458112  }
  0x17   : > { %v331_v4 = vld [vmem:[%s4274_s21] sm:$0xff]  ;;  %v332_v5 = vld [vmem:[%s4274_s21 + $0x8] sm:$0xff]  ;;  %614 = vst.msk [vmem:[#allocation2] sm:$0xff] %vm613_vm1, %v4149_v6  ;;  %v333_v7 = vld [vmem:[%s4274_s21 + $0x10] sm:$0xff]  ;;  %vm2111_vm9 = vcmask 523712   ;;  %vm2304_vm10 = vcmask 589312  }
  0x18   : > { %482 = vmatpush.msra.mxu0 %v364_v2  ;;  %616 = vst.msk [vmem:[#allocation2 + $0x8] sm:$0x3] %vm615_vm2, %v4149_v6  ;;  %v334_v9 = vld [vmem:[%s4274_s21 + $0x18] sm:$0xff]  ;;  %v335_v10 = vld [vmem:[%s4274_s21 + $0x20] sm:$0xff]  ;;  %v336_v11 = vld [vmem:[%s4274_s21 + $0x28] sm:$0xff]  ;;  %vm2382_vm11 = vcmask 588800  }
  0x19   : > { %617 = vst.msk [vmem:[#allocation2 + $0x10] sm:$0xff] %vm613_vm1, %v4149_v6  ;;  %v337_v14 = vld [vmem:[%s4274_s21 + $0x30] sm:$0xff]  ;;  %v338_v21 = vld [vmem:[%s4274_s21 + $0x38] sm:$0xff]  ;;  %v339_v22 = vld [vmem:[%s4274_s21 + $0x40] sm:$0xff]  ;;  %vm3193_vm12 = vcmask 195584  }
  0x1a   : > { %483 = vmatpush.msra.mxu0 %v363_v3  ;;  %618 = vst.msk [vmem:[#allocation2 + $0x18] sm:$0x3] %vm615_vm2, %v4149_v6  ;;  %v340_v30 = vld [vmem:[%s4274_s21 + $0x48] sm:$0xff]  ;;  %v341_v44 = vld [vmem:[%s4274_s21 + $0x50] sm:$0xff]  ;;  %v342_v51 = vld [vmem:[%s4274_s21 + $0x58] sm:$0xff] }
  0x1b   : > { %3862 = vmatmul.msk.f32.vlgmr.msra.gmra.mxu0 %vm371_vm0, %v331_v4  ;;  %619 = vst.msk [vmem:[#allocation2 + $0x20] sm:$0xff] %vm613_vm1, %v4149_v6  ;;  %v343_v54 = vld [vmem:[%s4274_s21 + $0x60] sm:$0xff]  ;;  %v344_v58 = vld [vmem:[%s4274_s21 + $0x68] sm:$0xff]  ;;  %v345_v2 = vld [vmem:[%s4274_s21 + $0x70] sm:$0xff] }
  0x1c   : > { %620 = vst.msk [vmem:[#allocation2 + $0x28] sm:$0x3] %vm615_vm2, %v4149_v6  ;;  %v744_v63 = vld [vmem:[#allocation2 + $0x140] sm:$0xff] }
  0x1d   : > { %v808_v8 = vld [vmem:[#allocation2 + $0x141] sm:$0xff]  ;;  %621 = vst.msk [vmem:[#allocation2 + $0x30] sm:$0xff] %vm613_vm1, %v4149_v6 }
  0x1e   : > { %888 = vrot.lane.b32.xlu1 %v808_v8, %s4150_s22  ;;  %622 = vst.msk [vmem:[#allocation2 + $0x38] sm:$0x3] %vm615_vm2, %v4149_v6  ;;  %v728_v1 = vld [vmem:[#allocation2] sm:$0xff]  ;;  %v346_v8 = vld [vmem:[%s4274_s21 + $0x78] sm:$0xff] }
  0x1f   : > { %623 = vst.msk [vmem:[#allocation2 + $0x40] sm:$0xff] %vm613_vm1, %v4149_v6  ;;  %v792_v13 = vld [vmem:[#allocation2 + $0x1] sm:$0xff] }
  0x20   : > { %624 = vst.msk [vmem:[#allocation2 + $0x48] sm:$0x3] %vm615_vm2, %v4149_v6  ;;  %856 = vrot.lane.b32.xlu0 %v792_v13, %s4150_s22  ;;  %v985_v16 = vld [vmem:[#allocation2 + $0x2] sm:$0xff] }
  0x21   : > { %625 = vst.msk [vmem:[#allocation2 + $0x50] sm:$0xff] %vm613_vm1, %v4149_v6 }
  0x22   : > { %626 = vst.msk [vmem:[#allocation2 + $0x58] sm:$0x3] %vm615_vm2, %v4149_v6 }
  0x23   : > { %3863 = vmatmul.msk.f32.gmra.mxu0 %vm371_vm0, %v332_v5  ;;  %627 = vst.msk [vmem:[#allocation2 + $0x60] sm:$0xff] %vm613_vm1, %v4149_v6 }
  0x24   : > { %628 = vst.msk [vmem:[#allocation2 + $0x68] sm:$0x3] %vm615_vm2, %v4149_v6 }
  0x25   : > { %629 = vst.msk [vmem:[#allocation2 + $0x70] sm:$0xff] %vm613_vm1, %v4149_v6 }
  0x26   : > { %630 = vst.msk [vmem:[#allocation2 + $0x78] sm:$0x3] %vm615_vm2, %v4149_v6 }
  0x27   : > { %631 = vst.msk [vmem:[#allocation2 + $0x80] sm:$0xff] %vm613_vm1, %v4149_v6 }
  0x28   : > { %632 = vst.msk [vmem:[#allocation2 + $0x88] sm:$0x3] %vm615_vm2, %v4149_v6 }
  0x29   : > { %633 = vst.msk [vmem:[#allocation2 + $0x90] sm:$0xff] %vm613_vm1, %v4149_v6 }
  0x2a   : > { %634 = vst.msk [vmem:[#allocation2 + $0x98] sm:$0x3] %vm615_vm2, %v4149_v6 }
  0x2b   : > { %3864 = vmatmul.msk.f32.gmra.mxu0 %vm371_vm0, %v333_v7  ;;  %635 = vst.msk [vmem:[#allocation2 + $0xa0] sm:$0xff] %vm613_vm1, %v4149_v6 }
  0x2c   : > { %636 = vst.msk [vmem:[#allocation2 + $0xa8] sm:$0x3] %vm615_vm2, %v4149_v6 }
  0x2d   : > { %637 = vst.msk [vmem:[#allocation2 + $0xb0] sm:$0xff] %vm613_vm1, %v4149_v6 }
  0x2e   : > { %638 = vst.msk [vmem:[#allocation2 + $0xb8] sm:$0x3] %vm615_vm2, %v4149_v6 }
  0x2f   : > { %639 = vst.msk [vmem:[#allocation2 + $0xc0] sm:$0xff] %vm613_vm1, %v4149_v6 }
  0x30   : > { %640 = vst.msk [vmem:[#allocation2 + $0xc8] sm:$0x3] %vm615_vm2, %v4149_v6  ;;  %v1765_v20 = vld [vmem:[#allocation2 + $0x90] sm:$0xff] }
  0x31   : > { %641 = vst.msk [vmem:[#allocation2 + $0xd0] sm:$0xff] %vm613_vm1, %v4149_v6  ;;  %v1958_v18 = vld [vmem:[#allocation2 + $0x91] sm:$0xff] }
  0x32   : > { %642 = vst.msk [vmem:[#allocation2 + $0xd8] sm:$0x3] %vm615_vm2, %v4149_v6  ;;  %v2151_v19 = vld [vmem:[#allocation2 + $0x92] sm:$0xff]  ;;  %v736_v50 = vld [vmem:[#allocation2 + $0xa0] sm:$0xff] }
  0x33   : > { %3865 = vmatmul.msk.f32.gmra.mxu0 %vm371_vm0, %v334_v9  ;;  %643 = vst.msk [vmem:[#allocation2 + $0xe0] sm:$0xff] %vm613_vm1, %v4149_v6  ;;  %v800_v12 = vld [vmem:[#allocation2 + $0xa1] sm:$0xff] }
  0x34   : > { %644 = vst.msk [vmem:[#allocation2 + $0xe8] sm:$0x3] %vm615_vm2, %v4149_v6  ;;  %872 = vrot.lane.b32.xlu2 %v800_v12, %s4150_s22  ;;  %v993_v15 = vld [vmem:[#allocation2 + $0xa2] sm:$0xff] }
  0x35   : > { %645 = vst.msk [vmem:[#allocation2 + $0xf0] sm:$0xff] %vm613_vm1, %v4149_v6  ;;  %1065 = vrot.lane.b32.xlu1 %v993_v15, %s6238_s23 }
  0x36   : > { %646 = vst.msk [vmem:[#allocation2 + $0xf8] sm:$0x3] %vm615_vm2, %v4149_v6 }
  0x37   : > { %647 = vst.msk [vmem:[#allocation2 + $0x100] sm:$0xff] %vm613_vm1, %v4149_v6 }
  0x38   : > { %648 = vst.msk [vmem:[#allocation2 + $0x108] sm:$0x3] %vm615_vm2, %v4149_v6 }
  0x39   : > { %649 = vst.msk [vmem:[#allocation2 + $0x110] sm:$0xff] %vm613_vm1, %v4149_v6 }
  0x3a   : > { %650 = vst.msk [vmem:[#allocation2 + $0x118] sm:$0x3] %vm615_vm2, %v4149_v6 }
  0x3b   : > { %3866 = vmatmul.msk.f32.gmra.mxu0 %vm371_vm0, %v335_v10  ;;  %651 = vst.msk [vmem:[#allocation2 + $0x120] sm:$0xff] %vm613_vm1, %v4149_v6 }
  0x3c   : > { %652 = vst.msk [vmem:[#allocation2 + $0x128] sm:$0x3] %vm615_vm2, %v4149_v6  ;;  %1049 = vrot.lane.b32.xlu2 %v985_v16, %s6238_s23  ;;  %v348_v16 = vld [vmem:[%s4274_s21 + $0x88] sm:$0xff] }
  0x3d   : > { %653 = vst.msk [vmem:[#allocation2 + $0x130] sm:$0xff] %vm613_vm1, %v4149_v6  ;;  %2029 = vrot.lane.b32.xlu1 %v1958_v18, %s6244_s24 }
  0x3e   : > { %654 = vst.msk [vmem:[#allocation2 + $0x138] sm:$0x3] %vm615_vm2, %v4149_v6 }
  0x3f   : > { %657 = vst.msk [vmem:[#allocation2 + $0x150] sm:$0xff] %vm613_vm1, %v4149_v6 }
  0x40   : > { %658 = vst.msk [vmem:[#allocation2 + $0x158] sm:$0x3] %vm615_vm2, %v4149_v6 }
  0x41   : > { %659 = vst.msk [vmem:[#allocation2 + $0x160] sm:$0xff] %vm613_vm1, %v4149_v6 }
  0x42   : > { %660 = vst.msk [vmem:[#allocation2 + $0x168] sm:$0x3] %vm615_vm2, %v4149_v6 }
  0x43   : > { %3867 = vmatmul.msk.f32.gmra.mxu0 %vm371_vm0, %v336_v11  ;;  %661 = vst.msk [vmem:[#allocation2 + $0x170] sm:$0xff] %vm613_vm1, %v4149_v6  ;;  %v347_v11 = vld [vmem:[%s4274_s21 + $0x80] sm:$0xff] }
  0x44   : > { %662 = vst.msk [vmem:[#allocation2 + $0x178] sm:$0x3] %vm615_vm2, %v4149_v6  ;;  %2222 = vrot.lane.b32.xlu2 %v2151_v19, %s6246_s25 }
  0x45   : > { %663 = vst.msk [vmem:[#allocation2 + $0x180] sm:$0xff] %vm613_vm1, %v4149_v6 }
  0x46   : > { %664 = vst.msk [vmem:[#allocation2 + $0x188] sm:$0x3] %vm615_vm2, %v4149_v6 }
  0x47   : > { %665 = vst.msk [vmem:[#allocation2 + $0x190] sm:$0xff] %vm613_vm1, %v4149_v6 }
  0x48   : > { %666 = vst.msk [vmem:[#allocation2 + $0x198] sm:$0x3] %vm615_vm2, %v4149_v6 }
  0x49   : > { %667 = vst.msk [vmem:[#allocation2 + $0x1a0] sm:$0xff] %vm613_vm1, %v4149_v6 }
  0x4a   : > { %668 = vst.msk [vmem:[#allocation2 + $0x1a8] sm:$0x3] %vm615_vm2, %v4149_v6 }
  0x4b   : > { %669 = vst.msk [vmem:[#allocation2 + $0x1b0] sm:$0xff] %vm613_vm1, %v4149_v6  ;;  %3868 = vmatmul.msk.f32.gmra.mxu0 %vm371_vm0, %v337_v14 }
  0x4c   : > { %670 = vst.msk [vmem:[#allocation2 + $0x1b8] sm:$0x3] %vm615_vm2, %v4149_v6 }
  0x4d   : > { %671 = vst.msk [vmem:[#allocation2 + $0x1c0] sm:$0xff] %vm613_vm1, %v4149_v6 }
  0x4e   : > { %672 = vst.msk [vmem:[#allocation2 + $0x1c8] sm:$0x3] %vm615_vm2, %v4149_v6 }
  0x4f   : > { %673 = vst.msk [vmem:[#allocation2 + $0x1d0] sm:$0xff] %vm613_vm1, %v4149_v6 }
  0x50   : > { %674 = vst.msk [vmem:[#allocation2 + $0x1d8] sm:$0x3] %vm615_vm2, %v4149_v6 }
  0x51   : > { %675 = vst.msk [vmem:[#allocation2 + $0x1e0] sm:$0xff] %vm613_vm1, %v4149_v6 }
  0x52   : > { %676 = vst.msk [vmem:[#allocation2 + $0x1e8] sm:$0x3] %vm615_vm2, %v4149_v6 }
  0x53   : > { %677 = vst.msk [vmem:[#allocation2 + $0x1f0] sm:$0xff] %vm613_vm1, %v4149_v6  ;;  %3869 = vmatmul.msk.f32.gmra.mxu0 %vm371_vm0, %v338_v21 }
  0x54   : > { %678 = vst.msk [vmem:[#allocation2 + $0x1f8] sm:$0x3] %vm615_vm2, %v4149_v6 }
  0x55   : > { %679 = vst.msk [vmem:[#allocation2 + $0x200] sm:$0xff] %vm613_vm1, %v4149_v6 }
  0x56   : > { %680 = vst.msk [vmem:[#allocation2 + $0x208] sm:$0x3] %vm615_vm2, %v4149_v6 }
  0x57   : > { %681 = vst.msk [vmem:[#allocation2 + $0x210] sm:$0xff] %vm613_vm1, %v4149_v6 }
  0x58   : > { %682 = vst.msk [vmem:[#allocation2 + $0x218] sm:$0x3] %vm615_vm2, %v4149_v6  ;;  %v752_v5 = vld [vmem:[#allocation2 + $0x1e0] sm:$0xff] }
  0x59   : > { %683 = vst.msk [vmem:[#allocation2 + $0x220] sm:$0xff] %vm613_vm1, %v4149_v6  ;;  %v816_v17 = vld [vmem:[#allocation2 + $0x1e1] sm:$0xff] }
  0x5a   : > { %684 = vst.msk [vmem:[#allocation2 + $0x228] sm:$0x3] %vm615_vm2, %v4149_v6  ;;  %904 = vrot.lane.b32.xlu0 %v816_v17, %s4150_s22 }
  0x5b   : > { %685 = vst.msk [vmem:[#allocation2 + $0x230] sm:$0xff] %vm613_vm1, %v4149_v6  ;;  %3870 = vmatmul.msk.f32.gmra.mxu0 %vm371_vm0, %v339_v22 }
  0x5c   : > { %686 = vst.msk [vmem:[#allocation2 + $0x238] sm:$0x3] %vm615_vm2, %v4149_v6 }
  0x5d   : > { %687 = vst.msk [vmem:[#allocation2 + $0x240] sm:$0xff] %vm613_vm1, %v4149_v6 }
  0x5e   : > { %688 = vst.msk [vmem:[#allocation2 + $0x248] sm:$0x3] %vm615_vm2, %v4149_v6 }
  0x5f   : > { %689 = vst.msk [vmem:[#allocation2 + $0x250] sm:$0xff] %vm613_vm1, %v4149_v6 }
  0x60   : > { %690 = vst.msk [vmem:[#allocation2 + $0x258] sm:$0x3] %vm615_vm2, %v4149_v6 }
  0x61   : > { %691 = vst.msk [vmem:[#allocation2 + $0x260] sm:$0xff] %vm613_vm1, %v4149_v6 }
  0x62   : > { %692 = vst.msk [vmem:[#allocation2 + $0x268] sm:$0x3] %vm615_vm2, %v4149_v6  ;;  %1836 = vrot.lane.b32.xlu0 %v1765_v20, %s6242_s26  ;;  %v349_v20 = vld [vmem:[%s4274_s21 + $0x90] sm:$0xff] }
  0x63   : > { %693 = vst.msk [vmem:[#allocation2 + $0x270] sm:$0xff] %vm613_vm1, %v4149_v6  ;;  %3871 = vmatmul.msk.f32.gmra.mxu0 %vm371_vm0, %v340_v30  ;;  %v2375_v30 = vld [vmem:[%s6229_s3 + $0x30] sm:$0xff] }
  0x64   : > { %694 = vst.msk [vmem:[#allocation2 + $0x278] sm:$0x3] %vm615_vm2, %v4149_v6 }
  0x65   : > { %2624 = vst.msk [vmem:[#allocation4] sm:$0xff] %vm613_vm1, %v4149_v6 }
  0x66   : > { %2625 = vst.msk [vmem:[#allocation4 + $0x8] sm:$0xff] %vm613_vm1, %v4149_v6 }
  0x67   : > { %2626 = vst.msk [vmem:[#allocation4 + $0x10] sm:$0xff] %vm613_vm1, %v4149_v6 }
  0x68   : > { %2627 = vst.msk [vmem:[#allocation4 + $0x18] sm:$0xff] %vm613_vm1, %v4149_v6 }
  0x69   : > { %2628 = vst.msk [vmem:[#allocation4 + $0x20] sm:$0xff] %vm613_vm1, %v4149_v6 }
  0x6a   : > { %2629 = vst.msk [vmem:[#allocation4 + $0x28] sm:$0xff] %vm613_vm1, %v4149_v6 }
  0x6b   : > { %2630 = vst.msk [vmem:[#allocation4 + $0x30] sm:$0xff] %vm613_vm1, %v4149_v6  ;;  %3872 = vmatmul.msk.f32.gmra.mxu0 %vm371_vm0, %v341_v44 }
  0x6c   : > { %2631 = vst.msk [vmem:[#allocation4 + $0x38] sm:$0xff] %vm613_vm1, %v4149_v6 }
  0x6d   : > { %2632 = vst.msk [vmem:[#allocation4 + $0x40] sm:$0xff] %vm613_vm1, %v4149_v6 }
  0x6e   : > { %2633 = vst.msk [vmem:[#allocation4 + $0x48] sm:$0xff] %vm613_vm1, %v4149_v6 }
  0x6f   : > { %2634 = vst.msk [vmem:[#allocation4 + $0x50] sm:$0xff] %vm613_vm1, %v4149_v6 }
  0x70   : > { %2635 = vst.msk [vmem:[#allocation4 + $0x58] sm:$0xff] %vm613_vm1, %v4149_v6 }
  0x71   : > { %2636 = vst.msk [vmem:[#allocation4 + $0x60] sm:$0xff] %vm613_vm1, %v4149_v6 }
  0x72   : > { %2637 = vst.msk [vmem:[#allocation4 + $0x68] sm:$0xff] %vm613_vm1, %v4149_v6 }
  0x73   : > { %2638 = vst.msk [vmem:[#allocation4 + $0x70] sm:$0xff] %vm613_vm1, %v4149_v6  ;;  %3873 = vmatmul.msk.f32.gmra.mxu0 %vm371_vm0, %v342_v51 }
  0x74   : > { %2639 = vst.msk [vmem:[#allocation4 + $0x78] sm:$0xff] %vm613_vm1, %v4149_v6 }
  0x75   : > { %2640 = vst.msk [vmem:[#allocation4 + $0x80] sm:$0xff] %vm613_vm1, %v4149_v6 }
  0x76   : > { %2641 = vst.msk [vmem:[#allocation4 + $0x88] sm:$0xff] %vm613_vm1, %v4149_v6 }
  0x77   : > { %2642 = vst.msk [vmem:[#allocation4 + $0x90] sm:$0xff] %vm613_vm1, %v4149_v6 }
  0x78   : > { %2643 = vst.msk [vmem:[#allocation4 + $0x98] sm:$0xff] %vm613_vm1, %v4149_v6 }
  0x79   : > { %2644 = vst.msk [vmem:[#allocation4 + $0xa0] sm:$0xff] %vm613_vm1, %v4149_v6 }
  0x7a   : > { %2645 = vst.msk [vmem:[#allocation4 + $0xa8] sm:$0xff] %vm613_vm1, %v4149_v6 }
  0x7b   : > { %2646 = vst.msk [vmem:[#allocation4 + $0xb0] sm:$0xff] %vm613_vm1, %v4149_v6  ;;  %3874 = vmatmul.msk.f32.gmra.mxu0 %vm371_vm0, %v343_v54  ;;  %v353_v54 = vld [vmem:[%s4274_s21 + $0xb0] sm:$0xff] }
  0x7c   : > { %2647 = vst.msk [vmem:[#allocation4 + $0xb8] sm:$0xff] %vm613_vm1, %v4149_v6 }
  0x7d   : > { %2648 = vst.msk [vmem:[#allocation4 + $0xc0] sm:$0xff] %vm613_vm1, %v4149_v6 }
  0x7e   : > { %2649 = vst.msk [vmem:[#allocation4 + $0xc8] sm:$0xff] %vm613_vm1, %v4149_v6 }
  0x7f   : > { %2650 = vst.msk [vmem:[#allocation4 + $0xd0] sm:$0xff] %vm613_vm1, %v4149_v6 }
  0x80   : > { %2651 = vst.msk [vmem:[#allocation4 + $0xd8] sm:$0xff] %vm613_vm1, %v4149_v6 }
  0x81   : > { %2652 = vst.msk [vmem:[#allocation4 + $0xe0] sm:$0xff] %vm613_vm1, %v4149_v6 }
  0x82   : > { %2653 = vst.msk [vmem:[#allocation4 + $0xe8] sm:$0xff] %vm613_vm1, %v4149_v6 }
  0x83   : > { %2654 = vst.msk [vmem:[#allocation4 + $0xf0] sm:$0xff] %vm613_vm1, %v4149_v6  ;;  %3875 = vmatmul.msk.f32.gmra.mxu0 %vm371_vm0, %v344_v58 }
  0x84   : > { %2655 = vst.msk [vmem:[#allocation4 + $0xf8] sm:$0xff] %vm613_vm1, %v4149_v6 }
  0x85   : > { %2656 = vst.msk [vmem:[#allocation4 + $0x100] sm:$0xff] %vm613_vm1, %v4149_v6 }
  0x86   : > { %2657 = vst.msk [vmem:[#allocation4 + $0x108] sm:$0xff] %vm613_vm1, %v4149_v6 }
  0x87   : > { %2658 = vst.msk [vmem:[#allocation4 + $0x110] sm:$0xff] %vm613_vm1, %v4149_v6 }
  0x88   : > { %2659 = vst.msk [vmem:[#allocation4 + $0x118] sm:$0xff] %vm613_vm1, %v4149_v6 }
  0x89   : > { %2660 = vst.msk [vmem:[#allocation4 + $0x120] sm:$0xff] %vm613_vm1, %v4149_v6 }
  0x8a   : > { %2661 = vst.msk [vmem:[#allocation4 + $0x128] sm:$0xff] %vm613_vm1, %v4149_v6 }
  0x8b   : > { %2662 = vst.msk [vmem:[#allocation4 + $0x130] sm:$0xff] %vm613_vm1, %v4149_v6  ;;  %3876 = vmatmul.msk.f32.gmra.mxu0 %vm371_vm0, %v345_v2 }
  0x8c   : > { %2663 = vst.msk [vmem:[#allocation4 + $0x138] sm:$0xff] %vm613_vm1, %v4149_v6 }
  0x8d   : > { %2664 = vst.msk [vmem:[#allocation4 + $0x140] sm:$0xff] %vm613_vm1, %v4149_v6 }
  0x8e   : > { %2665 = vst.msk [vmem:[#allocation4 + $0x148] sm:$0xff] %vm613_vm1, %v4149_v6  ;;  %v873_v52 = vpop.permute.xlu2 %872 }
  0x8f   : > { %2666 = vst.msk [vmem:[#allocation4 + $0x150] sm:$0xff] %vm613_vm1, %v4149_v6 }
  0x90   : > { %2667 = vst.msk [vmem:[#allocation4 + $0x158] sm:$0xff] %vm613_vm1, %v4149_v6  ;;  %v889_v62 = vpop.permute.xlu1 %888 }
  0x91   : > { %2668 = vst.msk [vmem:[#allocation4 + $0x160] sm:$0xff] %vm613_vm1, %v4149_v6 }
  0x92   : > { %2669 = vst.msk [vmem:[#allocation4 + $0x168] sm:$0xff] %vm613_vm1, %v4149_v6  ;;  %v857_v0 = vpop.permute.xlu0 %856 }
  0x93   : > { %2670 = vst.msk [vmem:[#allocation4 + $0x170] sm:$0xff] %vm613_vm1, %v4149_v6  ;;  %3877 = vmatmul.msk.f32.gmra.mxu0 %vm371_vm0, %v346_v8 }
  0x94   : > { %2671 = vst.msk [vmem:[#allocation4 + $0x178] sm:$0xff] %vm613_vm1, %v4149_v6 }
  0x95   : > { %768 = vst.msk [vmem:[#allocation3 + $0x40] sm:$0xff] %vm613_vm1, %v736_v50 }
  0x96   : > { %961 = vst.msk [vmem:[#allocation3 + $0x40] sm:$0xff] %vm952_vm3, %v873_v52  ;;  %v1050_v6 = vpop.permute.xlu2 %1049 }
  0x97   : > { %776 = vst.msk [vmem:[#allocation3 + $0x80] sm:$0xff] %vm613_vm1, %v744_v63 }
  0x98   : > { %v485_v24 = vpop.f32.mrf.mxu0  ;;  %969 = vst.msk [vmem:[#allocation3 + $0x80] sm:$0xff] %vm952_vm3, %v889_v62  ;;  %v354_v62 = vld [vmem:[%s4274_s21 + $0xb8] sm:$0xff] }
  0x99   : > { %v486_v25 = vadd.f32 %v4540_v23, %v485_v24  ;;  %760 = vst.msk [vmem:[#allocation3] sm:$0xff] %vm613_vm1, %v728_v1 }
  0x9a   : > { %953 = vst.msk [vmem:[#allocation3] sm:$0xff] %vm952_vm3, %v857_v0 }
  0x9b   : > { %v581_v26 = vmax.f32 %v486_v25, 0.0  ;;  %1146 = vst.msk [vmem:[#allocation3] sm:$0xff] %vm1145_vm4, %v1050_v6  ;;  %3878 = vmatmul.msk.f32.gmra.mxu0 %vm371_vm0, %v347_v11 }
  0x9c   : > { %784 = vst.msk [vmem:[#allocation3 + $0xc0] sm:$0xff] %vm613_vm1, %v752_v5 }
  0x9d   : > { %696 = vst.msk [vmem:[#allocation2 + $0x11] sm:$0xff] %vm613_vm1, %v581_v26 }
  0x9e   : > { %v4650_v15 = vpop.permute.xlu2 %2222 }
  0xa0   : > { %v488_v27 = vpop.f32.mrf.mxu0 }
  0xa1   : > { %v489_v28 = vadd.f32 %v4540_v23, %v488_v27  ;;  %v2377_v27 = vld [vmem:[%s6229_s3 + $0x40] sm:$0xff] }
  0xa2   : > { %2486 = vmatpush.msra.mxu1 %v2377_v27 }
  0xa3   : > { %v582_v29 = vmax.f32 %v489_v28, 0.0  ;;  %3879 = vmatmul.msk.f32.gmra.mxu0 %vm371_vm0, %v348_v16  ;;  %v350_v28 = vld [vmem:[%s4274_s21 + $0x98] sm:$0xff] }
  0xa4   : > { %v1564_v33 = vld [vmem:[#allocation2 + $0x12] sm:$0xff] }
  0xa5   : > { %697 = vst.msk [vmem:[#allocation2 + $0x21] sm:$0xff] %vm613_vm1, %v582_v29  ;;  %v1371_v34 = vld [vmem:[#allocation2 + $0x11] sm:$0xff]  ;;  %1628 = vrot.lane.b32.xlu2 %v1564_v33, %s4155_s29 }
  0xa6   : > { %v1178_v36 = vld [vmem:[#allocation2 + $0x10] sm:$0xff]  ;;  %1435 = vrot.lane.b32.xlu1 %v1371_v34, %s6240_s14  ;;  %858 = vrot.lane.b32.xlu0 %v1371_v34, %s4150_s22  ;;  %v2376_v29 = vld [vmem:[%s6229_s3 + $0x38] sm:$0xff] }
  0xa7   : > { %761 = vst.msk [vmem:[#allocation3 + $0x8] sm:$0xff] %vm613_vm1, %v1178_v36  ;;  %v1066_v4 = vpop.permute.xlu1 %1065  ;;  %2487 = vmatpush.msra.mxu1 %v2376_v29 }
  0xa8   : > { %v491_v31 = vpop.f32.mrf.mxu0  ;;  %1154 = vst.msk [vmem:[#allocation3 + $0x40] sm:$0xff] %vm1145_vm4, %v1066_v4  ;;  %v355_v4 = vld [vmem:[%s4274_s21 + $0xc0] sm:$0xff] }
  0xa9   : > { %v492_v32 = vadd.f32 %v4540_v23, %v491_v31  ;;  %2488 = vmatpush.msra.mxu1 %v2375_v30 }
  0xab   : > { %v583_v35 = vmax.f32 %v492_v32, 0.0  ;;  %3880 = vmatmul.msk.f32.gmra.mxu0 %vm371_vm0, %v349_v20  ;;  %v357_v20 = vld [vmem:[%s4274_s21 + $0xd0] sm:$0xff] }
  0xac   : > { %v1758_v37 = vld [vmem:[#allocation2 + $0x20] sm:$0xff] }
  0xad   : > { %698 = vst.msk [vmem:[#allocation2 + $0x31] sm:$0xff] %vm613_vm1, %v583_v35  ;;  %v2144_v39 = vld [vmem:[#allocation2 + $0x22] sm:$0xff] }
  0xae   : > { %762 = vst.msk [vmem:[#allocation3 + $0x10] sm:$0xff] %vm613_vm1, %v1758_v37  ;;  %v794_v40 = vld [vmem:[#allocation2 + $0x21] sm:$0xff]  ;;  %2208 = vrot.lane.b32.xlu2 %v2144_v39, %s6246_s25  ;;  %1051 = vrot.lane.b32.xlu0 %v1564_v33, %s6238_s23 }
  0xaf   : > { %860 = vrot.lane.b32.xlu1 %v794_v40, %s4150_s22  ;;  %v4686_v31 = vpop.permute.xlu1 %2029  ;;  %v2374_v33 = vld [vmem:[%s6229_s3 + $0x28] sm:$0xff] }
  0xb0   : > { %v494_v38 = vpop.f32.mrf.mxu0  ;;  %2489 = vmatpush.msra.mxu1 %v2374_v33 }
  0xb1   : > { %v495_v41 = vadd.f32 %v4540_v23, %v494_v38  ;;  %v351_v38 = vld [vmem:[%s4274_s21 + $0xa0] sm:$0xff] }
  0xb3   : > { %v584_v42 = vmax.f32 %v495_v41, 0.0  ;;  %3881 = vmatmul.msk.f32.gmra.mxu0 %vm371_vm0, %v350_v28 }
  0xb4   : > { %v1759_v43 = vld [vmem:[#allocation2 + $0x30] sm:$0xff] }
  0xb5   : > { %699 = vst.msk [vmem:[#allocation2 + $0x41] sm:$0xff] %vm613_vm1, %v584_v42  ;;  %v988_v45 = vld [vmem:[#allocation2 + $0x32] sm:$0xff]  ;;  %v2370_v42 = vld [vmem:[%s6229_s3 + $0x8] sm:$0xff] }
  0xb6   : > { %763 = vst.msk [vmem:[#allocation3 + $0x18] sm:$0xff] %vm613_vm1, %v1759_v43  ;;  %1630 = vrot.lane.b32.xlu2 %v2144_v39, %s4155_s29  ;;  %1242 = vrot.lane.b32.xlu0 %v1178_v36, %s6236_s16  ;;  %v795_v53 = vld [vmem:[#allocation2 + $0x31] sm:$0xff]  ;;  %v2373_v36 = vld [vmem:[%s6229_s3 + $0x20] sm:$0xff] }
  0xb7   : > { %1053 = vrot.lane.b32.xlu1 %v2144_v39, %s6238_s23  ;;  %2490 = vmatpush.msra.mxu1 %v2373_v36  ;;  %v2372_v39 = vld [vmem:[%s6229_s3 + $0x18] sm:$0xff] }
  0xb8   : > { %v497_v47 = vpop.f32.mrf.mxu0 }
  0xb9   : > { %v498_v48 = vadd.f32 %v4540_v23, %v497_v47  ;;  %2491 = vmatpush.msra.mxu1 %v2372_v39  ;;  %v359_v39 = vld [vmem:[%s4274_s21 + $0xe0] sm:$0xff] }
  0xbb   : > { %v585_v49 = vmax.f32 %v498_v48, 0.0  ;;  %3882 = vmatmul.msk.f32.gmra.mxu0 %vm371_vm0, %v351_v38 }
  0xbc   : > { %v4590_v46 = vld [vmem:[#allocation2 + $0x40] sm:$0xff] }
  0xbd   : > { %764 = vst.msk [vmem:[#allocation3 + $0x20] sm:$0xff] %vm613_vm1, %v4590_v46  ;;  %v796_v55 = vld [vmem:[#allocation2 + $0x41] sm:$0xff] }
  0xbe   : > { %1055 = vrot.lane.b32.xlu2 %v988_v45, %s6238_s23  ;;  %1822 = vrot.lane.b32.xlu0 %v1758_v37, %s6242_s26  ;;  %700 = vst.msk [vmem:[#allocation2 + $0x51] sm:$0xff] %vm613_vm1, %v585_v49  ;;  %v2146_v61 = vld [vmem:[#allocation2 + $0x42] sm:$0xff] }
  0xbf   : > { %2015 = vrot.lane.b32.xlu1 %v794_v40, %s6244_s24  ;;  %v352_v49 = vld [vmem:[%s4274_s21 + $0xa8] sm:$0xff] }
  0xc0   : > { %v500_v57 = vpop.f32.mrf.mxu0 }
  0xc1   : > { %v501_v59 = vadd.f32 %v4540_v23, %v500_v57 }
  0xc3   : > { %v586_v60 = vmax.f32 %v501_v59, 0.0  ;;  %3883 = vmatmul.msk.f32.gmra.mxu0 %vm371_vm0, %v352_v49 }
  0xc5   : > { %v1761_v56 = vld [vmem:[#allocation2 + $0x50] sm:$0xff]  ;;  %701 = vst.msk [vmem:[#allocation2 + $0x61] sm:$0xff] %vm613_vm1, %v586_v60 }
  0xc6   : > { %2210 = vrot.lane.b32.xlu2 %v988_v45, %s6246_s25  ;;  %1244 = vrot.lane.b32.xlu0 %v1758_v37, %s6236_s16  ;;  %765 = vst.msk [vmem:[#allocation3 + $0x28] sm:$0xff] %vm613_vm1, %v1761_v56  ;;  %v797_v9 = vld [vmem:[#allocation2 + $0x51] sm:$0xff] }
  0xc7   : > { %1437 = vrot.lane.b32.xlu1 %v794_v40, %s6240_s14  ;;  %v2147_v13 = vld [vmem:[#allocation2 + $0x52] sm:$0xff] }
  0xc8   : > { %v503_v10 = vpop.f32.mrf.mxu0  ;;  %v2371_v40 = vld [vmem:[%s6229_s3 + $0x10] sm:$0xff] }
  0xc9   : > { %v504_v12 = vadd.f32 %v4540_v23, %v503_v10  ;;  %2492 = vmatpush.msra.mxu1 %v2371_v40 }
  0xcb   : > { %v587_v14 = vmax.f32 %v504_v12, 0.0  ;;  %2493 = vmatpush.msra.mxu1 %v2370_v42  ;;  %3884 = vmatmul.msk.f32.gmra.mxu0 %vm371_vm0, %v353_v54 }
  0xcc   : > { %v4628_v3 = vld [vmem:[#allocation2 + $0x60] sm:$0xff]  ;;  %v905_v7 = vpop.permute.xlu0 %904 }
  0xcd   : > { %766 = vst.msk [vmem:[#allocation3 + $0x30] sm:$0xff] %vm613_vm1, %v4628_v3  ;;  %v991_v21 = vld [vmem:[#allocation2 + $0x62] sm:$0xff] }
  0xce   : > { %1632 = vrot.lane.b32.xlu2 %v988_v45, %s4155_s29  ;;  %1824 = vrot.lane.b32.xlu0 %v1759_v43, %s6242_s26  ;;  %977 = vst.msk [vmem:[#allocation3 + $0xc0] sm:$0xff] %vm952_vm3, %v905_v7  ;;  %v798_v24 = vld [vmem:[#allocation2 + $0x61] sm:$0xff] }
  0xcf   : > { %862 = vrot.lane.b32.xlu1 %v795_v53, %s4150_s22  ;;  %702 = vst.msk [vmem:[#allocation2 + $0x71] sm:$0xff] %vm613_vm1, %v587_v14  ;;  %v356_v14 = vld [vmem:[%s4274_s21 + $0xc8] sm:$0xff] }
  0xd0   : > { %v506_v19 = vpop.f32.mrf.mxu0 }
  0xd1   : > { %v507_v22 = vadd.f32 %v4540_v23, %v506_v19 }
  0xd3   : > { %v588_v25 = vmax.f32 %v507_v22, 0.0  ;;  %3885 = vmatmul.msk.f32.gmra.mxu0 %vm371_vm0, %v354_v62 }
  0xd4   : > { %v4690_v32 = vpop.permute.xlu0 %1836 }
  0xd5   : > { %703 = vst.msk [vmem:[#allocation2 + $0x81] sm:$0xff] %vm613_vm1, %v588_v25 }
  0xd6   : > { %864 = vrot.lane.b32.xlu2 %v796_v55, %s4150_s22  ;;  %1246 = vrot.lane.b32.xlu0 %v1759_v43, %s6236_s16  ;;  %v4657_v17 = vld [vmem:[#allocation2 + $0x70] sm:$0xff] }
  0xd7   : > { %2017 = vrot.lane.b32.xlu1 %v795_v53, %s6244_s24  ;;  %767 = vst.msk [vmem:[#allocation3 + $0x38] sm:$0xff] %vm613_vm1, %v4657_v17  ;;  %v2149_v47 = vld [vmem:[#allocation2 + $0x72] sm:$0xff] }
  0xd8   : > { %v509_v35 = vpop.f32.mrf.mxu0  ;;  %v799_v48 = vld [vmem:[#allocation2 + $0x71] sm:$0xff] }
  0xd9   : > { %v510_v37 = vadd.f32 %v4540_v23, %v509_v35 }
  0xdb   : > { %v589_v41 = vmax.f32 %v510_v37, 0.0  ;;  %3886 = vmatmul.msk.f32.gmra.mxu0 %vm371_vm0, %v355_v4 }
  0xdc   : > { %v1957_v2 = vld [vmem:[#allocation2 + $0x81] sm:$0xff] }
  0xdd   : > { %704 = vst.msk [vmem:[#allocation2 + $0xb1] sm:$0xff] %vm613_vm1, %v589_v41  ;;  %v1764_v5 = vld [vmem:[#allocation2 + $0x80] sm:$0xff] }
  0xde   : > { %2212 = vrot.lane.b32.xlu2 %v2146_v61, %s6246_s25  ;;  %1057 = vrot.lane.b32.xlu0 %v2146_v61, %s6238_s23 }
  0xdf   : > { %1439 = vrot.lane.b32.xlu1 %v795_v53, %s6240_s14 }
  0xe0   : > { %v512_v53 = vpop.f32.mrf.mxu0 }
  0xe3   : > { %3887 = vmatmul.msk.f32.gmra.mxu0 %vm371_vm0, %v356_v14 }
  0xe4   : > { %v4744_v60 = vld [vmem:[#allocation2 + $0xb0] sm:$0xff] }
  0xe5   : > { %769 = vst.msk [vmem:[#allocation3 + $0x48] sm:$0xff] %vm613_vm1, %v4744_v60  ;;  %v1379_v19 = vld [vmem:[#allocation2 + $0xb1] sm:$0xff] }
  0xe6   : > { %1634 = vrot.lane.b32.xlu2 %v2146_v61, %s4155_s29  ;;  %1826 = vrot.lane.b32.xlu0 %v4590_v46, %s6242_s26  ;;  %v2150_v61 = vld [vmem:[#allocation2 + $0x82] sm:$0xff] }
  0xe7   : > { %2019 = vrot.lane.b32.xlu1 %v796_v55, %s6244_s24 }
  0xeb   : > { %3888 = vmatmul.msk.f32.gmra.mxu0 %vm371_vm0, %v357_v20 }
  0xee   : > { %866 = vrot.lane.b32.xlu2 %v797_v9, %s4150_s22  ;;  %1248 = vrot.lane.b32.xlu0 %v4590_v46, %s6236_s16  ;;  %v2369_v46 = vld [vmem:[%s6229_s3] sm:$0xff] }
  0xef   : > { %1441 = vrot.lane.b32.xlu1 %v796_v55, %s6240_s14  ;;  %2494 = vmatpush.msra.mxu1 %v2369_v46  ;;  %v513_v55 = vadd.f32 %v4540_v23, %v512_v53 }
  0xf6   : > { %2214 = vrot.lane.b32.xlu2 %v2147_v13, %s6246_s25  ;;  %1828 = vrot.lane.b32.xlu0 %v1761_v56, %s6242_s26 }
  0xf7   : > { %1059 = vrot.lane.b32.xlu1 %v2147_v13, %s6238_s23 }
  0xfe   : > { %1636 = vrot.lane.b32.xlu2 %v2147_v13, %s4155_s29  ;;  %1250 = vrot.lane.b32.xlu0 %v1761_v56, %s6236_s16  ;;  %s6250_s16 = smov 32   ;;  %v590_v56 = vmax.f32 %v513_v55, 0.0  ;;  %v994_v13 = vld [vmem:[#allocation2 + $0xb2] sm:$0xff] }
  0xff   : > { %2021 = vrot.lane.b32.xlu1 %v797_v9, %s6244_s24  ;;  %v4662_v18 = vpop.permute.xlu2 %1628 }
 0x100   : > { %705 = vst.msk [vmem:[#allocation2 + $0xc1] sm:$0xff] %vm613_vm1, %v590_v56 }
 0x106   : > { %1061 = vrot.lane.b32.xlu2 %v991_v21, %s6238_s23  ;;  %868 = vrot.lane.b32.xlu0 %v798_v24, %s4150_s22  ;;  %s6254_s23 = smov 48  }
 0x107   : > { %1443 = vrot.lane.b32.xlu1 %v797_v9, %s6240_s14  ;;  %v4767_v8 = vld [vmem:[#allocation2 + $0xc0] sm:$0xff] }
 0x108   : > { %v4671_v26 = vpop.permute.xlu2 %2208  ;;  %770 = vst.msk [vmem:[#allocation3 + $0x50] sm:$0xff] %vm613_vm1, %v4767_v8  ;;  %v2152_v27 = vld [vmem:[#allocation2 + $0xc2] sm:$0xff] }
 0x109   : > { %v802_v28 = vld [vmem:[#allocation2 + $0xc1] sm:$0xff] }
 0x10e   : > { %2216 = vrot.lane.b32.xlu2 %v991_v21, %s6246_s25  ;;  %1830 = vrot.lane.b32.xlu0 %v4628_v3, %s6242_s26  ;;  %s4105_s26 = scalar_lea.hbm %s6235_s9, 512 }
 0x10f   : > { %2023 = vrot.lane.b32.xlu1 %v798_v24, %s6244_s24 }
 0x110   : > { %v4695_v34 = vpop.permute.xlu2 %1630 }
 0x116   : > { %1638 = vrot.lane.b32.xlu2 %v991_v21, %s4155_s29  ;;  %1252 = vrot.lane.b32.xlu0 %v4628_v3, %s6251_s17  ;;  %v515_v3 = vpop.f32.mrf.mxu0 }
 0x117   : > { %1445 = vrot.lane.b32.xlu1 %v798_v24, %s6250_s16  ;;  %v516_v6 = vadd.f32 %v4540_v23, %v515_v3 }
 0x118   : > { %v4717_v43 = vpop.permute.xlu2 %1055  ;;  %v1436_v44 = vpop.permute.xlu1 %1435 }
 0x119   : > { %v859_v45 = vpop.permute.xlu0 %858  ;;  %v591_v7 = vmax.f32 %v516_v6, 0.0 }
 0x11a   : > { %954 = vst.msk [vmem:[#allocation3 + $0x8] sm:$0xff] %vm952_vm3, %v859_v45 }
 0x11b   : > { %706 = vst.msk [vmem:[#allocation2 + $0xd1] sm:$0xff] %vm613_vm1, %v591_v7 }
 0x11e   : > { %2218 = vrot.lane.b32.xlu2 %v2149_v47, %s6246_s25  ;;  %1063 = vrot.lane.b32.xlu0 %v2149_v47, %s6252_s27  ;;  %v518_v25 = vpop.f32.mrf.mxu0 }
 0x11f   : > { %870 = vrot.lane.b32.xlu1 %v799_v48, %s4150_s22  ;;  %v519_v29 = vadd.f32 %v4540_v23, %v518_v25 }
 0x120   : > { %v4728_v50 = vpop.permute.xlu2 %2210 }
 0x121   : > { %v861_v51 = vpop.permute.xlu1 %860  ;;  %v1052_v52 = vpop.permute.xlu0 %1051  ;;  %v592_v30 = vmax.f32 %v519_v29, 0.0 }
 0x122   : > { %955 = vst.msk [vmem:[#allocation3 + $0x10] sm:$0xff] %vm952_vm3, %v861_v51  ;;  %v4806_v33 = vld [vmem:[#allocation2 + $0xd0] sm:$0xff] }
 0x123   : > { %1147 = vst.msk [vmem:[#allocation3 + $0x8] sm:$0xff] %vm1145_vm4, %v1052_v52  ;;  %v803_v46 = vld [vmem:[#allocation2 + $0xd1] sm:$0xff] }
 0x124   : > { %707 = vst.msk [vmem:[#allocation2 + $0xe1] sm:$0xff] %vm613_vm1, %v592_v30  ;;  %v2153_v56 = vld [vmem:[#allocation2 + $0xd2] sm:$0xff] }
 0x125   : > { %771 = vst.msk [vmem:[#allocation3 + $0x58] sm:$0xff] %vm613_vm1, %v4806_v33 }
 0x126   : > { %1640 = vrot.lane.b32.xlu2 %v2149_v47, %s4155_s29  ;;  %1832 = vrot.lane.b32.xlu0 %v4657_v17, %s6254_s23  ;;  %v521_v38 = vpop.f32.mrf.mxu0 }
 0x127   : > { %2025 = vrot.lane.b32.xlu1 %v799_v48, %s6253_s28  ;;  %v522_v40 = vadd.f32 %v4540_v23, %v521_v38 }
 0x128   : > { %v4739_v57 = vpop.permute.xlu2 %1632 }
 0x129   : > { %v1054_v58 = vpop.permute.xlu1 %1053  ;;  %v1243_v59 = vpop.permute.xlu0 %1242  ;;  %v593_v41 = vmax.f32 %v522_v40, 0.0 }
 0x12a   : > { %1148 = vst.msk [vmem:[#allocation3 + $0x10] sm:$0xff] %vm1145_vm4, %v1054_v58  ;;  %v361_v58 = vld [vmem:[%s4274_s21 + $0xf0] sm:$0xff] }
 0x12b   : > { %1339 = vst.msk [vmem:[#allocation3] sm:$0xff] %vm1338_vm5, %v1243_v59 }
 0x12c   : > { %1532 = vst.msk [vmem:[#allocation3] sm:$0xff] %vm1531_vm6, %v1436_v44  ;;  %v4829_v44 = vld [vmem:[#allocation2 + $0xe0] sm:$0xff] }
 0x12d   : > { %1725 = vst.msk [vmem:[#allocation3] sm:$0xff] %vm1724_vm7, %v4662_v18 }
 0x12e   : > { %2220 = vrot.lane.b32.xlu2 %v2150_v61, %s6246_s25  ;;  %1254 = vrot.lane.b32.xlu0 %v4657_v17, %s6251_s17  ;;  %708 = vst.msk [vmem:[#allocation2 + $0xf1] sm:$0xff] %vm613_vm1, %v593_v41  ;;  %v524_v47 = vpop.f32.mrf.mxu0 }
 0x12f   : > { %1447 = vrot.lane.b32.xlu1 %v799_v48, %s6250_s16  ;;  %772 = vst.msk [vmem:[#allocation3 + $0x60] sm:$0xff] %vm613_vm1, %v4829_v44  ;;  %v360_v48 = vld [vmem:[%s4274_s21 + $0xe8] sm:$0xff]  ;;  %v525_v49 = vadd.f32 %v4540_v23, %v524_v47 }
 0x130   : > { %v865_v63 = vpop.permute.xlu2 %864 }
 0x131   : > { %v2016_v0 = vpop.permute.xlu1 %2015  ;;  %957 = vst.msk [vmem:[#allocation3 + $0x20] sm:$0xff] %vm952_vm3, %v865_v63  ;;  %v1823_v1 = vpop.permute.xlu0 %1822 }
 0x132   : > { %1919 = vst.msk [vmem:[#allocation3] sm:$0xff] %vm1918_vm8, %v1823_v1 }
 0x133   : > { %2112 = vst.msk [vmem:[#allocation3] sm:$0xff] %vm2111_vm9, %v2016_v0 }
 0x134   : > { %2305 = vst.msk [vmem:[#allocation3] sm:$0xff] %vm2304_vm10, %v4671_v26  ;;  %v358_v26 = vld [vmem:[%s4274_s21 + $0xd8] sm:$0xff] }
 0x135   : > { %3889 = vmatmul.msk.f32.gmra.mxu0 %vm371_vm0, %v358_v26  ;;  %v4846_v54 = vld [vmem:[#allocation2 + $0xf0] sm:$0xff] }
 0x136   : > { %1642 = vrot.lane.b32.xlu2 %v2150_v61, %s4155_s29  ;;  %1834 = vrot.lane.b32.xlu0 %v1764_v5, %s6254_s23  ;;  %773 = vst.msk [vmem:[#allocation3 + $0x68] sm:$0xff] %vm613_vm1, %v4846_v54 }
 0x137   : > { %2027 = vrot.lane.b32.xlu1 %v1957_v2, %s6253_s28 }
 0x138   : > { %v4772_v9 = vpop.permute.xlu2 %2212 }
 0x139   : > { %v1438_v10 = vpop.permute.xlu1 %1437  ;;  %v1245_v11 = vpop.permute.xlu0 %1244 }
 0x13a   : > { %1340 = vst.msk [vmem:[#allocation3 + $0x8] sm:$0xff] %vm1338_vm5, %v1245_v11 }
 0x13b   : > { %1533 = vst.msk [vmem:[#allocation3 + $0x8] sm:$0xff] %vm1531_vm6, %v1438_v10  ;;  %v2337_v12 = vld [vmem:[#allocation3] sm:$0xff] }
 0x13c   : > { %1726 = vst.msk [vmem:[#allocation3 + $0x8] sm:$0xff] %vm1724_vm7, %v4695_v34  ;;  %3894 = vmatmul.msk.f32.vlgmr.msra.gmra.mxu1 %vm2382_vm11, %v2337_v12 }
 0x13d   : > { %3890 = vmatmul.msk.f32.gmra.mxu0 %vm371_vm0, %v359_v39 }
 0x13e   : > { %1067 = vrot.lane.b32.xlu2 %v994_v13, %s6252_s27  ;;  %1256 = vrot.lane.b32.xlu0 %v1764_v5, %s6251_s17 }
 0x13f   : > { %1449 = vrot.lane.b32.xlu1 %v1957_v2, %s6250_s16 }
 0x140   : > { %v4785_v16 = vpop.permute.xlu2 %1634 }
 0x141   : > { %v863_v17 = vpop.permute.xlu1 %862  ;;  %v1825_v18 = vpop.permute.xlu0 %1824 }
 0x142   : > { %956 = vst.msk [vmem:[#allocation3 + $0x18] sm:$0xff] %vm952_vm3, %v863_v17 }
 0x143   : > { %1149 = vst.msk [vmem:[#allocation3 + $0x18] sm:$0xff] %vm1145_vm4, %v4717_v43 }
 0x144   : > { %1920 = vst.msk [vmem:[#allocation3 + $0x8] sm:$0xff] %vm1918_vm8, %v1825_v18  ;;  %v4893_v18 = vld [vmem:[#allocation2 + $0xf1] sm:$0xff] }
 0x145   : > { %3891 = vmatmul.msk.f32.gmra.mxu0 %vm371_vm0, %v360_v48  ;;  %v4948_v48 = vld [vmem:[#allocation2 + $0xf2] sm:$0xff] }
 0x146   : > { %1644 = vrot.lane.b32.xlu2 %v994_v13, %s4155_s29  ;;  %874 = vrot.lane.b32.xlu0 %v1379_v19, %s4150_s22 }
 0x147   : > { %1451 = vrot.lane.b32.xlu1 %v1379_v19, %s6250_s16 }
 0x148   : > { %v867_v21 = vpop.permute.xlu2 %866 }
 0x149   : > { %v2018_v22 = vpop.permute.xlu1 %2017  ;;  %958 = vst.msk [vmem:[#allocation3 + $0x28] sm:$0xff] %vm952_vm3, %v867_v21  ;;  %v1247_v24 = vpop.permute.xlu0 %1246 }
 0x14a   : > { %2113 = vst.msk [vmem:[#allocation3 + $0x8] sm:$0xff] %vm2111_vm9, %v2018_v22 }
 0x14b   : > { %2306 = vst.msk [vmem:[#allocation3 + $0x8] sm:$0xff] %vm2304_vm10, %v4728_v50  ;;  %v594_v50 = vmax.f32 %v525_v49, 0.0 }
 0x14c   : > { %1341 = vst.msk [vmem:[#allocation3 + $0x10] sm:$0xff] %vm1338_vm5, %v1247_v24 }
 0x14d   : > { %709 = vst.msk [vmem:[#allocation2 + $0x101] sm:$0xff] %vm613_vm1, %v594_v50  ;;  %3892 = vmatmul.msk.f32.gmra.mxu0 %vm371_vm0, %v361_v58 }
 0x14e   : > { %2224 = vrot.lane.b32.xlu2 %v2152_v27, %s6246_s25  ;;  %1258 = vrot.lane.b32.xlu0 %v4744_v60, %s6251_s17 }
 0x14f   : > { %876 = vrot.lane.b32.xlu1 %v802_v28, %s4150_s22 }
 0x150   : > { %v4811_v34 = vpop.permute.xlu2 %2214 }
 0x151   : > { %v1440_v35 = vpop.permute.xlu1 %1439  ;;  %v1058_v36 = vpop.permute.xlu0 %1057 }
 0x152   : > { %1534 = vst.msk [vmem:[#allocation3 + $0x10] sm:$0xff] %vm1531_vm6, %v1440_v35  ;;  %v2338_v37 = vld [vmem:[#allocation3 + $0x8] sm:$0xff] }
 0x153   : > { %1727 = vst.msk [vmem:[#allocation3 + $0x10] sm:$0xff] %vm1724_vm7, %v4739_v57  ;;  %3895 = vmatmul.msk.f32.gmra.mxu1 %vm2382_vm11, %v2338_v37  ;;  %v527_v57 = vpop.f32.mrf.mxu0 }
 0x154   : > { %1150 = vst.msk [vmem:[#allocation3 + $0x20] sm:$0xff] %vm1145_vm4, %v1058_v36  ;;  %v528_v59 = vadd.f32 %v4540_v23, %v527_v57  ;;  %v4862_v0 = vld [vmem:[#allocation2 + $0x100] sm:$0xff] }
 0x155   : > { %774 = vst.msk [vmem:[#allocation3 + $0x70] sm:$0xff] %vm613_vm1, %v4862_v0  ;;  %v4908_v26 = vld [vmem:[#allocation2 + $0x101] sm:$0xff] }
 0x156   : > { %1646 = vrot.lane.b32.xlu2 %v2152_v27, %s4155_s29  ;;  %1069 = vrot.lane.b32.xlu0 %v2152_v27, %s6252_s27  ;;  %v595_v60 = vmax.f32 %v528_v59, 0.0 }
 0x157   : > { %2031 = vrot.lane.b32.xlu1 %v802_v28, %s6253_s28 }
 0x158   : > { %v4826_v42 = vpop.permute.xlu2 %1636  ;;  %710 = vst.msk [vmem:[#allocation2 + $0x111] sm:$0xff] %vm613_vm1, %v595_v60 }
 0x159   : > { %v2020_v43 = vpop.permute.xlu1 %2019  ;;  %v1827_v45 = vpop.permute.xlu0 %1826 }
 0x15a   : > { %1921 = vst.msk [vmem:[#allocation3 + $0x10] sm:$0xff] %vm1918_vm8, %v1827_v45 }
 0x15b   : > { %2114 = vst.msk [vmem:[#allocation3 + $0x10] sm:$0xff] %vm2111_vm9, %v2020_v43  ;;  %v530_v1 = vpop.f32.mrf.mxu0 }
 0x15c   : > { %2307 = vst.msk [vmem:[#allocation3 + $0x10] sm:$0xff] %vm2304_vm10, %v4772_v9  ;;  %v531_v2 = vadd.f32 %v4540_v23, %v530_v1  ;;  %v804_v9 = vld [vmem:[#allocation2 + $0xe1] sm:$0xff] }
 0x15e   : > { %878 = vrot.lane.b32.xlu2 %v803_v46, %s4150_s22  ;;  %1838 = vrot.lane.b32.xlu0 %v4767_v8, %s6254_s23  ;;  %v596_v5 = vmax.f32 %v531_v2, 0.0 }
 0x15f   : > { %1453 = vrot.lane.b32.xlu1 %v802_v28, %s6250_s16  ;;  %v4876_v7 = vld [vmem:[#allocation2 + $0x110] sm:$0xff] }
 0x160   : > { %v1062_v51 = vpop.permute.xlu2 %1061  ;;  %711 = vst.msk [vmem:[#allocation2 + $0x121] sm:$0xff] %vm613_vm1, %v596_v5  ;;  %v4930_v38 = vld [vmem:[#allocation2 + $0x111] sm:$0xff] }
 0x161   : > { %v1442_v52 = vpop.permute.xlu1 %1441  ;;  %v1249_v53 = vpop.permute.xlu0 %1248  ;;  %775 = vst.msk [vmem:[#allocation3 + $0x78] sm:$0xff] %vm613_vm1, %v4876_v7 }
 0x162   : > { %1342 = vst.msk [vmem:[#allocation3 + $0x18] sm:$0xff] %vm1338_vm5, %v1249_v53 }
 0x163   : > { %1535 = vst.msk [vmem:[#allocation3 + $0x18] sm:$0xff] %vm1531_vm6, %v1442_v52  ;;  %v2339_v55 = vld [vmem:[#allocation3 + $0x10] sm:$0xff]  ;;  %v533_v10 = vpop.f32.mrf.mxu0 }
 0x164   : > { %1728 = vst.msk [vmem:[#allocation3 + $0x18] sm:$0xff] %vm1724_vm7, %v4785_v16  ;;  %3896 = vmatmul.msk.f32.gmra.mxu1 %vm2382_vm11, %v2339_v55  ;;  %v534_v11 = vadd.f32 %v4540_v23, %v533_v10 }
 0x166   : > { %2226 = vrot.lane.b32.xlu2 %v2153_v56, %s6246_s25  ;;  %1260 = vrot.lane.b32.xlu0 %v4767_v8, %s6251_s17  ;;  %v997_v8 = vld [vmem:[#allocation2 + $0xe2] sm:$0xff]  ;;  %v597_v17 = vmax.f32 %v534_v11, 0.0 }
 0x167   : > { %1071 = vrot.lane.b32.xlu1 %v2153_v56, %s6252_s27 }
 0x168   : > { %v2217_v61 = vpop.permute.xlu2 %2216  ;;  %712 = vst.msk [vmem:[#allocation2 + $0x151] sm:$0xff] %vm613_vm1, %v597_v17 }
 0x169   : > { %v1060_v62 = vpop.permute.xlu1 %1059  ;;  %v1829_v63 = vpop.permute.xlu0 %1828 }
 0x16a   : > { %1151 = vst.msk [vmem:[#allocation3 + $0x28] sm:$0xff] %vm1145_vm4, %v1060_v62 }
 0x16b   : > { %1922 = vst.msk [vmem:[#allocation3 + $0x18] sm:$0xff] %vm1918_vm8, %v1829_v63  ;;  %v536_v19 = vpop.f32.mrf.mxu0 }
 0x16c   : > { %v537_v20 = vadd.f32 %v4540_v23, %v536_v19 }
 0x16e   : > { %1648 = vrot.lane.b32.xlu2 %v2153_v56, %s4155_s29  ;;  %1840 = vrot.lane.b32.xlu0 %v4806_v33, %s6254_s23  ;;  %v598_v21 = vmax.f32 %v537_v20, 0.0  ;;  %v5035_v20 = vld [vmem:[%s6228_s2] ss:$0 sm:$0xff] }
 0x16f   : > { %2033 = vrot.lane.b32.xlu1 %v803_v46, %s6253_s28  ;;  %v4911_v28 = vld [vmem:[#allocation2 + $0x150] sm:$0xff] }
 0x170   : > { %v1639_v3 = vpop.permute.xlu2 %1638  ;;  %713 = vst.msk [vmem:[#allocation2 + $0x161] sm:$0xff] %vm613_vm1, %v598_v21  ;;  %v4964_v56 = vld [vmem:[#allocation2 + $0x151] sm:$0xff] }
 0x171   : > { %v2022_v4 = vpop.permute.xlu1 %2021  ;;  %v1251_v6 = vpop.permute.xlu0 %1250  ;;  %777 = vst.msk [vmem:[#allocation3 + $0x88] sm:$0xff] %vm613_vm1, %v4911_v28 }
 0x172   : > { %2115 = vst.msk [vmem:[#allocation3 + $0x18] sm:$0xff] %vm2111_vm9, %v2022_v4 }
 0x173   : > { %2308 = vst.msk [vmem:[#allocation3 + $0x18] sm:$0xff] %vm2304_vm10, %v4811_v34  ;;  %v539_v27 = vpop.f32.mrf.mxu0 }
 0x174   : > { %1343 = vst.msk [vmem:[#allocation3 + $0x20] sm:$0xff] %vm1338_vm5, %v1251_v6  ;;  %v540_v29 = vadd.f32 %v4540_v23, %v539_v27 }
 0x176   : > { %1073 = vrot.lane.b32.xlu2 %v997_v8, %s6252_s27  ;;  %880 = vrot.lane.b32.xlu0 %v804_v9, %s4150_s22  ;;  %v599_v30 = vmax.f32 %v540_v29, 0.0 }
 0x177   : > { %1455 = vrot.lane.b32.xlu1 %v803_v46, %s6250_s16  ;;  %v4925_v36 = vld [vmem:[#allocation2 + $0x160] sm:$0xff] }
 0x178   : > { %v4886_v12 = vpop.permute.xlu2 %2218  ;;  %714 = vst.msk [vmem:[#allocation2 + $0x171] sm:$0xff] %vm613_vm1, %v599_v30  ;;  %v4987_v1 = vld [vmem:[#allocation2 + $0x161] sm:$0xff] }
 0x179   : > { %v1444_v13 = vpop.permute.xlu1 %1443  ;;  %v869_v14 = vpop.permute.xlu0 %868  ;;  %778 = vst.msk [vmem:[#allocation3 + $0x90] sm:$0xff] %vm613_vm1, %v4925_v36 }
 0x17a   : > { %1536 = vst.msk [vmem:[#allocation3 + $0x20] sm:$0xff] %vm1531_vm6, %v1444_v13  ;;  %v2340_v16 = vld [vmem:[#allocation3 + $0x18] sm:$0xff] }
 0x17b   : > { %1729 = vst.msk [vmem:[#allocation3 + $0x20] sm:$0xff] %vm1724_vm7, %v4826_v42  ;;  %3897 = vmatmul.msk.f32.gmra.mxu1 %vm2382_vm11, %v2340_v16  ;;  %v542_v39 = vpop.f32.mrf.mxu0 }
 0x17c   : > { %959 = vst.msk [vmem:[#allocation3 + $0x30] sm:$0xff] %vm952_vm3, %v869_v14  ;;  %v543_v40 = vadd.f32 %v4540_v23, %v542_v39 }
 0x17d   : > { %1152 = vst.msk [vmem:[#allocation3 + $0x30] sm:$0xff] %vm1145_vm4, %v1062_v51 }
 0x17e   : > { %2228 = vrot.lane.b32.xlu2 %v997_v8, %s6246_s25  ;;  %1262 = vrot.lane.b32.xlu0 %v4806_v33, %s6251_s17  ;;  %v600_v41 = vmax.f32 %v543_v40, 0.0 }
 0x17f   : > { %882 = vrot.lane.b32.xlu1 %v4893_v18, %s4150_s22  ;;  %v4942_v46 = vld [vmem:[#allocation2 + $0x170] sm:$0xff] }
 0x180   : > { %v4903_v22 = vpop.permute.xlu2 %1640  ;;  %715 = vst.msk [vmem:[#allocation2 + $0x181] sm:$0xff] %vm613_vm1, %v600_v41  ;;  %v5005_v10 = vld [vmem:[#allocation2 + $0x171] sm:$0xff] }
 0x181   : > { %v2024_v24 = vpop.permute.xlu1 %2023  ;;  %v1831_v25 = vpop.permute.xlu0 %1830  ;;  %779 = vst.msk [vmem:[#allocation3 + $0x98] sm:$0xff] %vm613_vm1, %v4942_v46 }
 0x182   : > { %1923 = vst.msk [vmem:[#allocation3 + $0x20] sm:$0xff] %vm1918_vm8, %v1831_v25 }
 0x183   : > { %2116 = vst.msk [vmem:[#allocation3 + $0x20] sm:$0xff] %vm2111_vm9, %v2024_v24  ;;  %v545_v47 = vpop.f32.mrf.mxu0 }
 0x184   : > { %2309 = vst.msk [vmem:[#allocation3 + $0x20] sm:$0xff] %vm2304_vm10, %v2217_v61  ;;  %v546_v49 = vadd.f32 %v4540_v23, %v545_v47 }
 0x186   : > { %884 = vrot.lane.b32.xlu2 %v4908_v26, %s4150_s22  ;;  %1842 = vrot.lane.b32.xlu0 %v4829_v44, %s6254_s23  ;;  %v601_v50 = vmax.f32 %v546_v49, 0.0 }
 0x187   : > { %2035 = vrot.lane.b32.xlu1 %v804_v9, %s6253_s28  ;;  %v4961_v55 = vld [vmem:[#allocation2 + $0x180] sm:$0xff] }
 0x188   : > { %v4921_v33 = vpop.permute.xlu2 %2220  ;;  %716 = vst.msk [vmem:[#allocation2 + $0x191] sm:$0xff] %vm613_vm1, %v601_v50  ;;  %v5025_v19 = vld [vmem:[#allocation2 + $0x181] sm:$0xff] }
 0x189   : > { %v1446_v34 = vpop.permute.xlu1 %1445  ;;  %v1253_v35 = vpop.permute.xlu0 %1252  ;;  %780 = vst.msk [vmem:[#allocation3 + $0xa0] sm:$0xff] %vm613_vm1, %v4961_v55 }
 0x18a   : > { %1344 = vst.msk [vmem:[#allocation3 + $0x28] sm:$0xff] %vm1338_vm5, %v1253_v35 }
 0x18b   : > { %1537 = vst.msk [vmem:[#allocation3 + $0x28] sm:$0xff] %vm1531_vm6, %v1446_v34  ;;  %v2341_v37 = vld [vmem:[#allocation3 + $0x20] sm:$0xff]  ;;  %v548_v57 = vpop.f32.mrf.mxu0 }
 0x18c   : > { %1730 = vst.msk [vmem:[#allocation3 + $0x28] sm:$0xff] %vm1724_vm7, %v1639_v3  ;;  %3898 = vmatmul.msk.f32.gmra.mxu1 %vm2382_vm11, %v2341_v37 }
 0x18e   : > { %1650 = vrot.lane.b32.xlu2 %v997_v8, %s4155_s29  ;;  %886 = vrot.lane.b32.xlu0 %v4930_v38, %s4150_s22 }
 0x18f   : > { %1457 = vrot.lane.b32.xlu1 %v804_v9, %s6250_s16  ;;  %v4981_v62 = vld [vmem:[#allocation2 + $0x190] sm:$0xff] }
 0x190   : > { %v4939_v42 = vpop.permute.xlu2 %1642  ;;  %781 = vst.msk [vmem:[#allocation3 + $0xa8] sm:$0xff] %vm613_vm1, %v4981_v62 }
 0x191   : > { %v871_v43 = vpop.permute.xlu1 %870  ;;  %v1064_v45 = vpop.permute.xlu0 %1063 }
 0x192   : > { %960 = vst.msk [vmem:[#allocation3 + $0x38] sm:$0xff] %vm952_vm3, %v871_v43 }
 0x193   : > { %1153 = vst.msk [vmem:[#allocation3 + $0x38] sm:$0xff] %vm1145_vm4, %v1064_v45  ;;  %v551_v2 = vpop.f32.mrf.mxu0 }
 0x194   : > { %v552_v3 = vadd.f32 %v4540_v23, %v551_v2 }
 0x196   : > { %2230 = vrot.lane.b32.xlu2 %v4948_v48, %s6246_s25  ;;  %1264 = vrot.lane.b32.xlu0 %v4829_v44, %s6251_s17  ;;  %v549_v44 = vadd.f32 %v4540_v23, %v548_v57  ;;  %v603_v4 = vmax.f32 %v552_v3, 0.0 }
 0x197   : > { %2037 = vrot.lane.b32.xlu1 %v4893_v18, %s6253_s28 }
 0x198   : > { %v4957_v51 = vpop.permute.xlu2 %1067  ;;  %v602_v58 = vmax.f32 %v549_v44, 0.0  ;;  %718 = vst.msk [vmem:[#allocation2 + $0x1b1] sm:$0xff] %vm613_vm1, %v603_v4 }
 0x199   : > { %v2026_v52 = vpop.permute.xlu1 %2025  ;;  %v1833_v53 = vpop.permute.xlu0 %1832 }
 0x19a   : > { %1924 = vst.msk [vmem:[#allocation3 + $0x28] sm:$0xff] %vm1918_vm8, %v1833_v53 }
 0x19b   : > { %2117 = vst.msk [vmem:[#allocation3 + $0x28] sm:$0xff] %vm2111_vm9, %v2026_v52  ;;  %v554_v11 = vpop.f32.mrf.mxu0 }
 0x19c   : > { %2310 = vst.msk [vmem:[#allocation3 + $0x28] sm:$0xff] %vm2304_vm10, %v4886_v12  ;;  %v5009_v12 = vld [vmem:[#allocation2 + $0x102] sm:$0xff]  ;;  %v555_v13 = vadd.f32 %v4540_v23, %v554_v11 }
 0x19d   : > { %717 = vst.msk [vmem:[#allocation2 + $0x1a1] sm:$0xff] %vm613_vm1, %v602_v58 }
 0x19e   : > { %890 = vrot.lane.b32.xlu2 %v4964_v56, %s4150_s22  ;;  %1844 = vrot.lane.b32.xlu0 %v4846_v54, %s6254_s23  ;;  %v604_v14 = vmax.f32 %v555_v13, 0.0 }
 0x19f   : > { %1459 = vrot.lane.b32.xlu1 %v4893_v18, %s6250_s16  ;;  %v5103_v53 = vld [vmem:[#allocation2 + $0x1b1] sm:$0xff] }
 0x1a0   : > { %v4977_v59 = vpop.permute.xlu2 %1644  ;;  %719 = vst.msk [vmem:[#allocation2 + $0x1c1] sm:$0xff] %vm613_vm1, %v604_v14 }
 0x1a1   : > { %v1448_v60 = vpop.permute.xlu1 %1447  ;;  %v1255_v61 = vpop.permute.xlu0 %1254 }
 0x1a2   : > { %1345 = vst.msk [vmem:[#allocation3 + $0x30] sm:$0xff] %vm1338_vm5, %v1255_v61 }
 0x1a3   : > { %1538 = vst.msk [vmem:[#allocation3 + $0x30] sm:$0xff] %vm1531_vm6, %v1448_v60  ;;  %v2342_v63 = vld [vmem:[#allocation3 + $0x28] sm:$0xff] }
 0x1a4   : > { %1731 = vst.msk [vmem:[#allocation3 + $0x30] sm:$0xff] %vm1724_vm7, %v4903_v22  ;;  %3899 = vmatmul.msk.f32.gmra.mxu1 %vm2382_vm11, %v2342_v63  ;;  %v5002_v9 = vld [vmem:[#allocation2 + $0x1a0] sm:$0xff]  ;;  %v5038_v22 = vld [vmem:[#allocation2 + $0x1b0] sm:$0xff] }
 0x1a5   : > { %782 = vst.msk [vmem:[#allocation3 + $0xb0] sm:$0xff] %vm613_vm1, %v5002_v9 }
 0x1a6   : > { %1652 = vrot.lane.b32.xlu2 %v4948_v48, %s4155_s29  ;;  %892 = vrot.lane.b32.xlu0 %v4987_v1, %s4150_s22  ;;  %783 = vst.msk [vmem:[#allocation3 + $0xb8] sm:$0xff] %vm613_vm1, %v5038_v22 }
 0x1a7   : > { %2039 = vrot.lane.b32.xlu1 %v4908_v26, %s6253_s28 }
 0x1a8   : > { %v4998_v5 = vpop.permute.xlu2 %2224 }
 0x1a9   : > { %v2028_v6 = vpop.permute.xlu1 %2027  ;;  %v1835_v8 = vpop.permute.xlu0 %1834 }
 0x1aa   : > { %1925 = vst.msk [vmem:[#allocation3 + $0x30] sm:$0xff] %vm1918_vm8, %v1835_v8  ;;  %v5127_v8 = vld [vmem:[#allocation2 + $0x112] sm:$0xff] }
 0x1ab   : > { %2118 = vst.msk [vmem:[#allocation3 + $0x30] sm:$0xff] %vm2111_vm9, %v2028_v6 }
 0x1ac   : > { %2311 = vst.msk [vmem:[#allocation3 + $0x30] sm:$0xff] %vm2304_vm10, %v4921_v33  ;;  %v5062_v33 = vld [vmem:[#allocation2 + $0x191] sm:$0xff] }
 0x1ae   : > { %2232 = vrot.lane.b32.xlu2 %v5009_v12, %s6246_s25  ;;  %1266 = vrot.lane.b32.xlu0 %v4846_v54, %s6251_s17  ;;  %v557_v54 = vpop.f32.mrf.mxu0  ;;  %s6255_s25 = smov 64  }
 0x1af   : > { %894 = vrot.lane.b32.xlu1 %v5005_v10, %s4150_s22  ;;  %v558_v21 = vadd.f32 %v5035_v20, %v557_v54 }
 0x1b0   : > { %v5020_v16 = vpop.permute.xlu2 %1646 }
 0x1b1   : > { %v1450_v17 = vpop.permute.xlu1 %1449  ;;  %v1257_v18 = vpop.permute.xlu0 %1256 }
 0x1b2   : > { %1346 = vst.msk [vmem:[#allocation3 + $0x38] sm:$0xff] %vm1338_vm5, %v1257_v18 }
 0x1b3   : > { %1539 = vst.msk [vmem:[#allocation3 + $0x38] sm:$0xff] %vm1531_vm6, %v1450_v17  ;;  %v2343_v23 = vld [vmem:[#allocation3 + $0x30] sm:$0xff] }
 0x1b4   : > { %1732 = vst.msk [vmem:[#allocation3 + $0x38] sm:$0xff] %vm1724_vm7, %v4939_v42  ;;  %3900 = vmatmul.msk.f32.gmra.mxu1 %vm2382_vm11, %v2343_v23 }
 0x1b5   : > { %1926 = vst.msk [vmem:[#allocation3 + $0x38] sm:$0xff] %vm1918_vm8, %v4690_v32  ;;  %v5049_v32 = vld [vmem:[%s6230_s4] ss:$0 sm:$0xff] }
 0x1b6   : > { %2119 = vst.msk [vmem:[#allocation3 + $0x38] sm:$0xff] %vm2111_vm9, %v4686_v31  ;;  %896 = vrot.lane.b32.xlu2 %v5025_v19, %s4150_s22  ;;  %1846 = vrot.lane.b32.xlu0 %v4862_v0, %s6254_s23  ;;  %v605_v31 = vmax.f32 %v558_v21, 0.0  ;;  %v1772_v21 = vld [vmem:[#allocation2 + $0x120] sm:$0xff] }
 0x1b7   : > { %1268 = vrot.lane.b32.xlu1 %v4862_v0, %s6251_s17  ;;  %2312 = vst.msk [vmem:[#allocation3 + $0x38] sm:$0xff] %vm2304_vm10, %v4650_v15  ;;  %v560_v0 = vpop.f32.mrf.mxu0 }
 0x1b8   : > { %v879_v24 = vpop.permute.xlu2 %878  ;;  %720 = vst.msk [vmem:[#allocation2 + $0x1f1] sm:$0xff] %vm613_vm1, %v605_v31  ;;  %v561_v34 = vadd.f32 %v5035_v20, %v560_v0 }
 0x1b9   : > { %v1452_v25 = vpop.permute.xlu1 %1451  ;;  %964 = vst.msk [vmem:[#allocation3 + $0x58] sm:$0xff] %vm952_vm3, %v879_v24  ;;  %v2496_v27 = vpop.f32.mrf.mxu1 }
 0x1ba   : > { %v875_v29 = vpop.permute.xlu0 %874  ;;  %v2497_v30 = vadd.f32 %v5049_v32, %v2496_v27  ;;  %v606_v41 = vmax.f32 %v561_v34, 0.0 }
 0x1bb   : > { %962 = vst.msk [vmem:[#allocation3 + $0x48] sm:$0xff] %vm952_vm3, %v875_v29 }
 0x1bc   : > { %1155 = vst.msk [vmem:[#allocation3 + $0x48] sm:$0xff] %vm1145_vm4, %v4957_v51  ;;  %v2592_v15 = vmax.f32 %v2497_v30, 0.0 }
 0x1bd   : > { %721 = vst.msk [vmem:[#allocation2 + $0x201] sm:$0xff] %vm613_vm1, %v606_v41 }
 0x1be   : > { %2673 = vst.msk [vmem:[#allocation4 + $0x40] sm:$0xff] %vm613_vm1, %v2592_v15  ;;  %1461 = vrot.lane.b32.xlu2 %v4908_v26, %s6250_s16  ;;  %v2344_v35 = vld [vmem:[#allocation3 + $0x38] sm:$0xff]  ;;  %898 = vrot.lane.b32.xlu0 %v5062_v33, %s4150_s22  ;;  %v5079_v26 = vld [vmem:[#allocation2 + $0x1a1] sm:$0xff] }
 0x1bf   : > { %1848 = vrot.lane.b32.xlu1 %v4876_v7, %s6254_s23  ;;  %3901 = vmatmul.msk.f32.gmra.mxu1 %vm2382_vm11, %v2344_v35  ;;  %v5081_v42 = vld [vmem:[#allocation2 + $0x1f0] sm:$0xff]  ;;  %v563_v43 = vpop.f32.mrf.mxu0  ;;  %v2158_v35 = vld [vmem:[#allocation2 + $0x122] sm:$0xff] }
 0x1c0   : > { %v5074_v37 = vpop.permute.xlu2 %2226  ;;  %v564_v45 = vadd.f32 %v5035_v20, %v563_v43  ;;  %785 = vst.msk [vmem:[#allocation3 + $0xc8] sm:$0xff] %vm613_vm1, %v5081_v42  ;;  %v5143_v17 = vld [vmem:[#allocation2 + $0x1f1] sm:$0xff] }
 0x1c1   : > { %v877_v39 = vpop.permute.xlu1 %876 }
 0x1c2   : > { %963 = vst.msk [vmem:[#allocation3 + $0x50] sm:$0xff] %vm952_vm3, %v877_v39  ;;  %v1259_v40 = vpop.permute.xlu0 %1258  ;;  %v607_v49 = vmax.f32 %v564_v45, 0.0 }
 0x1c3   : > { %1347 = vst.msk [vmem:[#allocation3 + $0x40] sm:$0xff] %vm1338_vm5, %v1259_v40  ;;  %v1965_v40 = vld [vmem:[#allocation2 + $0x121] sm:$0xff] }
 0x1c4   : > { %1540 = vst.msk [vmem:[#allocation3 + $0x40] sm:$0xff] %vm1531_vm6, %v1452_v25  ;;  %v5105_v44 = vld [vmem:[#allocation2 + $0x200] sm:$0xff] }
 0x1c5   : > { %1733 = vst.msk [vmem:[#allocation3 + $0x40] sm:$0xff] %vm1724_vm7, %v4977_v59  ;;  %v5087_v47 = vld [vmem:[#allocation4 + $0x40] sm:$0xff] }
 0x1c6   : > { %2041 = vrot.lane.b32.xlu2 %v4930_v38, %s6253_s28  ;;  %1075 = vrot.lane.b32.xlu0 %v4948_v48, %s6252_s27  ;;  %2745 = vst.msk [vmem:[#allocation5 + $0x40] sm:$0xff] %vm613_vm1, %v5087_v47  ;;  %v5167_v15 = vld [vmem:[#allocation2 + $0x201] sm:$0xff] }
 0x1c7   : > { %900 = vrot.lane.b32.xlu1 %v5079_v26, %s4150_s22  ;;  %722 = vst.msk [vmem:[#allocation2 + $0x211] sm:$0xff] %vm613_vm1, %v607_v49  ;;  %v566_v57 = vpop.f32.mrf.mxu0 }
 0x1c8   : > { %v5099_v50 = vpop.permute.xlu2 %1648  ;;  %v567_v58 = vadd.f32 %v5035_v20, %v566_v57  ;;  %786 = vst.msk [vmem:[#allocation3 + $0xd0] sm:$0xff] %vm613_vm1, %v5105_v44 }
 0x1c9   : > { %v2032_v51 = vpop.permute.xlu1 %2031 }
 0x1ca   : > { %v1070_v52 = vpop.permute.xlu0 %1069  ;;  %v608_v48 = vmax.f32 %v567_v58, 0.0 }
 0x1cb   : > { %1156 = vst.msk [vmem:[#allocation3 + $0x50] sm:$0xff] %vm1145_vm4, %v1070_v52 }
 0x1cc   : > { %723 = vst.msk [vmem:[#allocation2 + $0x221] sm:$0xff] %vm613_vm1, %v608_v48 }
 0x1ce   : > { %902 = vrot.lane.b32.xlu2 %v5103_v53, %s4150_s22  ;;  %1654 = vrot.lane.b32.xlu0 %v5009_v12, %s4155_s29  ;;  %v5122_v4 = vld [vmem:[#allocation2 + $0x210] sm:$0xff] }
 0x1cf   : > { %1077 = vrot.lane.b32.xlu1 %v5009_v12, %s6252_s27  ;;  %v569_v6 = vpop.f32.mrf.mxu0  ;;  %787 = vst.msk [vmem:[#allocation3 + $0xd8] sm:$0xff] %vm613_vm1, %v5122_v4  ;;  %v5189_v49 = vld [vmem:[#allocation2 + $0x211] sm:$0xff] }
 0x1d0   : > { %v2499_v59 = vpop.f32.mrf.mxu1  ;;  %v5116_v60 = vpop.permute.xlu2 %1073  ;;  %v570_v11 = vadd.f32 %v5035_v20, %v569_v6 }
 0x1d1   : > { %v2500_v61 = vadd.f32 %v5049_v32, %v2499_v59  ;;  %v1454_v63 = vpop.permute.xlu1 %1453 }
 0x1d2   : > { %v1839_v2 = vpop.permute.xlu0 %1838 }
 0x1d3   : > { %1927 = vst.msk [vmem:[#allocation3 + $0x40] sm:$0xff] %vm1918_vm8, %v1839_v2  ;;  %v2593_v3 = vmax.f32 %v2500_v61, 0.0  ;;  %v5145_v18 = vld [vmem:[#allocation2 + $0x220] sm:$0xff] }
 0x1d4   : > { %2120 = vst.msk [vmem:[#allocation3 + $0x40] sm:$0xff] %vm2111_vm9, %v2032_v51  ;;  %v5208_v59 = vld [vmem:[#allocation2 + $0x221] sm:$0xff] }
 0x1d5   : > { %2313 = vst.msk [vmem:[#allocation3 + $0x40] sm:$0xff] %vm2304_vm10, %v4998_v5  ;;  %v609_v5 = vmax.f32 %v570_v11, 0.0  ;;  %v1966_v11 = vld [vmem:[#allocation2 + $0x131] sm:$0xff] }
 0x1d6   : > { %2674 = vst.msk [vmem:[#allocation4 + $0x48] sm:$0xff] %vm613_vm1, %v2593_v3  ;;  %1270 = vrot.lane.b32.xlu2 %v4876_v7, %s6251_s17  ;;  %2234 = vrot.lane.b32.xlu0 %v5127_v8, %s6255_s25 }
 0x1d7   : > { %1656 = vrot.lane.b32.xlu1 %v5127_v8, %s4155_s29  ;;  %724 = vst.msk [vmem:[#allocation2 + $0x231] sm:$0xff] %vm613_vm1, %v609_v5  ;;  %v572_v23 = vpop.f32.mrf.mxu0  ;;  %v1773_v5 = vld [vmem:[#allocation2 + $0x130] sm:$0xff] }
 0x1d8   : > { %v5138_v12 = vpop.permute.xlu2 %2228  ;;  %v573_v24 = vadd.f32 %v5035_v20, %v572_v23  ;;  %788 = vst.msk [vmem:[#allocation3 + $0xe0] sm:$0xff] %vm613_vm1, %v5145_v18  ;;  %v2159_v23 = vld [vmem:[#allocation2 + $0x132] sm:$0xff] }
 0x1d9   : > { %v1072_v13 = vpop.permute.xlu1 %1071 }
 0x1da   : > { %v1261_v14 = vpop.permute.xlu0 %1260  ;;  %1157 = vst.msk [vmem:[#allocation3 + $0x58] sm:$0xff] %vm1145_vm4, %v1072_v13  ;;  %v610_v27 = vmax.f32 %v573_v24, 0.0 }
 0x1db   : > { %1348 = vst.msk [vmem:[#allocation3 + $0x48] sm:$0xff] %vm1338_vm5, %v1261_v14 }
 0x1dc   : > { %v2345_v7 = vld [vmem:[#allocation3 + $0x40] sm:$0xff]  ;;  %1541 = vst.msk [vmem:[#allocation3 + $0x48] sm:$0xff] %vm1531_vm6, %v1454_v63 }
 0x1dd   : > { %3902 = vmatmul.msk.f32.gmra.mxu1 %vm2382_vm11, %v2345_v7  ;;  %v5149_v54 = vld [vmem:[#allocation4 + $0x48] sm:$0xff]  ;;  %1734 = vst.msk [vmem:[#allocation3 + $0x48] sm:$0xff] %vm1724_vm7, %v5020_v16 }
 0x1de   : > { %1850 = vrot.lane.b32.xlu2 %v1772_v21, %s6254_s23  ;;  %1463 = vrot.lane.b32.xlu0 %v4930_v38, %s6250_s16  ;;  %2746 = vst.msk [vmem:[#allocation5 + $0x48] sm:$0xff] %vm613_vm1, %v5149_v54  ;;  %v5169_v0 = vld [vmem:[#allocation2 + $0x230] sm:$0xff] }
 0x1df   : > { %906 = vrot.lane.b32.xlu1 %v5143_v17, %s4150_s22  ;;  %v575_v38 = vpop.f32.mrf.mxu0  ;;  %725 = vst.msk [vmem:[#allocation2 + $0x241] sm:$0xff] %vm613_vm1, %v610_v27 }
 0x1e0   : > { %v885_v25 = vpop.permute.xlu2 %884  ;;  %v576_v39 = vadd.f32 %v5035_v20, %v575_v38  ;;  %789 = vst.msk [vmem:[#allocation3 + $0xe8] sm:$0xff] %vm613_vm1, %v5169_v0  ;;  %v1001_v38 = vld [vmem:[#allocation2 + $0x142] sm:$0xff] }
 0x1e1   : > { %967 = vst.msk [vmem:[#allocation3 + $0x70] sm:$0xff] %vm952_vm3, %v885_v25  ;;  %v2034_v16 = vpop.permute.xlu1 %2033  ;;  %v2502_v29 = vpop.f32.mrf.mxu1 }
 0x1e2   : > { %v1841_v31 = vpop.permute.xlu0 %1840  ;;  %v2503_v30 = vadd.f32 %v5049_v32, %v2502_v29 }
 0x1e3   : > { %1928 = vst.msk [vmem:[#allocation3 + $0x48] sm:$0xff] %vm1918_vm8, %v1841_v31 }
 0x1e4   : > { %2121 = vst.msk [vmem:[#allocation3 + $0x48] sm:$0xff] %vm2111_vm9, %v2034_v16  ;;  %v2594_v34 = vmax.f32 %v2503_v30, 0.0 }
 0x1e5   : > { %2314 = vst.msk [vmem:[#allocation3 + $0x48] sm:$0xff] %vm2304_vm10, %v5074_v37  ;;  %v611_v37 = vmax.f32 %v576_v39, 0.0 }
 0x1e6   : > { %908 = vrot.lane.b32.xlu2 %v5167_v15, %s4150_s22  ;;  %2675 = vst.msk [vmem:[#allocation4 + $0x50] sm:$0xff] %vm613_vm1, %v2594_v34  ;;  %2043 = vrot.lane.b32.xlu0 %v1965_v40, %s6253_s28  ;;  %v5191_v51 = vld [vmem:[#allocation2 + $0x240] sm:$0xff] }
 0x1e7   : > { %2236 = vrot.lane.b32.xlu1 %v2158_v35, %s6255_s25  ;;  %726 = vst.msk [vmem:[#allocation2 + $0x251] sm:$0xff] %vm613_vm1, %v611_v37  ;;  %v5237_v25 = vld [vmem:[#allocation2 + $0x241] sm:$0xff] }
 0x1e8   : > { %v5182_v41 = vpop.permute.xlu2 %1650  ;;  %790 = vst.msk [vmem:[#allocation3 + $0xf0] sm:$0xff] %vm613_vm1, %v5191_v51 }
 0x1e9   : > { %v1456_v43 = vpop.permute.xlu1 %1455 }
 0x1ea   : > { %v881_v45 = vpop.permute.xlu0 %880 }
 0x1eb   : > { %965 = vst.msk [vmem:[#allocation3 + $0x60] sm:$0xff] %vm952_vm3, %v881_v45 }
 0x1ec   : > { %1158 = vst.msk [vmem:[#allocation3 + $0x60] sm:$0xff] %vm1145_vm4, %v5116_v60  ;;  %v2346_v20 = vld [vmem:[#allocation3 + $0x48] sm:$0xff] }
 0x1ed   : > { %3903 = vmatmul.msk.f32.gmra.mxu1 %vm2382_vm11, %v2346_v20  ;;  %v5198_v52 = vld [vmem:[#allocation4 + $0x50] sm:$0xff]  ;;  %v2160_v20 = vld [vmem:[#allocation2 + $0x162] sm:$0xff] }
 0x1ee   : > { %1079 = vrot.lane.b32.xlu2 %v5127_v8, %s6252_s27  ;;  %910 = vrot.lane.b32.xlu0 %v5189_v49, %s4150_s22  ;;  %2747 = vst.msk [vmem:[#allocation5 + $0x50] sm:$0xff] %vm613_vm1, %v5198_v52  ;;  %v5217_v61 = vld [vmem:[#allocation2 + $0x250] sm:$0xff] }
 0x1ef   : > { %1465 = vrot.lane.b32.xlu1 %v1965_v40, %s6250_s16  ;;  %791 = vst.msk [vmem:[#allocation3 + $0xf8] sm:$0xff] %vm613_vm1, %v5217_v61  ;;  %v5225_v8 = vld [vmem:[#allocation2 + $0x231] sm:$0xff] }
 0x1f0   : > { %v5204_v57 = vpop.permute.xlu2 %2230  ;;  %v5250_v30 = vld [vmem:[#allocation2 + $0x251] sm:$0xff] }
 0x1f1   : > { %v883_v58 = vpop.permute.xlu1 %882 }
 0x1f2   : > { %v1263_v48 = vpop.permute.xlu0 %1262  ;;  %966 = vst.msk [vmem:[#allocation3 + $0x68] sm:$0xff] %vm952_vm3, %v883_v58 }
 0x1f3   : > { %1349 = vst.msk [vmem:[#allocation3 + $0x50] sm:$0xff] %vm1338_vm5, %v1263_v48 }
 0x1f4   : > { %1542 = vst.msk [vmem:[#allocation3 + $0x50] sm:$0xff] %vm1531_vm6, %v1456_v43 }
 0x1f5   : > { %1735 = vst.msk [vmem:[#allocation3 + $0x50] sm:$0xff] %vm1724_vm7, %v5099_v50 }
 0x1f6   : > { %1658 = vrot.lane.b32.xlu2 %v2158_v35, %s4155_s29  ;;  %1272 = vrot.lane.b32.xlu0 %v1772_v21, %s6251_s17 }
 0x1f7   : > { %912 = vrot.lane.b32.xlu1 %v5208_v59, %s4150_s22 }
 0x1f8   : > { %v2505_v60 = vpop.f32.mrf.mxu1  ;;  %v891_v2 = vpop.permute.xlu2 %890 }
 0x1f9   : > { %v2506_v63 = vadd.f32 %v5049_v32, %v2505_v60  ;;  %970 = vst.msk [vmem:[#allocation3 + $0x88] sm:$0xff] %vm952_vm3, %v891_v2  ;;  %v2036_v3 = vpop.permute.xlu1 %2035 }
 0x1fa   : > { %v1843_v50 = vpop.permute.xlu0 %1842 }
 0x1fb   : > { %v2595_v6 = vmax.f32 %v2506_v63, 0.0  ;;  %1929 = vst.msk [vmem:[#allocation3 + $0x50] sm:$0xff] %vm1918_vm8, %v1843_v50 }
 0x1fc   : > { %2122 = vst.msk [vmem:[#allocation3 + $0x50] sm:$0xff] %vm2111_vm9, %v2036_v3 }
 0x1fd   : > { %2676 = vst.msk [vmem:[#allocation4 + $0x58] sm:$0xff] %vm613_vm1, %v2595_v6  ;;  %v2161_v6 = vld [vmem:[#allocation2 + $0x172] sm:$0xff] }
 0x1fe   : > { %2315 = vst.msk [vmem:[#allocation3 + $0x50] sm:$0xff] %vm2304_vm10, %v5138_v12  ;;  %914 = vrot.lane.b32.xlu2 %v5225_v8, %s4150_s22  ;;  %1852 = vrot.lane.b32.xlu0 %v1773_v5, %s6254_s23 }
 0x1ff   : > { %2045 = vrot.lane.b32.xlu1 %v1966_v11, %s6253_s28 }
 0x200   : > { %v1653_v13 = vpop.permute.xlu2 %1652 }
 0x201   : > { %v1458_v14 = vpop.permute.xlu1 %1457 }
 0x202   : > { %v887_v7 = vpop.permute.xlu0 %886 }
 0x203   : > { %968 = vst.msk [vmem:[#allocation3 + $0x78] sm:$0xff] %vm952_vm3, %v887_v7 }
 0x204   : > { %v5235_v21 = vld [vmem:[#allocation4 + $0x58] sm:$0xff] }
 0x205   : > { %v2347_v24 = vld [vmem:[#allocation3 + $0x50] sm:$0xff]  ;;  %2748 = vst.msk [vmem:[#allocation5 + $0x58] sm:$0xff] %vm613_vm1, %v5235_v21 }
 0x206   : > { %3904 = vmatmul.msk.f32.gmra.mxu1 %vm2382_vm11, %v2347_v24  ;;  %2238 = vrot.lane.b32.xlu2 %v2159_v23, %s6255_s25 }
 0x207   : > { %1274 = vrot.lane.b32.xlu1 %v4911_v28, %s6251_s17  ;;  %916 = vrot.lane.b32.xlu0 %v5237_v25, %s4150_s22 }
 0x208   : > { %v2233_v12 = vpop.permute.xlu2 %2232 }
 0x209   : > { %v2038_v16 = vpop.permute.xlu1 %2037  ;;  %v2508_v27 = vpop.f32.mrf.mxu1 }
 0x20a   : > { %v1265_v31 = vpop.permute.xlu0 %1264  ;;  %v2509_v29 = vadd.f32 %v5049_v32, %v2508_v27 }
 0x20b   : > { %1350 = vst.msk [vmem:[#allocation3 + $0x58] sm:$0xff] %vm1338_vm5, %v1265_v31 }
 0x20c   : > { %1543 = vst.msk [vmem:[#allocation3 + $0x58] sm:$0xff] %vm1531_vm6, %v1458_v14  ;;  %v2596_v28 = vmax.f32 %v2509_v29, 0.0 }
 0x20d   : > { %1736 = vst.msk [vmem:[#allocation3 + $0x58] sm:$0xff] %vm1724_vm7, %v5182_v41 }
 0x20e   : > { %1467 = vrot.lane.b32.xlu2 %v4964_v56, %s6250_s16  ;;  %2677 = vst.msk [vmem:[#allocation4 + $0x60] sm:$0xff] %vm613_vm1, %v2596_v28  ;;  %v1580_v56 = vld [vmem:[#allocation2 + $0x152] sm:$0xff] }
 0x20f   : > { %918 = vrot.lane.b32.xlu1 %v5250_v30, %s4150_s22  ;;  %1081 = vrot.lane.b32.xlu0 %v1001_v38, %s6252_s27 }
 0x210   : > { %v897_v34 = vpop.permute.xlu2 %896 }
 0x211   : > { %973 = vst.msk [vmem:[#allocation3 + $0xa0] sm:$0xff] %vm952_vm3, %v897_v34  ;;  %v1460_v35 = vpop.permute.xlu1 %1459 }
 0x212   : > { %v1845_v39 = vpop.permute.xlu0 %1844 }
 0x213   : > { %1930 = vst.msk [vmem:[#allocation3 + $0x58] sm:$0xff] %vm1918_vm8, %v1845_v39 }
 0x214   : > { %2123 = vst.msk [vmem:[#allocation3 + $0x58] sm:$0xff] %vm2111_vm9, %v2038_v16 }
 0x215   : > { %2316 = vst.msk [vmem:[#allocation3 + $0x58] sm:$0xff] %vm2304_vm10, %v5204_v57  ;;  %v5269_v40 = vld [vmem:[#allocation4 + $0x60] sm:$0xff] }
 0x216   : > { %2047 = vrot.lane.b32.xlu2 %v4987_v1, %s6253_s28  ;;  %2749 = vst.msk [vmem:[#allocation5 + $0x60] sm:$0xff] %vm613_vm1, %v5269_v40 }
 0x217   : > { %1854 = vrot.lane.b32.xlu1 %v4925_v36, %s6254_s23  ;;  %1660 = vrot.lane.b32.xlu0 %v1580_v56, %s4155_s29 }
 0x218   : > { %v1462_v37 = vpop.permute.xlu2 %1461 }
 0x219   : > { %v2040_v41 = vpop.permute.xlu1 %2039 }
 0x21a   : > { %v893_v43 = vpop.permute.xlu0 %892 }
 0x21b   : > { %971 = vst.msk [vmem:[#allocation3 + $0x90] sm:$0xff] %vm952_vm3, %v893_v43 }
 0x21c   : > { %v2348_v45 = vld [vmem:[#allocation3 + $0x58] sm:$0xff] }
 0x21d   : > { %3905 = vmatmul.msk.f32.gmra.mxu1 %vm2382_vm11, %v2348_v45 }
 0x21e   : > { %1276 = vrot.lane.b32.xlu2 %v4925_v36, %s6251_s17 }
 0x21f   : > { %1083 = vrot.lane.b32.xlu1 %v1580_v56, %s6252_s27  ;;  %2240 = vrot.lane.b32.xlu0 %v2160_v20, %s6255_s25 }
 0x220   : > { %v5280_v57 = vpop.permute.xlu2 %2041 }
 0x221   : > { %v895_v58 = vpop.permute.xlu1 %894  ;;  %v2511_v60 = vpop.f32.mrf.mxu1 }
 0x222   : > { %v1267_v48 = vpop.permute.xlu0 %1266  ;;  %972 = vst.msk [vmem:[#allocation3 + $0x98] sm:$0xff] %vm952_vm3, %v895_v58  ;;  %v2512_v63 = vadd.f32 %v5049_v32, %v2511_v60 }
 0x223   : > { %1351 = vst.msk [vmem:[#allocation3 + $0x60] sm:$0xff] %vm1338_vm5, %v1267_v48 }
 0x224   : > { %1544 = vst.msk [vmem:[#allocation3 + $0x60] sm:$0xff] %vm1531_vm6, %v1460_v35  ;;  %v2597_v36 = vmax.f32 %v2512_v63, 0.0 }
 0x225   : > { %1737 = vst.msk [vmem:[#allocation3 + $0x60] sm:$0xff] %vm1724_vm7, %v1653_v13 }
 0x226   : > { %1856 = vrot.lane.b32.xlu2 %v4942_v46, %s6254_s23  ;;  %2678 = vst.msk [vmem:[#allocation4 + $0x68] sm:$0xff] %vm613_vm1, %v2597_v36 }
 0x227   : > { %1662 = vrot.lane.b32.xlu1 %v2160_v20, %s4155_s29  ;;  %1469 = vrot.lane.b32.xlu0 %v4987_v1, %s6250_s16 }
 0x228   : > { %v903_v2 = vpop.permute.xlu2 %902 }
 0x229   : > { %976 = vst.msk [vmem:[#allocation3 + $0xb8] sm:$0xff] %vm952_vm3, %v903_v2  ;;  %v1269_v3 = vpop.permute.xlu1 %1268 }
 0x22a   : > { %v1847_v50 = vpop.permute.xlu0 %1846 }
 0x22b   : > { %1931 = vst.msk [vmem:[#allocation3 + $0x60] sm:$0xff] %vm1918_vm8, %v1847_v50 }
 0x22c   : > { %2124 = vst.msk [vmem:[#allocation3 + $0x60] sm:$0xff] %vm2111_vm9, %v2040_v41 }
 0x22d   : > { %2317 = vst.msk [vmem:[#allocation3 + $0x60] sm:$0xff] %vm2304_vm10, %v2233_v12  ;;  %v5299_v11 = vld [vmem:[#allocation4 + $0x68] sm:$0xff] }
 0x22e   : > { %1085 = vrot.lane.b32.xlu2 %v2160_v20, %s6252_s27  ;;  %2750 = vst.msk [vmem:[#allocation5 + $0x68] sm:$0xff] %vm613_vm1, %v5299_v11  ;;  %v2163_v20 = vld [vmem:[#allocation2 + $0x192] sm:$0xff] }
 0x22f   : > { %2242 = vrot.lane.b32.xlu1 %v2161_v6, %s6255_s25  ;;  %2049 = vrot.lane.b32.xlu0 %v5005_v10, %s6253_s28 }
 0x230   : > { %v1271_v1 = vpop.permute.xlu2 %1270 }
 0x231   : > { %v1849_v5 = vpop.permute.xlu1 %1848  ;;  %v2514_v14 = vpop.f32.mrf.mxu1 }
 0x232   : > { %v899_v13 = vpop.permute.xlu0 %898  ;;  %v2515_v7 = vadd.f32 %v5049_v32, %v2514_v14 }
 0x233   : > { %974 = vst.msk [vmem:[#allocation3 + $0xa8] sm:$0xff] %vm952_vm3, %v899_v13 }
 0x234   : > { %v2349_v23 = vld [vmem:[#allocation3 + $0x60] sm:$0xff]  ;;  %v2598_v24 = vmax.f32 %v2515_v7, 0.0 }
 0x235   : > { %3906 = vmatmul.msk.f32.gmra.mxu1 %vm2382_vm11, %v2349_v23 }
 0x236   : > { %1664 = vrot.lane.b32.xlu2 %v2161_v6, %s4155_s29  ;;  %2679 = vst.msk [vmem:[#allocation4 + $0x70] sm:$0xff] %vm613_vm1, %v2598_v24 }
 0x237   : > { %1471 = vrot.lane.b32.xlu1 %v5005_v10, %s6250_s16  ;;  %1278 = vrot.lane.b32.xlu0 %v4942_v46, %s6251_s17  ;;  %v2162_v10 = vld [vmem:[#allocation2 + $0x182] sm:$0xff] }
 0x238   : > { %v1851_v12 = vpop.permute.xlu2 %1850 }
 0x239   : > { %v901_v16 = vpop.permute.xlu1 %900 }
 0x23a   : > { %v1076_v31 = vpop.permute.xlu0 %1075  ;;  %975 = vst.msk [vmem:[#allocation3 + $0xb0] sm:$0xff] %vm952_vm3, %v901_v16 }
 0x23b   : > { %1159 = vst.msk [vmem:[#allocation3 + $0x68] sm:$0xff] %vm1145_vm4, %v1076_v31  ;;  %v362_v31 = vld [vmem:[%s4274_s21 + $0xf8] sm:$0xff] }
 0x23c   : > { %1352 = vst.msk [vmem:[#allocation3 + $0x68] sm:$0xff] %vm1338_vm5, %v1269_v3  ;;  %v2517_v27 = vpop.f32.mrf.mxu1  ;;  %3893 = vmatmul.msk.f32.gmra.mxu0 %vm371_vm0, %v362_v31 }
 0x23d   : > { %1545 = vst.msk [vmem:[#allocation3 + $0x68] sm:$0xff] %vm1531_vm6, %v1462_v37  ;;  %v2518_v29 = vadd.f32 %v5049_v32, %v2517_v27  ;;  %v5322_v46 = vld [vmem:[#allocation4 + $0x70] sm:$0xff] }
 0x23e   : > { %2244 = vrot.lane.b32.xlu2 %v2162_v10, %s6255_s25  ;;  %2751 = vst.msk [vmem:[#allocation5 + $0x70] sm:$0xff] %vm613_vm1, %v5322_v46  ;;  %v2165_v27 = vld [vmem:[#allocation2 + $0x1b2] sm:$0xff] }
 0x23f   : > { %2051 = vrot.lane.b32.xlu1 %v5025_v19, %s6253_s28  ;;  %v2599_v38 = vmax.f32 %v2518_v29, 0.0  ;;  %1858 = vrot.lane.b32.xlu0 %v4961_v55, %s6254_s23 }
 0x240   : > { %v909_v28 = vpop.permute.xlu2 %908 }
 0x241   : > { %2680 = vst.msk [vmem:[#allocation4 + $0x78] sm:$0xff] %vm613_vm1, %v2599_v38  ;;  %v1078_v34 = vpop.permute.xlu1 %1077 }
 0x242   : > { %v1655_v35 = vpop.permute.xlu0 %1654  ;;  %979 = vst.msk [vmem:[#allocation3 + $0xd0] sm:$0xff] %vm952_vm3, %v909_v28 }
 0x243   : > { %1160 = vst.msk [vmem:[#allocation3 + $0x70] sm:$0xff] %vm1145_vm4, %v1078_v34 }
 0x244   : > { %1353 = vst.msk [vmem:[#allocation3 + $0x70] sm:$0xff] %vm1338_vm5, %v1271_v1 }
 0x245   : > { %1738 = vst.msk [vmem:[#allocation3 + $0x68] sm:$0xff] %vm1724_vm7, %v1655_v35 }
 0x246   : > { %1932 = vst.msk [vmem:[#allocation3 + $0x68] sm:$0xff] %vm1918_vm8, %v1849_v5  ;;  %1473 = vrot.lane.b32.xlu2 %v5025_v19, %s6250_s16 }
 0x247   : > { %1280 = vrot.lane.b32.xlu1 %v4961_v55, %s6251_s17  ;;  %2125 = vst.msk [vmem:[#allocation3 + $0x68] sm:$0xff] %vm2111_vm9, %v5280_v57  ;;  %1087 = vrot.lane.b32.xlu0 %v2161_v6, %s6252_s27  ;;  %v2164_v6 = vld [vmem:[#allocation2 + $0x1a2] sm:$0xff] }
 0x248   : > { %v1080_v39 = vpop.permute.xlu2 %1079  ;;  %v5341_v56 = vld [vmem:[#allocation4 + $0x78] sm:$0xff] }
 0x249   : > { %1161 = vst.msk [vmem:[#allocation3 + $0x78] sm:$0xff] %vm1145_vm4, %v1080_v39  ;;  %v1657_v37 = vpop.permute.xlu1 %1656 }
 0x24a   : > { %v2235_v41 = vpop.permute.xlu0 %2234  ;;  %2752 = vst.msk [vmem:[#allocation5 + $0x78] sm:$0xff] %vm613_vm1, %v5341_v56 }
 0x24b   : > { %2318 = vst.msk [vmem:[#allocation3 + $0x68] sm:$0xff] %vm2304_vm10, %v2235_v41  ;;  %v1973_v41 = vld [vmem:[#allocation2 + $0x1c1] sm:$0xff] }
 0x24e   : > { %2053 = vrot.lane.b32.xlu2 %v5062_v33, %s6253_s28 }
 0x24f   : > { %1860 = vrot.lane.b32.xlu1 %v4981_v62, %s6254_s23  ;;  %1666 = vrot.lane.b32.xlu0 %v2162_v10, %s4155_s29 }
 0x250   : > { %v1659_v55 = vpop.permute.xlu2 %1658 }
 0x251   : > { %v907_v19 = vpop.permute.xlu1 %906 }
 0x252   : > { %v1464_v43 = vpop.permute.xlu0 %1463  ;;  %v2350_v45 = vld [vmem:[#allocation3 + $0x68] sm:$0xff]  ;;  %978 = vst.msk [vmem:[#allocation3 + $0xc8] sm:$0xff] %vm952_vm3, %v907_v19 }
 0x253   : > { %3907 = vmatmul.msk.f32.gmra.mxu1 %vm2382_vm11, %v2350_v45  ;;  %1546 = vst.msk [vmem:[#allocation3 + $0x70] sm:$0xff] %vm1531_vm6, %v1464_v43  ;;  %v2166_v45 = vld [vmem:[#allocation2 + $0x1c2] sm:$0xff] }
 0x254   : > { %1739 = vst.msk [vmem:[#allocation3 + $0x70] sm:$0xff] %vm1724_vm7, %v1657_v37 }
 0x255   : > { %1933 = vst.msk [vmem:[#allocation3 + $0x70] sm:$0xff] %vm1918_vm8, %v1851_v12 }
 0x256   : > { %1282 = vrot.lane.b32.xlu2 %v4981_v62, %s6251_s17 }
 0x257   : > { %1089 = vrot.lane.b32.xlu1 %v2162_v10, %s6252_s27  ;;  %2246 = vrot.lane.b32.xlu0 %v2163_v20, %s6255_s25 }
 0x258   : > { %v915_v57 = vpop.permute.xlu2 %914 }
 0x259   : > { %982 = vst.msk [vmem:[#allocation3 + $0xe8] sm:$0xff] %vm952_vm3, %v915_v57  ;;  %v2237_v58 = vpop.permute.xlu1 %2236 }
 0x25a   : > { %v2044_v48 = vpop.permute.xlu0 %2043  ;;  %v2520_v60 = vpop.f32.mrf.mxu1 }
 0x25b   : > { %2126 = vst.msk [vmem:[#allocation3 + $0x70] sm:$0xff] %vm2111_vm9, %v2044_v48  ;;  %v2521_v63 = vadd.f32 %v5049_v32, %v2520_v60  ;;  %v1781_v60 = vld [vmem:[#allocation2 + $0x1d0] sm:$0xff] }
 0x25c   : > { %2319 = vst.msk [vmem:[#allocation3 + $0x70] sm:$0xff] %vm2304_vm10, %v2237_v58 }
 0x25d   : > { %v2600_v36 = vmax.f32 %v2521_v63, 0.0 }
 0x25e   : > { %1862 = vrot.lane.b32.xlu2 %v5002_v9, %s6254_s23 }
 0x25f   : > { %1668 = vrot.lane.b32.xlu1 %v2163_v20, %s4155_s29  ;;  %2681 = vst.msk [vmem:[#allocation4 + $0x80] sm:$0xff] %vm613_vm1, %v2600_v36  ;;  %1475 = vrot.lane.b32.xlu0 %v5062_v33, %s6250_s16 }
 0x260   : > { %v2239_v62 = vpop.permute.xlu2 %2238 }
 0x261   : > { %v1466_v2 = vpop.permute.xlu1 %1465 }
 0x262   : > { %v911_v3 = vpop.permute.xlu0 %910 }
 0x263   : > { %980 = vst.msk [vmem:[#allocation3 + $0xd8] sm:$0xff] %vm952_vm3, %v911_v3  ;;  %v2351_v50 = vld [vmem:[#allocation3 + $0x70] sm:$0xff] }
 0x264   : > { %3908 = vmatmul.msk.f32.gmra.mxu1 %vm2382_vm11, %v2351_v50 }
 0x266   : > { %1091 = vrot.lane.b32.xlu2 %v2163_v20, %s6252_s27  ;;  %v5375_v1 = vld [vmem:[#allocation4 + $0x80] sm:$0xff] }
 0x267   : > { %2248 = vrot.lane.b32.xlu1 %v2164_v6, %s6255_s25  ;;  %2055 = vrot.lane.b32.xlu0 %v5079_v26, %s6253_s28  ;;  %2753 = vst.msk [vmem:[#allocation5 + $0x80] sm:$0xff] %vm613_vm1, %v5375_v1 }
 0x268   : > { %v1468_v33 = vpop.permute.xlu2 %1467 }
 0x269   : > { %v913_v5 = vpop.permute.xlu1 %912 }
 0x26a   : > { %v1273_v13 = vpop.permute.xlu0 %1272  ;;  %981 = vst.msk [vmem:[#allocation3 + $0xe0] sm:$0xff] %vm952_vm3, %v913_v5  ;;  %v2523_v14 = vpop.f32.mrf.mxu1  ;;  %v1974_v5 = vld [vmem:[#allocation2 + $0x1d1] sm:$0xff] }
 0x26b   : > { %1354 = vst.msk [vmem:[#allocation3 + $0x78] sm:$0xff] %vm1338_vm5, %v1273_v13  ;;  %v2524_v7 = vadd.f32 %v5049_v32, %v2523_v14 }
 0x26c   : > { %1547 = vst.msk [vmem:[#allocation3 + $0x78] sm:$0xff] %vm1531_vm6, %v1466_v2 }
 0x26d   : > { %1740 = vst.msk [vmem:[#allocation3 + $0x78] sm:$0xff] %vm1724_vm7, %v1659_v55  ;;  %v2601_v23 = vmax.f32 %v2524_v7, 0.0  ;;  %v1780_v55 = vld [vmem:[#allocation2 + $0x1c0] sm:$0xff] }
 0x26e   : > { %1670 = vrot.lane.b32.xlu2 %v2164_v6, %s4155_s29 }
 0x26f   : > { %1477 = vrot.lane.b32.xlu1 %v5079_v26, %s6250_s16  ;;  %2682 = vst.msk [vmem:[#allocation4 + $0x88] sm:$0xff] %vm613_vm1, %v2601_v23  ;;  %1284 = vrot.lane.b32.xlu0 %v5002_v9, %s6251_s17 }
 0x270   : > { %v2048_v24 = vpop.permute.xlu2 %2047 }
 0x271   : > { %v2046_v12 = vpop.permute.xlu1 %2045 }
 0x272   : > { %v1853_v16 = vpop.permute.xlu0 %1852 }
 0x273   : > { %1934 = vst.msk [vmem:[#allocation3 + $0x78] sm:$0xff] %vm1918_vm8, %v1853_v16 }
 0x274   : > { %2127 = vst.msk [vmem:[#allocation3 + $0x78] sm:$0xff] %vm2111_vm9, %v2046_v12 }
 0x275   : > { %2320 = vst.msk [vmem:[#allocation3 + $0x78] sm:$0xff] %vm2304_vm10, %v2239_v62 }
 0x276   : > { %2250 = vrot.lane.b32.xlu2 %v2165_v27, %s6255_s25  ;;  %v5400_v26 = vld [vmem:[#allocation4 + $0x88] sm:$0xff] }
 0x277   : > { %2057 = vrot.lane.b32.xlu1 %v5103_v53, %s6253_s28  ;;  %1864 = vrot.lane.b32.xlu0 %v5038_v22, %s6254_s23  ;;  %2754 = vst.msk [vmem:[#allocation5 + $0x88] sm:$0xff] %vm613_vm1, %v5400_v26 }
 0x278   : > { %v1277_v9 = vpop.permute.xlu2 %1276 }
 0x279   : > { %v1275_v29 = vpop.permute.xlu1 %1274 }
 0x27a   : > { %v917_v10 = vpop.permute.xlu0 %916 }
 0x27b   : > { %983 = vst.msk [vmem:[#allocation3 + $0xf0] sm:$0xff] %vm952_vm3, %v917_v10 }
 0x27c   : > { %v2352_v38 = vld [vmem:[#allocation3 + $0x78] sm:$0xff] }
 0x27d   : > { %3909 = vmatmul.msk.f32.gmra.mxu1 %vm2382_vm11, %v2352_v38 }
 0x27e   : > { %1479 = vrot.lane.b32.xlu2 %v5103_v53, %s6250_s16 }
 0x27f   : > { %1286 = vrot.lane.b32.xlu1 %v5038_v22, %s6251_s17  ;;  %1093 = vrot.lane.b32.xlu0 %v2164_v6, %s6252_s27  ;;  %v1009_v6 = vld [vmem:[#allocation2 + $0x1e2] sm:$0xff] }
 0x280   : > { %v1857_v28 = vpop.permute.xlu2 %1856 }
 0x281   : > { %v919_v34 = vpop.permute.xlu1 %918 }
 0x282   : > { %v1082_v35 = vpop.permute.xlu0 %1081  ;;  %984 = vst.msk [vmem:[#allocation3 + $0xf8] sm:$0xff] %vm952_vm3, %v919_v34 }
 0x283   : > { %v2526_v39 = vpop.f32.mrf.mxu1  ;;  %1162 = vst.msk [vmem:[#allocation3 + $0x80] sm:$0xff] %vm1145_vm4, %v1082_v35 }
 0x284   : > { %v2527_v37 = vadd.f32 %v5049_v32, %v2526_v39  ;;  %1355 = vst.msk [vmem:[#allocation3 + $0x80] sm:$0xff] %vm1338_vm5, %v1275_v29 }
 0x285   : > { %1548 = vst.msk [vmem:[#allocation3 + $0x80] sm:$0xff] %vm1531_vm6, %v1468_v33  ;;  %v2167_v33 = vld [vmem:[#allocation2 + $0x1d2] sm:$0xff] }
 0x286   : > { %v2602_v53 = vmax.f32 %v2527_v37, 0.0  ;;  %2059 = vrot.lane.b32.xlu2 %v1973_v41, %s6253_s28 }
 0x287   : > { %1866 = vrot.lane.b32.xlu1 %v1780_v55, %s6254_s23  ;;  %1672 = vrot.lane.b32.xlu0 %v2165_v27, %s4155_s29 }
 0x288   : > { %2683 = vst.msk [vmem:[#allocation4 + $0x90] sm:$0xff] %vm613_vm1, %v2602_v53  ;;  %v1086_v22 = vpop.permute.xlu2 %1085 }
 0x289   : > { %1164 = vst.msk [vmem:[#allocation3 + $0x90] sm:$0xff] %vm1145_vm4, %v1086_v22  ;;  %v1855_v19 = vpop.permute.xlu1 %1854  ;;  %v2169_v22 = vld [vmem:[#allocation2 + $0x212] sm:$0xff] }
 0x28a   : > { %v1661_v43 = vpop.permute.xlu0 %1660 }
 0x28b   : > { %1741 = vst.msk [vmem:[#allocation3 + $0x80] sm:$0xff] %vm1724_vm7, %v1661_v43 }
 0x28c   : > { %1935 = vst.msk [vmem:[#allocation3 + $0x80] sm:$0xff] %vm1918_vm8, %v1855_v19 }
 0x28d   : > { %2128 = vst.msk [vmem:[#allocation3 + $0x80] sm:$0xff] %vm2111_vm9, %v2048_v24  ;;  %v1588_v24 = vld [vmem:[#allocation2 + $0x1f2] sm:$0xff] }
 0x28e   : > { %1288 = vrot.lane.b32.xlu2 %v1780_v55, %s6251_s17 }
 0x28f   : > { %1095 = vrot.lane.b32.xlu1 %v2165_v27, %s6252_s27  ;;  %v5428_v20 = vld [vmem:[#allocation4 + $0x90] sm:$0xff]  ;;  %2252 = vrot.lane.b32.xlu0 %v2166_v45, %s6255_s25 }
 0x290   : > { %2755 = vst.msk [vmem:[#allocation5 + $0x90] sm:$0xff] %vm613_vm1, %v5428_v20  ;;  %v1665_v57 = vpop.permute.xlu2 %1664 }
 0x291   : > { %v1084_v58 = vpop.permute.xlu1 %1083 }
 0x292   : > { %v2241_v48 = vpop.permute.xlu0 %2240  ;;  %1163 = vst.msk [vmem:[#allocation3 + $0x88] sm:$0xff] %vm1145_vm4, %v1084_v58 }
 0x293   : > { %1356 = vst.msk [vmem:[#allocation3 + $0x88] sm:$0xff] %vm1338_vm5, %v1277_v9 }
 0x294   : > { %2321 = vst.msk [vmem:[#allocation3 + $0x80] sm:$0xff] %vm2304_vm10, %v2241_v48 }
 0x296   : > { %1868 = vrot.lane.b32.xlu2 %v1781_v60, %s6254_s23 }
 0x297   : > { %1674 = vrot.lane.b32.xlu1 %v2166_v45, %s4155_s29  ;;  %1481 = vrot.lane.b32.xlu0 %v1973_v41, %s6250_s16 }
 0x298   : > { %v2245_v63 = vpop.permute.xlu2 %2244 }
 0x299   : > { %v1663_v36 = vpop.permute.xlu1 %1662 }
 0x29a   : > { %v1470_v62 = vpop.permute.xlu0 %1469  ;;  %v2529_v2 = vpop.f32.mrf.mxu1 }
 0x29b   : > { %1549 = vst.msk [vmem:[#allocation3 + $0x88] sm:$0xff] %vm1531_vm6, %v1470_v62  ;;  %v2530_v3 = vadd.f32 %v5049_v32, %v2529_v2  ;;  %v2353_v50 = vld [vmem:[#allocation3 + $0x80] sm:$0xff] }
 0x29c   : > { %1742 = vst.msk [vmem:[#allocation3 + $0x88] sm:$0xff] %vm1724_vm7, %v1663_v36  ;;  %3910 = vmatmul.msk.f32.gmra.mxu1 %vm2382_vm11, %v2353_v50  ;;  %v2170_v62 = vld [vmem:[#allocation2 + $0x222] sm:$0xff] }
 0x29d   : > { %1936 = vst.msk [vmem:[#allocation3 + $0x88] sm:$0xff] %vm1918_vm8, %v1857_v28  ;;  %v2603_v13 = vmax.f32 %v2530_v3, 0.0 }
 0x29e   : > { %1097 = vrot.lane.b32.xlu2 %v1009_v6, %s6252_s27 }
 0x29f   : > { %2254 = vrot.lane.b32.xlu1 %v2167_v33, %s6255_s25  ;;  %2684 = vst.msk [vmem:[#allocation4 + $0x98] sm:$0xff] %vm613_vm1, %v2603_v13  ;;  %2061 = vrot.lane.b32.xlu0 %v1974_v5, %s6253_s28  ;;  %v5531_v33 = vld [vmem:[%s6230_s4] ss:$0 sm:$0xff] }
 0x2a0   : > { %v1474_v14 = vpop.permute.xlu2 %1473 }
 0x2a1   : > { %v2243_v7 = vpop.permute.xlu1 %2242 }
 0x2a2   : > { %v2050_v23 = vpop.permute.xlu0 %2049 }
 0x2a3   : > { %2129 = vst.msk [vmem:[#allocation3 + $0x88] sm:$0xff] %vm2111_vm9, %v2050_v23 }
 0x2a4   : > { %2322 = vst.msk [vmem:[#allocation3 + $0x88] sm:$0xff] %vm2304_vm10, %v2243_v7 }
 0x2a6   : > { %1676 = vrot.lane.b32.xlu2 %v1588_v24, %s4155_s29  ;;  %v5453_v12 = vld [vmem:[#allocation4 + $0x98] sm:$0xff] }
 0x2a7   : > { %1483 = vrot.lane.b32.xlu1 %v5143_v17, %s6250_s16  ;;  %1290 = vrot.lane.b32.xlu0 %v5081_v42, %s6251_s17  ;;  %2756 = vst.msk [vmem:[#allocation5 + $0x98] sm:$0xff] %vm613_vm1, %v5453_v12  ;;  %v2168_v17 = vld [vmem:[#allocation2 + $0x202] sm:$0xff] }
 0x2a8   : > { %v2054_v16 = vpop.permute.xlu2 %2053 }
 0x2a9   : > { %v1472_v31 = vpop.permute.xlu1 %1471 }
 0x2aa   : > { %v1279_v27 = vpop.permute.xlu0 %1278 }
 0x2ab   : > { %1357 = vst.msk [vmem:[#allocation3 + $0x90] sm:$0xff] %vm1338_vm5, %v1279_v27  ;;  %v2354_v9 = vld [vmem:[#allocation3 + $0x88] sm:$0xff] }
 0x2ac   : > { %1550 = vst.msk [vmem:[#allocation3 + $0x90] sm:$0xff] %vm1531_vm6, %v1472_v31  ;;  %3911 = vmatmul.msk.f32.gmra.mxu1 %vm2382_vm11, %v2354_v9 }
 0x2ad   : > { %1743 = vst.msk [vmem:[#allocation3 + $0x90] sm:$0xff] %vm1724_vm7, %v1665_v57 }
 0x2ae   : > { %2256 = vrot.lane.b32.xlu2 %v2168_v17, %s6255_s25 }
 0x2af   : > { %2063 = vrot.lane.b32.xlu1 %v5167_v15, %s6253_s28  ;;  %1870 = vrot.lane.b32.xlu0 %v5105_v44, %s6254_s23 }
 0x2b0   : > { %v1283_v42 = vpop.permute.xlu2 %1282 }
 0x2b1   : > { %v2052_v29 = vpop.permute.xlu1 %2051 }
 0x2b2   : > { %v1859_v10 = vpop.permute.xlu0 %1858  ;;  %v2532_v38 = vpop.f32.mrf.mxu1 }
 0x2b3   : > { %1937 = vst.msk [vmem:[#allocation3 + $0x90] sm:$0xff] %vm1918_vm8, %v1859_v10  ;;  %v2533_v28 = vadd.f32 %v5049_v32, %v2532_v38 }
 0x2b4   : > { %2130 = vst.msk [vmem:[#allocation3 + $0x90] sm:$0xff] %vm2111_vm9, %v2052_v29 }
 0x2b5   : > { %2323 = vst.msk [vmem:[#allocation3 + $0x90] sm:$0xff] %vm2304_vm10, %v2245_v63  ;;  %v2604_v34 = vmax.f32 %v2533_v28, 0.0 }
 0x2b6   : > { %1485 = vrot.lane.b32.xlu2 %v5167_v15, %s6250_s16 }
 0x2b7   : > { %1292 = vrot.lane.b32.xlu1 %v5105_v44, %s6251_s17  ;;  %2685 = vst.msk [vmem:[#allocation4 + $0xa0] sm:$0xff] %vm613_vm1, %v2604_v34  ;;  %1099 = vrot.lane.b32.xlu0 %v1588_v24, %s6252_s27 }
 0x2b8   : > { %v1863_v35 = vpop.permute.xlu2 %1862 }
 0x2b9   : > { %v1281_v39 = vpop.permute.xlu1 %1280  ;;  %v578_v29 = vpop.f32.mrf.mxu0 }
 0x2ba   : > { %v1088_v37 = vpop.permute.xlu0 %1087 }
 0x2bb   : > { %1165 = vst.msk [vmem:[#allocation3 + $0x98] sm:$0xff] %vm1145_vm4, %v1088_v37 }
 0x2bc   : > { %1358 = vst.msk [vmem:[#allocation3 + $0x98] sm:$0xff] %vm1338_vm5, %v1281_v39  ;;  %v2355_v53 = vld [vmem:[#allocation3 + $0x90] sm:$0xff] }
 0x2bd   : > { %1551 = vst.msk [vmem:[#allocation3 + $0x98] sm:$0xff] %vm1531_vm6, %v1474_v14  ;;  %3912 = vmatmul.msk.f32.gmra.mxu1 %vm2382_vm11, %v2355_v53  ;;  %v2172_v53 = vld [vmem:[#allocation2 + $0x242] sm:$0xff] }
 0x2be   : > { %2065 = vrot.lane.b32.xlu2 %v5189_v49, %s6253_s28  ;;  %v5486_v44 = vld [vmem:[#allocation4 + $0xa0] sm:$0xff] }
 0x2bf   : > { %1872 = vrot.lane.b32.xlu1 %v5122_v4, %s6254_s23  ;;  %1678 = vrot.lane.b32.xlu0 %v2168_v17, %s4155_s29  ;;  %2757 = vst.msk [vmem:[#allocation5 + $0xa0] sm:$0xff] %vm613_vm1, %v5486_v44 }
 0x2c0   : > { %v1092_v15 = vpop.permute.xlu2 %1091 }
 0x2c1   : > { %1167 = vst.msk [vmem:[#allocation3 + $0xa8] sm:$0xff] %vm1145_vm4, %v1092_v15  ;;  %v1861_v41 = vpop.permute.xlu1 %1860 }
 0x2c2   : > { %v1667_v55 = vpop.permute.xlu0 %1666 }
 0x2c3   : > { %1744 = vst.msk [vmem:[#allocation3 + $0x98] sm:$0xff] %vm1724_vm7, %v1667_v55 }
 0x2c4   : > { %1938 = vst.msk [vmem:[#allocation3 + $0x98] sm:$0xff] %vm1918_vm8, %v1861_v41 }
 0x2c5   : > { %2131 = vst.msk [vmem:[#allocation3 + $0x98] sm:$0xff] %vm2111_vm9, %v2054_v16 }
 0x2c6   : > { %1294 = vrot.lane.b32.xlu2 %v5122_v4, %s6251_s17 }
 0x2c7   : > { %1101 = vrot.lane.b32.xlu1 %v2168_v17, %s6252_s27  ;;  %2258 = vrot.lane.b32.xlu0 %v2169_v22, %s6255_s25 }
 0x2c8   : > { %v1671_v19 = vpop.permute.xlu2 %1670 }
 0x2c9   : > { %v1090_v43 = vpop.permute.xlu1 %1089 }
 0x2ca   : > { %v2247_v45 = vpop.permute.xlu0 %2246  ;;  %1166 = vst.msk [vmem:[#allocation3 + $0xa0] sm:$0xff] %vm1145_vm4, %v1090_v43 }
 0x2cb   : > { %1359 = vst.msk [vmem:[#allocation3 + $0xa0] sm:$0xff] %vm1338_vm5, %v1283_v42 }
 0x2cc   : > { %2324 = vst.msk [vmem:[#allocation3 + $0x98] sm:$0xff] %vm2304_vm10, %v2247_v45 }
 0x2ce   : > { %1874 = vrot.lane.b32.xlu2 %v5145_v18, %s6254_s23 }
 0x2cf   : > { %1680 = vrot.lane.b32.xlu1 %v2169_v22, %s4155_s29  ;;  %1487 = vrot.lane.b32.xlu0 %v5189_v49, %s6250_s16 }
 0x2d0   : > { %v2535_v4 = vpop.f32.mrf.mxu1  ;;  %v2251_v58 = vpop.permute.xlu2 %2250 }
 0x2d1   : > { %v2536_v57 = vadd.f32 %v5049_v32, %v2535_v4  ;;  %v1669_v48 = vpop.permute.xlu1 %1668  ;;  %v2173_v4 = vld [vmem:[#allocation2 + $0x252] sm:$0xff] }
 0x2d2   : > { %v1476_v60 = vpop.permute.xlu0 %1475 }
 0x2d3   : > { %v2605_v63 = vmax.f32 %v2536_v57, 0.0  ;;  %1552 = vst.msk [vmem:[#allocation3 + $0xa0] sm:$0xff] %vm1531_vm6, %v1476_v60  ;;  %v2356_v36 = vld [vmem:[#allocation3 + $0x98] sm:$0xff] }
 0x2d4   : > { %1745 = vst.msk [vmem:[#allocation3 + $0xa0] sm:$0xff] %vm1724_vm7, %v1669_v48  ;;  %3913 = vmatmul.msk.f32.gmra.mxu1 %vm2382_vm11, %v2356_v36 }
 0x2d5   : > { %2686 = vst.msk [vmem:[#allocation4 + $0xa8] sm:$0xff] %vm613_vm1, %v2605_v63 }
 0x2d6   : > { %1939 = vst.msk [vmem:[#allocation3 + $0xa0] sm:$0xff] %vm1918_vm8, %v1863_v35  ;;  %1103 = vrot.lane.b32.xlu2 %v2169_v22, %s6252_s27 }
 0x2d7   : > { %2260 = vrot.lane.b32.xlu1 %v2170_v62, %s6255_s25  ;;  %2067 = vrot.lane.b32.xlu0 %v5208_v59, %s6253_s28 }
 0x2d8   : > { %v1480_v32 = vpop.permute.xlu2 %1479 }
 0x2d9   : > { %v2249_v49 = vpop.permute.xlu1 %2248 }
 0x2da   : > { %v2056_v2 = vpop.permute.xlu0 %2055 }
 0x2db   : > { %2132 = vst.msk [vmem:[#allocation3 + $0xa0] sm:$0xff] %vm2111_vm9, %v2056_v2 }
 0x2dc   : > { %2325 = vst.msk [vmem:[#allocation3 + $0xa0] sm:$0xff] %vm2304_vm10, %v2249_v49  ;;  %v5519_v3 = vld [vmem:[#allocation4 + $0xa8] sm:$0xff] }
 0x2dd   : > { %2758 = vst.msk [vmem:[#allocation5 + $0xa8] sm:$0xff] %vm613_vm1, %v5519_v3 }
 0x2de   : > { %1682 = vrot.lane.b32.xlu2 %v2170_v62, %s4155_s29 }
 0x2df   : > { %1489 = vrot.lane.b32.xlu1 %v5208_v59, %s6250_s16  ;;  %1296 = vrot.lane.b32.xlu0 %v5145_v18, %s6251_s17  ;;  %v2171_v18 = vld [vmem:[#allocation2 + $0x232] sm:$0xff] }
 0x2e0   : > { %v2060_v6 = vpop.permute.xlu2 %2059 }
 0x2e1   : > { %v2538_v50 = vpop.f32.mrf.mxu1  ;;  %v1478_v13 = vpop.permute.xlu1 %1477 }
 0x2e2   : > { %v2539_v5 = vadd.f32 %v5531_v33, %v2538_v50  ;;  %v1285_v14 = vpop.permute.xlu0 %1284 }
 0x2e3   : > { %1360 = vst.msk [vmem:[#allocation3 + $0xa8] sm:$0xff] %vm1338_vm5, %v1285_v14  ;;  %v2357_v7 = vld [vmem:[#allocation3 + $0xa0] sm:$0xff] }
 0x2e4   : > { %v2606_v23 = vmax.f32 %v2539_v5, 0.0  ;;  %1553 = vst.msk [vmem:[#allocation3 + $0xa8] sm:$0xff] %vm1531_vm6, %v1478_v13  ;;  %3914 = vmatmul.msk.f32.gmra.mxu1 %vm2382_vm11, %v2357_v7 }
 0x2e5   : > { %1746 = vst.msk [vmem:[#allocation3 + $0xa8] sm:$0xff] %vm1724_vm7, %v1671_v19 }
 0x2e6   : > { %2687 = vst.msk [vmem:[#allocation4 + $0xb0] sm:$0xff] %vm613_vm1, %v2606_v23  ;;  %2262 = vrot.lane.b32.xlu2 %v2171_v18, %s6255_s25 }
 0x2e7   : > { %2069 = vrot.lane.b32.xlu1 %v5225_v8, %s6253_s28  ;;  %1876 = vrot.lane.b32.xlu0 %v5169_v0, %s6254_s23 }
 0x2e8   : > { %v1289_v59 = vpop.permute.xlu2 %1288 }
 0x2e9   : > { %v2058_v24 = vpop.permute.xlu1 %2057 }
 0x2ea   : > { %v1865_v16 = vpop.permute.xlu0 %1864 }
 0x2eb   : > { %1940 = vst.msk [vmem:[#allocation3 + $0xa8] sm:$0xff] %vm1918_vm8, %v1865_v16  ;;  %v1982_v16 = vld [vmem:[#allocation2 + $0x271] sm:$0xff] }
 0x2ec   : > { %2133 = vst.msk [vmem:[#allocation3 + $0xa8] sm:$0xff] %vm2111_vm9, %v2058_v24 }
 0x2ed   : > { %2326 = vst.msk [vmem:[#allocation3 + $0xa8] sm:$0xff] %vm2304_vm10, %v2251_v58  ;;  %v5547_v31 = vld [vmem:[#allocation4 + $0xb0] sm:$0xff] }
 0x2ee   : > { %2759 = vst.msk [vmem:[#allocation5 + $0xb0] sm:$0xff] %vm613_vm1, %v5547_v31  ;;  %1491 = vrot.lane.b32.xlu2 %v5225_v8, %s6250_s16  ;;  %v4052_v8 = vld [vmem:[%s6228_s2] ss:$0 sm:$0xff] }
 0x2ef   : > { %1298 = vrot.lane.b32.xlu1 %v5169_v0, %s6251_s17  ;;  %1105 = vrot.lane.b32.xlu0 %v2170_v62, %s6252_s27  ;;  %v579_v0 = vadd.f32 %v4052_v8, %v578_v29  ;;  %v2175_v8 = vld [vmem:[#allocation2 + $0x272] sm:$0xff] }
 0x2f0   : > { %v1869_v27 = vpop.permute.xlu2 %1868 }
 0x2f1   : > { %v1287_v9 = vpop.permute.xlu1 %1286  ;;  %v612_v10 = vmax.f32 %v579_v0, 0.0 }
 0x2f2   : > { %v1094_v17 = vpop.permute.xlu0 %1093 }
 0x2f3   : > { %1168 = vst.msk [vmem:[#allocation3 + $0xb0] sm:$0xff] %vm1145_vm4, %v1094_v17 }
 0x2f4   : > { %1361 = vst.msk [vmem:[#allocation3 + $0xb0] sm:$0xff] %vm1338_vm5, %v1287_v9  ;;  %v2358_v42 = vld [vmem:[#allocation3 + $0xa8] sm:$0xff] }
 0x2f5   : > { %1554 = vst.msk [vmem:[#allocation3 + $0xb0] sm:$0xff] %vm1531_vm6, %v1480_v32  ;;  %3915 = vmatmul.msk.f32.gmra.mxu1 %vm2382_vm11, %v2358_v42 }
 0x2f6   : > { %2071 = vrot.lane.b32.xlu2 %v5237_v25, %s6253_s28  ;;  %727 = vst.msk [vmem:[#allocation2 + $0x261] sm:$0xff] %vm613_vm1, %v612_v10 }
 0x2f7   : > { %1878 = vrot.lane.b32.xlu1 %v5191_v51, %s6254_s23  ;;  %1684 = vrot.lane.b32.xlu0 %v2171_v18, %s4155_s29 }
 0x2f8   : > { %v1098_v38 = vpop.permute.xlu2 %1097 }
 0x2f9   : > { %1170 = vst.msk [vmem:[#allocation3 + $0xc0] sm:$0xff] %vm1145_vm4, %v1098_v38  ;;  %v1867_v28 = vpop.permute.xlu1 %1866 }
 0x2fa   : > { %v1673_v34 = vpop.permute.xlu0 %1672  ;;  %v2541_v35 = vpop.f32.mrf.mxu1 }
 0x2fb   : > { %1747 = vst.msk [vmem:[#allocation3 + $0xb0] sm:$0xff] %vm1724_vm7, %v1673_v34  ;;  %v2542_v39 = vadd.f32 %v5531_v33, %v2541_v35 }
 0x2fc   : > { %1941 = vst.msk [vmem:[#allocation3 + $0xb0] sm:$0xff] %vm1918_vm8, %v1867_v28 }
 0x2fd   : > { %2134 = vst.msk [vmem:[#allocation3 + $0xb0] sm:$0xff] %vm2111_vm9, %v2060_v6  ;;  %v2607_v37 = vmax.f32 %v2542_v39, 0.0  ;;  %v2174_v49 = vld [vmem:[#allocation2 + $0x262] sm:$0xff] }
 0x2fe   : > { %1300 = vrot.lane.b32.xlu2 %v5191_v51, %s6251_s17  ;;  %v1981_v2 = vld [vmem:[#allocation2 + $0x261] sm:$0xff] }
 0x2ff   : > { %1107 = vrot.lane.b32.xlu1 %v2171_v18, %s6252_s27  ;;  %2264 = vrot.lane.b32.xlu0 %v2172_v53, %s6255_s25  ;;  %2688 = vst.msk [vmem:[#allocation4 + $0xb8] sm:$0xff] %vm613_vm1, %v2607_v37 }
 0x300   : > { %v1677_v15 = vpop.permute.xlu2 %1676 }
 0x301   : > { %v1096_v41 = vpop.permute.xlu1 %1095 }
 0x302   : > { %v2253_v55 = vpop.permute.xlu0 %2252  ;;  %1169 = vst.msk [vmem:[#allocation3 + $0xb8] sm:$0xff] %vm1145_vm4, %v1096_v41 }
 0x303   : > { %1362 = vst.msk [vmem:[#allocation3 + $0xb8] sm:$0xff] %vm1338_vm5, %v1289_v59 }
 0x304   : > { %2327 = vst.msk [vmem:[#allocation3 + $0xb0] sm:$0xff] %vm2304_vm10, %v2253_v55 }
 0x306   : > { %1880 = vrot.lane.b32.xlu2 %v5217_v61, %s6254_s23  ;;  %v5585_v51 = vld [vmem:[#allocation4 + $0xb8] sm:$0xff] }
 0x307   : > { %1686 = vrot.lane.b32.xlu1 %v2172_v53, %s4155_s29  ;;  %1493 = vrot.lane.b32.xlu0 %v5237_v25, %s6250_s16  ;;  %2760 = vst.msk [vmem:[#allocation5 + $0xb8] sm:$0xff] %vm613_vm1, %v5585_v51 }
 0x308   : > { %v2257_v22 = vpop.permute.xlu2 %2256 }
 0x309   : > { %v1675_v19 = vpop.permute.xlu1 %1674 }
 0x30a   : > { %v1482_v43 = vpop.permute.xlu0 %1481 }
 0x30b   : > { %1555 = vst.msk [vmem:[#allocation3 + $0xb8] sm:$0xff] %vm1531_vm6, %v1482_v43  ;;  %v2359_v45 = vld [vmem:[#allocation3 + $0xb0] sm:$0xff] }
 0x30c   : > { %1748 = vst.msk [vmem:[#allocation3 + $0xb8] sm:$0xff] %vm1724_vm7, %v1675_v19  ;;  %3916 = vmatmul.msk.f32.gmra.mxu1 %vm2382_vm11, %v2359_v45 }
 0x30d   : > { %1942 = vst.msk [vmem:[#allocation3 + $0xb8] sm:$0xff] %vm1918_vm8, %v1869_v27  ;;  %v1789_v27 = vld [vmem:[#allocation2 + $0x270] sm:$0xff] }
 0x30e   : > { %1109 = vrot.lane.b32.xlu2 %v2172_v53, %s6252_s27 }
 0x30f   : > { %2266 = vrot.lane.b32.xlu1 %v2173_v4, %s6255_s25  ;;  %2073 = vrot.lane.b32.xlu0 %v5250_v30, %s6253_s28 }
 0x310   : > { %v1486_v25 = vpop.permute.xlu2 %1485 }
 0x311   : > { %v2255_v57 = vpop.permute.xlu1 %2254 }
 0x312   : > { %v2062_v58 = vpop.permute.xlu0 %2061 }
 0x313   : > { %2135 = vst.msk [vmem:[#allocation3 + $0xb8] sm:$0xff] %vm2111_vm9, %v2062_v58 }
 0x314   : > { %2328 = vst.msk [vmem:[#allocation3 + $0xb8] sm:$0xff] %vm2304_vm10, %v2255_v57 }
 0x316   : > { %1688 = vrot.lane.b32.xlu2 %v2173_v4, %s4155_s29 }
 0x317   : > { %1495 = vrot.lane.b32.xlu1 %v5250_v30, %s6250_s16  ;;  %1302 = vrot.lane.b32.xlu0 %v5217_v61, %s6251_s17  ;;  %v1788_v30 = vld [vmem:[#allocation2 + $0x260] sm:$0xff] }
 0x318   : > { %v2066_v48 = vpop.permute.xlu2 %2065 }
 0x319   : > { %v2544_v60 = vpop.f32.mrf.mxu1  ;;  %v1484_v63 = vpop.permute.xlu1 %1483 }
 0x31a   : > { %v2545_v36 = vadd.f32 %v5531_v33, %v2544_v60  ;;  %v1291_v62 = vpop.permute.xlu0 %1290 }
 0x31b   : > { %v2360_v32 = vld [vmem:[#allocation3 + $0xb8] sm:$0xff]  ;;  %1363 = vst.msk [vmem:[#allocation3 + $0xc0] sm:$0xff] %vm1338_vm5, %v1291_v62 }
 0x31c   : > { %3917 = vmatmul.msk.f32.gmra.mxu1 %vm2382_vm11, %v2360_v32  ;;  %v2608_v50 = vmax.f32 %v2545_v36, 0.0  ;;  %1556 = vst.msk [vmem:[#allocation3 + $0xc0] sm:$0xff] %vm1531_vm6, %v1484_v63 }
 0x31d   : > { %1749 = vst.msk [vmem:[#allocation3 + $0xc0] sm:$0xff] %vm1724_vm7, %v1677_v15 }
 0x31e   : > { %2689 = vst.msk [vmem:[#allocation4 + $0xc0] sm:$0xff] %vm613_vm1, %v2608_v50  ;;  %2268 = vrot.lane.b32.xlu2 %v2174_v49, %s6255_s25 }
 0x31f   : > { %2075 = vrot.lane.b32.xlu1 %v1981_v2, %s6253_s28  ;;  %1882 = vrot.lane.b32.xlu0 %v1788_v30, %s6254_s23 }
 0x320   : > { %v1295_v61 = vpop.permute.xlu2 %1294 }
 0x321   : > { %v2064_v6 = vpop.permute.xlu1 %2063 }
 0x322   : > { %v1871_v5 = vpop.permute.xlu0 %1870 }
 0x323   : > { %1943 = vst.msk [vmem:[#allocation3 + $0xc0] sm:$0xff] %vm1918_vm8, %v1871_v5 }
 0x324   : > { %2136 = vst.msk [vmem:[#allocation3 + $0xc0] sm:$0xff] %vm2111_vm9, %v2064_v6 }
 0x325   : > { %2329 = vst.msk [vmem:[#allocation3 + $0xc0] sm:$0xff] %vm2304_vm10, %v2257_v22  ;;  %v5618_v13 = vld [vmem:[#allocation4 + $0xc0] sm:$0xff] }
 0x326   : > { %1497 = vrot.lane.b32.xlu2 %v1981_v2, %s6250_s16  ;;  %2761 = vst.msk [vmem:[#allocation5 + $0xc0] sm:$0xff] %vm613_vm1, %v5618_v13 }
 0x327   : > { %1304 = vrot.lane.b32.xlu1 %v1788_v30, %s6251_s17  ;;  %1111 = vrot.lane.b32.xlu0 %v2173_v4, %s6252_s27  ;;  %s323_s17 = sand.u32 1, %s4139_s10  }
 0x328   : > { %v1875_v7 = vpop.permute.xlu2 %1874 }
 0x329   : > { %v2547_v14 = vpop.f32.mrf.mxu1  ;;  %v1293_v18 = vpop.permute.xlu1 %1292 }
 0x32a   : > { %v2548_v23 = vadd.f32 %v5531_v33, %v2547_v14  ;;  %v1100_v59 = vpop.permute.xlu0 %1099 }
 0x32b   : > { %1171 = vst.msk [vmem:[#allocation3 + $0xc8] sm:$0xff] %vm1145_vm4, %v1100_v59 }
 0x32c   : > { %v2609_v24 = vmax.f32 %v2548_v23, 0.0  ;;  %1364 = vst.msk [vmem:[#allocation3 + $0xc8] sm:$0xff] %vm1338_vm5, %v1293_v18  ;;  %v2361_v9 = vld [vmem:[#allocation3 + $0xc0] sm:$0xff]  ;;  %v2707_v23 = vld [vmem:[#allocation4 + $0x10] sm:$0xff] }
 0x32d   : > { %3918 = vmatmul.msk.f32.gmra.mxu1 %vm2382_vm11, %v2361_v9  ;;  %1557 = vst.msk [vmem:[#allocation3 + $0xc8] sm:$0xff] %vm1531_vm6, %v1486_v25 }
 0x32e   : > { %2690 = vst.msk [vmem:[#allocation4 + $0xc8] sm:$0xff] %vm613_vm1, %v2609_v24  ;;  %2077 = vrot.lane.b32.xlu2 %v1982_v16, %s6253_s28  ;;  %v2705_v16 = vld [vmem:[#allocation4] sm:$0xff]  ;;  %s3859_s28 = sshll.u32 %s323_s17, 8 }
 0x32f   : > { %1884 = vrot.lane.b32.xlu1 %v1789_v27, %s6254_s23  ;;  %1690 = vrot.lane.b32.xlu0 %v2174_v49, %s4155_s29  ;;  %2739 = vst.msk [vmem:[#allocation5 + $0x10] sm:$0xff] %vm613_vm1, %v2707_v23  ;;  %s6020_s23 = scalar_lea.vmem [#allocation6], %s3859_s28 }
 0x330   : > { %v1104_v17 = vpop.permute.xlu2 %1103  ;;  %2737 = vst.msk [vmem:[#allocation5] sm:$0xff] %vm613_vm1, %v2705_v16  ;;  %s3790_s29 = sshll.u32 %s6020_s23, 4  ;;  %s3791_s29 = int_to_ptr.vmem [resolvable:$true] %s3790_s29 }
 0x331   : > { %1173 = vst.msk [vmem:[#allocation3 + $0xd8] sm:$0xff] %vm1145_vm4, %v1104_v17  ;;  %v1873_v42 = vpop.permute.xlu1 %1872 }
 0x332   : > { %v1679_v29 = vpop.permute.xlu0 %1678 }
 0x333   : > { %1750 = vst.msk [vmem:[#allocation3 + $0xc8] sm:$0xff] %vm1724_vm7, %v1679_v29 }
 0x334   : > { %1944 = vst.msk [vmem:[#allocation3 + $0xc8] sm:$0xff] %vm1918_vm8, %v1873_v42 }
 0x335   : > { %v5637_v0 = vld [vmem:[#allocation4 + $0xc8] sm:$0xff]  ;;  %2137 = vst.msk [vmem:[#allocation3 + $0xc8] sm:$0xff] %vm2111_vm9, %v2066_v48 }
 0x336   : > { %3026 = vrot.lane.b32.xlu2 %v5375_v1, %s6252_s27  ;;  %2762 = vst.msk [vmem:[#allocation5 + $0xc8] sm:$0xff] %vm613_vm1, %v5637_v0 }
 0x337   : > { %2833 = vrot.lane.b32.xlu1 %v5087_v47, %s4150_s22  ;;  %2270 = vrot.lane.b32.xlu0 %v2175_v8, %s6255_s25  ;;  %v2710_v8 = vld [vmem:[#allocation4 + $0x28] sm:$0xff]  ;;  %s3996_s25 = sshll.u32 %s4230_s13, 8  ;;  %s3778_s13 = scalar_lea.sflag [#allocation7], %s323_s17 }
 0x338   : > { %v1683_v10 = vpop.permute.xlu2 %1682  ;;  %2742 = vst.msk [vmem:[#allocation5 + $0x28] sm:$0xff] %vm613_vm1, %v2710_v8  ;;  %s3789_s14 = scalar_lea.hbm %s6235_s9, %s3996_s25 }
 0x339   : > { %v1102_v38 = vpop.permute.xlu1 %1101 }
 0x33a   : > { %v2550_v28 = vpop.f32.mrf.mxu1  ;;  %1172 = vst.msk [vmem:[#allocation3 + $0xd0] sm:$0xff] %vm1145_vm4, %v1102_v38  ;;  %v2259_v34 = vpop.permute.xlu0 %2258 }
 0x33b   : > { %v2551_v35 = vadd.f32 %v5531_v33, %v2550_v28  ;;  %1365 = vst.msk [vmem:[#allocation3 + $0xd0] sm:$0xff] %vm1338_vm5, %v1295_v61 }
 0x33c   : > { %2330 = vst.msk [vmem:[#allocation3 + $0xc8] sm:$0xff] %vm2304_vm10, %v2259_v34  ;;  %v2706_v34 = vld [vmem:[#allocation4 + $0x8] sm:$0xff] }
 0x33d   : > { %v2610_v47 = vmax.f32 %v2551_v35, 0.0  ;;  %2738 = vst.msk [vmem:[#allocation5 + $0x8] sm:$0xff] %vm613_vm1, %v2706_v34 }
 0x33e   : > { %2837 = vrot.lane.b32.xlu2 %v5198_v52, %s4150_s22 }
 0x33f   : > { %2691 = vst.msk [vmem:[#allocation4 + $0xd0] sm:$0xff] %vm613_vm1, %v2610_v47  ;;  %3028 = vrot.lane.b32.xlu1 %v5400_v26, %s6252_s27  ;;  %2835 = vrot.lane.b32.xlu0 %v5149_v54, %s4150_s22  ;;  %v3186_v47 = vld [vmem:[%s6231_s5] sm:$0xff] }
 0x340   : > { %v2263_v39 = vpop.permute.xlu2 %2262 }
 0x341   : > { %v1681_v37 = vpop.permute.xlu1 %1680 }
 0x342   : > { %v1488_v53 = vpop.permute.xlu0 %1487 }
 0x343   : > { %1558 = vst.msk [vmem:[#allocation3 + $0xd0] sm:$0xff] %vm1531_vm6, %v1488_v53  ;;  %v2362_v15 = vld [vmem:[#allocation3 + $0xc8] sm:$0xff] }
 0x344   : > { %1751 = vst.msk [vmem:[#allocation3 + $0xd0] sm:$0xff] %vm1724_vm7, %v1681_v37  ;;  %3919 = vmatmul.msk.f32.gmra.mxu1 %vm2382_vm11, %v2362_v15  ;;  %v2708_v37 = vld [vmem:[#allocation4 + $0x18] sm:$0xff] }
 0x345   : > { %1945 = vst.msk [vmem:[#allocation3 + $0xd0] sm:$0xff] %vm1918_vm8, %v1875_v7 }
 0x346   : > { %v5662_v41 = vld [vmem:[#allocation4 + $0xd0] sm:$0xff]  ;;  %3032 = vrot.lane.b32.xlu2 %v5453_v12, %s6252_s27  ;;  %2740 = vst.msk [vmem:[#allocation5 + $0x18] sm:$0xff] %vm613_vm1, %v2708_v37 }
 0x347   : > { %2839 = vrot.lane.b32.xlu1 %v5235_v21, %s4150_s22  ;;  %2763 = vst.msk [vmem:[#allocation5 + $0xd0] sm:$0xff] %vm613_vm1, %v5662_v41  ;;  %3030 = vrot.lane.b32.xlu0 %v5428_v20, %s6252_s27 }
 0x348   : > { %v1492_v54 = vpop.permute.xlu2 %1491 }
 0x349   : > { %v2261_v52 = vpop.permute.xlu1 %2260 }
 0x34a   : > { %v2068_v55 = vpop.permute.xlu0 %2067 }
 0x34b   : > { %2138 = vst.msk [vmem:[#allocation3 + $0xd0] sm:$0xff] %vm2111_vm9, %v2068_v55 }
 0x34c   : > { %2331 = vst.msk [vmem:[#allocation3 + $0xd0] sm:$0xff] %vm2304_vm10, %v2261_v52 }
 0x34e   : > { %2843 = vrot.lane.b32.xlu2 %v5299_v11, %s4150_s22 }
 0x34f   : > { %3034 = vrot.lane.b32.xlu1 %v5486_v44, %s6252_s27  ;;  %2841 = vrot.lane.b32.xlu0 %v5269_v40, %s4150_s22 }
 0x350   : > { %v2072_v21 = vpop.permute.xlu2 %2071 }
 0x351   : > { %v2553_v22 = vpop.f32.mrf.mxu1  ;;  %v1490_v19 = vpop.permute.xlu1 %1489 }
 0x352   : > { %v2554_v43 = vadd.f32 %v5531_v33, %v2553_v22  ;;  %v1297_v45 = vpop.permute.xlu0 %1296 }
 0x353   : > { %1366 = vst.msk [vmem:[#allocation3 + $0xd8] sm:$0xff] %vm1338_vm5, %v1297_v45  ;;  %v2363_v4 = vld [vmem:[#allocation3 + $0xd0] sm:$0xff] }
 0x354   : > { %v2611_v25 = vmax.f32 %v2554_v43, 0.0  ;;  %1559 = vst.msk [vmem:[#allocation3 + $0xd8] sm:$0xff] %vm1531_vm6, %v1490_v19  ;;  %3920 = vmatmul.msk.f32.gmra.mxu1 %vm2382_vm11, %v2363_v4  ;;  %v2709_v4 = vld [vmem:[#allocation4 + $0x20] sm:$0xff] }
 0x355   : > { %1752 = vst.msk [vmem:[#allocation3 + $0xd8] sm:$0xff] %vm1724_vm7, %v1683_v10  ;;  %v3187_v10 = vld [vmem:[%s6231_s5 + $0x8] sm:$0xff] }
 0x356   : > { %2692 = vst.msk [vmem:[#allocation4 + $0xd8] sm:$0xff] %vm613_vm1, %v2611_v25  ;;  %3038 = vrot.lane.b32.xlu2 %v5547_v31, %s6252_s27 }
 0x357   : > { %2845 = vrot.lane.b32.xlu1 %v5322_v46, %s4150_s22  ;;  %3036 = vrot.lane.b32.xlu0 %v5519_v3, %s6252_s27  ;;  %2741 = vst.msk [vmem:[#allocation5 + $0x20] sm:$0xff] %vm613_vm1, %v2709_v4 }
 0x358   : > { %v1301_v40 = vpop.permute.xlu2 %1300 }
 0x359   : > { %v2070_v11 = vpop.permute.xlu1 %2069 }
 0x35a   : > { %v1877_v57 = vpop.permute.xlu0 %1876 }
 0x35b   : > { %1946 = vst.msk [vmem:[#allocation3 + $0xd8] sm:$0xff] %vm1918_vm8, %v1877_v57 }
 0x35c   : > { %2139 = vst.msk [vmem:[#allocation3 + $0xd8] sm:$0xff] %vm2111_vm9, %v2070_v11 }
 0x35d   : > { %2332 = vst.msk [vmem:[#allocation3 + $0xd8] sm:$0xff] %vm2304_vm10, %v2263_v39  ;;  %v5695_v58 = vld [vmem:[#allocation4 + $0xd8] sm:$0xff] }
 0x35e   : > { %2849 = vrot.lane.b32.xlu2 %v5375_v1, %s4150_s22  ;;  %2764 = vst.msk [vmem:[#allocation5 + $0xd8] sm:$0xff] %vm613_vm1, %v5695_v58 }
 0x35f   : > { %3040 = vrot.lane.b32.xlu1 %v5585_v51, %s6252_s27  ;;  %2847 = vrot.lane.b32.xlu0 %v5341_v56, %s4150_s22 }
 0x360   : > { %v1881_v48 = vpop.permute.xlu2 %1880 }
 0x361   : > { %v2556_v46 = vpop.f32.mrf.mxu1  ;;  %v1299_v63 = vpop.permute.xlu1 %1298 }
 0x362   : > { %v2557_v60 = vadd.f32 %v5531_v33, %v2556_v46  ;;  %v1106_v36 = vpop.permute.xlu0 %1105 }
 0x363   : > { %1174 = vst.msk [vmem:[#allocation3 + $0xe0] sm:$0xff] %vm1145_vm4, %v1106_v36 }
 0x364   : > { %v2612_v62 = vmax.f32 %v2557_v60, 0.0  ;;  %1367 = vst.msk [vmem:[#allocation3 + $0xe0] sm:$0xff] %vm1338_vm5, %v1299_v63  ;;  %v2364_v32 = vld [vmem:[#allocation3 + $0xd8] sm:$0xff] }
 0x365   : > { %3921 = vmatmul.msk.f32.gmra.mxu1 %vm2382_vm11, %v2364_v32  ;;  %1560 = vst.msk [vmem:[#allocation3 + $0xe0] sm:$0xff] %vm1531_vm6, %v1492_v54 }
 0x366   : > { %2693 = vst.msk [vmem:[#allocation4 + $0xe0] sm:$0xff] %vm613_vm1, %v2612_v62  ;;  %3044 = vrot.lane.b32.xlu2 %v5637_v0, %s6252_s27 }
 0x367   : > { %2851 = vrot.lane.b32.xlu1 %v5400_v26, %s4150_s22  ;;  %3042 = vrot.lane.b32.xlu0 %v5618_v13, %s6252_s27 }
 0x368   : > { %v1110_v56 = vpop.permute.xlu2 %1109 }
 0x369   : > { %1176 = vst.msk [vmem:[#allocation3 + $0xf0] sm:$0xff] %vm1145_vm4, %v1110_v56  ;;  %v1879_v1 = vpop.permute.xlu1 %1878 }
 0x36a   : > { %v1685_v49 = vpop.permute.xlu0 %1684 }
 0x36b   : > { %1753 = vst.msk [vmem:[#allocation3 + $0xe0] sm:$0xff] %vm1724_vm7, %v1685_v49 }
 0x36c   : > { %1947 = vst.msk [vmem:[#allocation3 + $0xe0] sm:$0xff] %vm1918_vm8, %v1879_v1  ;;  %v2712_v1 = vld [vmem:[#allocation4 + $0x38] sm:$0xff] }
 0x36d   : > { %v5720_v2 = vld [vmem:[#allocation4 + $0xe0] sm:$0xff]  ;;  %2140 = vst.msk [vmem:[#allocation3 + $0xe0] sm:$0xff] %vm2111_vm9, %v2072_v21 }
 0x36e   : > { %2855 = vrot.lane.b32.xlu2 %v5453_v12, %s4150_s22  ;;  %2765 = vst.msk [vmem:[#allocation5 + $0xe0] sm:$0xff] %vm613_vm1, %v5720_v2 }
 0x36f   : > { %3046 = vrot.lane.b32.xlu1 %v5662_v41, %s6252_s27  ;;  %2853 = vrot.lane.b32.xlu0 %v5428_v20, %s4150_s22  ;;  %2744 = vst.msk [vmem:[#allocation5 + $0x38] sm:$0xff] %vm613_vm1, %v2712_v1 }
 0x370   : > { %v1689_v26 = vpop.permute.xlu2 %1688 }
 0x371   : > { %v1108_v50 = vpop.permute.xlu1 %1107 }
 0x372   : > { %v2559_v30 = vpop.f32.mrf.mxu1  ;;  %1175 = vst.msk [vmem:[#allocation3 + $0xe8] sm:$0xff] %vm1145_vm4, %v1108_v50  ;;  %v2265_v61 = vpop.permute.xlu0 %2264 }
 0x373   : > { %v2560_v6 = vadd.f32 %v5531_v33, %v2559_v30  ;;  %1368 = vst.msk [vmem:[#allocation3 + $0xe8] sm:$0xff] %vm1338_vm5, %v1301_v40  ;;  %v2711_v40 = vld [vmem:[#allocation4 + $0x30] sm:$0xff] }
 0x374   : > { %2333 = vst.msk [vmem:[#allocation3 + $0xe0] sm:$0xff] %vm2304_vm10, %v2265_v61 }
 0x375   : > { %v2613_v5 = vmax.f32 %v2560_v6, 0.0  ;;  %2743 = vst.msk [vmem:[#allocation5 + $0x30] sm:$0xff] %vm613_vm1, %v2711_v40 }
 0x376   : > { %3050 = vrot.lane.b32.xlu2 %v5720_v2, %s6252_s27 }
 0x377   : > { %2694 = vst.msk [vmem:[#allocation4 + $0xe8] sm:$0xff] %vm613_vm1, %v2613_v5  ;;  %2857 = vrot.lane.b32.xlu1 %v5486_v44, %s4150_s22  ;;  %3048 = vrot.lane.b32.xlu0 %v5695_v58, %s6252_s27 }
 0x378   : > { %v2269_v20 = vpop.permute.xlu2 %2268 }
 0x379   : > { %v1687_v12 = vpop.permute.xlu1 %1686 }
 0x37a   : > { %v1494_v14 = vpop.permute.xlu0 %1493 }
 0x37b   : > { %1561 = vst.msk [vmem:[#allocation3 + $0xe8] sm:$0xff] %vm1531_vm6, %v1494_v14  ;;  %v2365_v7 = vld [vmem:[#allocation3 + $0xe0] sm:$0xff] }
 0x37c   : > { %1754 = vst.msk [vmem:[#allocation3 + $0xe8] sm:$0xff] %vm1724_vm7, %v1687_v12  ;;  %3922 = vmatmul.msk.f32.gmra.mxu1 %vm2382_vm11, %v2365_v7 }
 0x37d   : > { %1948 = vst.msk [vmem:[#allocation3 + $0xe8] sm:$0xff] %vm1918_vm8, %v1881_v48 }
 0x37e   : > { %v5746_v44 = vld [vmem:[#allocation4 + $0xe8] sm:$0xff]  ;;  %2861 = vrot.lane.b32.xlu2 %v5547_v31, %s4150_s22 }
 0x37f   : > { %3052 = vrot.lane.b32.xlu1 %v5746_v44, %s6252_s27  ;;  %2859 = vrot.lane.b32.xlu0 %v5519_v3, %s4150_s22  ;;  %2766 = vst.msk [vmem:[#allocation5 + $0xe8] sm:$0xff] %vm613_vm1, %v5746_v44 }
 0x380   : > { %v1498_v18 = vpop.permute.xlu2 %1497 }
 0x381   : > { %v2267_v59 = vpop.permute.xlu1 %2266 }
 0x382   : > { %v2074_v24 = vpop.permute.xlu0 %2073 }
 0x383   : > { %2141 = vst.msk [vmem:[#allocation3 + $0xe8] sm:$0xff] %vm2111_vm9, %v2074_v24 }
 0x384   : > { %2334 = vst.msk [vmem:[#allocation3 + $0xe8] sm:$0xff] %vm2304_vm10, %v2267_v59 }
 0x387   : > { %2863 = vrot.lane.b32.xlu1 %v5585_v51, %s4150_s22  ;;  %v3188_v51 = vld [vmem:[%s6231_s5 + $0x10] sm:$0xff] }
 0x388   : > { %v2078_v31 = vpop.permute.xlu2 %2077  ;;  %3303 = vmatpush.msra.mxu2 %v3188_v51 }
 0x389   : > { %v2562_v27 = vpop.f32.mrf.mxu1  ;;  %v1496_v9 = vpop.permute.xlu1 %1495 }
 0x38a   : > { %v2563_v3 = vadd.f32 %v5531_v33, %v2562_v27  ;;  %v1303_v17 = vpop.permute.xlu0 %1302  ;;  %3304 = vmatpush.msra.mxu2 %v3187_v10 }
 0x38b   : > { %1369 = vst.msk [vmem:[#allocation3 + $0xf0] sm:$0xff] %vm1338_vm5, %v1303_v17  ;;  %v2366_v42 = vld [vmem:[#allocation3 + $0xe8] sm:$0xff] }
 0x38c   : > { %v2614_v29 = vmax.f32 %v2563_v3, 0.0  ;;  %1562 = vst.msk [vmem:[#allocation3 + $0xf0] sm:$0xff] %vm1531_vm6, %v1496_v9  ;;  %3923 = vmatmul.msk.f32.gmra.mxu1 %vm2382_vm11, %v2366_v42  ;;  %3305 = vmatpush.msra.mxu2 %v3186_v47 }
 0x38d   : > { %1755 = vst.msk [vmem:[#allocation3 + $0xf0] sm:$0xff] %vm1724_vm7, %v1689_v26 }
 0x38e   : > { %2695 = vst.msk [vmem:[#allocation4 + $0xf0] sm:$0xff] %vm613_vm1, %v2614_v29 }
 0x390   : > { %v3027_v38 = vpop.permute.xlu2 %3026 }
 0x391   : > { %v2076_v28 = vpop.permute.xlu1 %2075 }
 0x392   : > { %v1883_v35 = vpop.permute.xlu0 %1882 }
 0x393   : > { %1949 = vst.msk [vmem:[#allocation3 + $0xf0] sm:$0xff] %vm1918_vm8, %v1883_v35 }
 0x394   : > { %2142 = vst.msk [vmem:[#allocation3 + $0xf0] sm:$0xff] %vm2111_vm9, %v2076_v28 }
 0x395   : > { %2335 = vst.msk [vmem:[#allocation3 + $0xf0] sm:$0xff] %vm2304_vm10, %v2269_v20  ;;  %v5782_v39 = vld [vmem:[#allocation4 + $0xf0] sm:$0xff] }
 0x396   : > { %3054 = vrot.lane.b32.xlu0 %v5782_v39, %s6252_s27  ;;  %2767 = vst.msk [vmem:[#allocation5 + $0xf0] sm:$0xff] %vm613_vm1, %v5782_v39 }
 0x398   : > { %v2838_v15 = vpop.permute.xlu2 %2837 }
 0x399   : > { %v2565_v53 = vpop.f32.mrf.mxu1  ;;  %v1305_v52 = vpop.permute.xlu1 %1304  ;;  %2931 = vst.msk [vmem:[#allocation5 + $0x10] sm:$0xff] %vm952_vm3, %v2838_v15 }
 0x39a   : > { %v2566_v54 = vadd.f32 %v5531_v33, %v2565_v53  ;;  %v1112_v55 = vpop.permute.xlu0 %1111 }
 0x39b   : > { %1177 = vst.msk [vmem:[#allocation3 + $0xf8] sm:$0xff] %vm1145_vm4, %v1112_v55 }
 0x39c   : > { %v2615_v21 = vmax.f32 %v2566_v54, 0.0  ;;  %1370 = vst.msk [vmem:[#allocation3 + $0xf8] sm:$0xff] %vm1338_vm5, %v1305_v52  ;;  %v2367_v22 = vld [vmem:[#allocation3 + $0xf0] sm:$0xff] }
 0x39d   : > { %3924 = vmatmul.msk.f32.gmra.mxu1 %vm2382_vm11, %v2367_v22  ;;  %1563 = vst.msk [vmem:[#allocation3 + $0xf8] sm:$0xff] %vm1531_vm6, %v1498_v18 }
 0x39e   : > { %2696 = vst.msk [vmem:[#allocation4 + $0xf8] sm:$0xff] %vm613_vm1, %v2615_v21  ;;  %2865 = vrot.lane.b32.xlu0 %v5618_v13, %s4150_s22 }
 0x3a0   : > { %v3033_v19 = vpop.permute.xlu2 %3032 }
 0x3a1   : > { %v1885_v43 = vpop.permute.xlu1 %1884 }
 0x3a2   : > { %v1691_v45 = vpop.permute.xlu0 %1690 }
 0x3a3   : > { %1756 = vst.msk [vmem:[#allocation3 + $0xf8] sm:$0xff] %vm1724_vm7, %v1691_v45 }
 0x3a4   : > { %1950 = vst.msk [vmem:[#allocation3 + $0xf8] sm:$0xff] %vm1918_vm8, %v1885_v43 }
 0x3a5   : > { %v5800_v25 = vld [vmem:[#allocation4 + $0xf8] sm:$0xff]  ;;  %2143 = vst.msk [vmem:[#allocation3 + $0xf8] sm:$0xff] %vm2111_vm9, %v2078_v31 }
 0x3a6   : > { %3056 = vrot.lane.b32.xlu2 %v5800_v25, %s6252_s27  ;;  %2768 = vst.msk [vmem:[#allocation5 + $0xf8] sm:$0xff] %vm613_vm1, %v5800_v25 }
 0x3a8   : > { %v2844_v13 = vpop.permute.xlu2 %2843 }
 0x3a9   : > { %v2834_v11 = vpop.permute.xlu1 %2833  ;;  %2934 = vst.msk [vmem:[#allocation5 + $0x28] sm:$0xff] %vm952_vm3, %v2844_v13 }
 0x3aa   : > { %2929 = vst.msk [vmem:[#allocation5] sm:$0xff] %vm952_vm3, %v2834_v11  ;;  %v2271_v57 = vpop.permute.xlu0 %2270  ;;  %v2568_v46 = vpop.f32.mrf.mxu1 }
 0x3ab   : > { %3122 = vst.msk [vmem:[#allocation5] sm:$0xff] %vm1145_vm4, %v3027_v38  ;;  %v2569_v48 = vadd.f32 %v5531_v33, %v2568_v46 }
 0x3ac   : > { %2336 = vst.msk [vmem:[#allocation3 + $0xf8] sm:$0xff] %vm2304_vm10, %v2271_v57 }
 0x3ad   : > { %v2616_v60 = vmax.f32 %v2569_v48, 0.0 }
 0x3ae   : > { %2867 = vrot.lane.b32.xlu2 %v5637_v0, %s4150_s22 }
 0x3af   : > { %2697 = vst.msk [vmem:[#allocation4 + $0x100] sm:$0xff] %vm613_vm1, %v2616_v60 }
 0x3b0   : > { %v3039_v63 = vpop.permute.xlu2 %3038 }
 0x3b1   : > { %v3029_v36 = vpop.permute.xlu1 %3028 }
 0x3b2   : > { %v2836_v62 = vpop.permute.xlu0 %2835  ;;  %v3154_v32 = vld [vmem:[#allocation5] sm:$0xff] }
 0x3b3   : > { %2930 = vst.msk [vmem:[#allocation5 + $0x8] sm:$0xff] %vm952_vm3, %v2836_v62  ;;  %v2368_v56 = vld [vmem:[#allocation3 + $0xf8] sm:$0xff]  ;;  %3926 = vmatmul.msk.f32.vlgmr.msra.gmra.mxu2 %vm3193_vm12, %v3154_v32 }
 0x3b4   : > { %3123 = vst.msk [vmem:[#allocation5 + $0x8] sm:$0xff] %vm1145_vm4, %v3029_v36  ;;  %3925 = vmatmul.msk.f32.gmra.mxu1 %vm2382_vm11, %v2368_v56  ;;  %v3435_v56 = vld [vmem:[%s6233_s7] sm:$0xff] }
 0x3b5   : > { %3551 = vmatpush.msra.mxu3 %v3435_v56 }
 0x3b6   : > { %v5822_v0 = vld [vmem:[#allocation4 + $0x100] sm:$0xff] }
 0x3b7   : > { %3058 = vrot.lane.b32.xlu1 %v5822_v0, %s6252_s27 }
 0x3b8   : > { %v2850_v49 = vpop.permute.xlu2 %2849 }
 0x3b9   : > { %v2840_v26 = vpop.permute.xlu1 %2839  ;;  %2937 = vst.msk [vmem:[#allocation5 + $0x40] sm:$0xff] %vm952_vm3, %v2850_v49 }
 0x3ba   : > { %2932 = vst.msk [vmem:[#allocation5 + $0x18] sm:$0xff] %vm952_vm3, %v2840_v26  ;;  %v3031_v50 = vpop.permute.xlu0 %3030 }
 0x3bb   : > { %3125 = vst.msk [vmem:[#allocation5 + $0x18] sm:$0xff] %vm1145_vm4, %v3033_v19  ;;  %v3155_v30 = vld [vmem:[#allocation5 + $0x8] sm:$0xff] }
 0x3bc   : > { %3124 = vst.msk [vmem:[#allocation5 + $0x10] sm:$0xff] %vm1145_vm4, %v3031_v50  ;;  %3927 = vmatmul.msk.f32.gmra.mxu2 %vm3193_vm12, %v3155_v30  ;;  %v2986_v30 = vld [vmem:[#allocation4 + $0x140] sm:$0xff] }
 0x3bf   : > { %2869 = vrot.lane.b32.xlu1 %v5662_v41, %s4150_s22 }
 0x3c0   : > { %v3045_v61 = vpop.permute.xlu2 %3044 }
 0x3c1   : > { %v2571_v6 = vpop.f32.mrf.mxu1  ;;  %v3035_v5 = vpop.permute.xlu1 %3034 }
 0x3c2   : > { %v2572_v20 = vadd.f32 %v5531_v33, %v2571_v6  ;;  %v2842_v12 = vpop.permute.xlu0 %2841  ;;  %v3157_v59 = vld [vmem:[#allocation5 + $0x18] sm:$0xff] }
 0x3c3   : > { %2933 = vst.msk [vmem:[#allocation5 + $0x20] sm:$0xff] %vm952_vm3, %v2842_v12  ;;  %v3156_v14 = vld [vmem:[#allocation5 + $0x10] sm:$0xff] }
 0x3c4   : > { %v2617_v7 = vmax.f32 %v2572_v20, 0.0  ;;  %3126 = vst.msk [vmem:[#allocation5 + $0x20] sm:$0xff] %vm1145_vm4, %v3035_v5  ;;  %3928 = vmatmul.msk.f32.gmra.mxu2 %vm3193_vm12, %v3156_v14 }
 0x3c6   : > { %2698 = vst.msk [vmem:[#allocation4 + $0x108] sm:$0xff] %vm613_vm1, %v2617_v7  ;;  %v2989_v7 = vld [vmem:[#allocation4 + $0x158] sm:$0xff] }
 0x3c8   : > { %v2856_v23 = vpop.permute.xlu2 %2855 }
 0x3c9   : > { %v2846_v18 = vpop.permute.xlu1 %2845  ;;  %2940 = vst.msk [vmem:[#allocation5 + $0x58] sm:$0xff] %vm952_vm3, %v2856_v23  ;;  %v5925_v23 = vld [vmem:[%s6232_s6] ss:$0 sm:$0xff] }
 0x3ca   : > { %2935 = vst.msk [vmem:[#allocation5 + $0x30] sm:$0xff] %vm952_vm3, %v2846_v18  ;;  %v3037_v41 = vpop.permute.xlu0 %3036 }
 0x3cb   : > { %3128 = vst.msk [vmem:[#allocation5 + $0x30] sm:$0xff] %vm1145_vm4, %v3039_v63  ;;  %v3158_v17 = vld [vmem:[#allocation5 + $0x20] sm:$0xff] }
 0x3cc   : > { %3127 = vst.msk [vmem:[#allocation5 + $0x28] sm:$0xff] %vm1145_vm4, %v3037_v41  ;;  %3929 = vmatmul.msk.f32.gmra.mxu2 %vm3193_vm12, %v3157_v59  ;;  %v2987_v41 = vld [vmem:[#allocation4 + $0x148] sm:$0xff] }
 0x3cd   : > { %v5843_v24 = vld [vmem:[#allocation4 + $0x108] sm:$0xff] }
 0x3ce   : > { %3060 = vrot.lane.b32.xlu0 %v5843_v24, %s6252_s27 }
 0x3d0   : > { %v3051_v16 = vpop.permute.xlu2 %3050 }
 0x3d1   : > { %v2574_v31 = vpop.f32.mrf.mxu1  ;;  %v3041_v27 = vpop.permute.xlu1 %3040 }
 0x3d2   : > { %v2575_v9 = vadd.f32 %v5531_v33, %v2574_v31  ;;  %v2848_v3 = vpop.permute.xlu0 %2847  ;;  %v3160_v47 = vld [vmem:[#allocation5 + $0x30] sm:$0xff] }
 0x3d3   : > { %2936 = vst.msk [vmem:[#allocation5 + $0x38] sm:$0xff] %vm952_vm3, %v2848_v3  ;;  %v3159_v10 = vld [vmem:[#allocation5 + $0x28] sm:$0xff] }
 0x3d4   : > { %v2618_v42 = vmax.f32 %v2575_v9, 0.0  ;;  %3129 = vst.msk [vmem:[#allocation5 + $0x38] sm:$0xff] %vm1145_vm4, %v3041_v27  ;;  %3930 = vmatmul.msk.f32.gmra.mxu2 %vm3193_vm12, %v3158_v17 }
 0x3d6   : > { %2699 = vst.msk [vmem:[#allocation4 + $0x110] sm:$0xff] %vm613_vm1, %v2618_v42  ;;  %2871 = vrot.lane.b32.xlu0 %v5695_v58, %s4150_s22 }
 0x3d8   : > { %v2862_v29 = vpop.permute.xlu2 %2861 }
 0x3d9   : > { %v2852_v8 = vpop.permute.xlu1 %2851  ;;  %2943 = vst.msk [vmem:[#allocation5 + $0x70] sm:$0xff] %vm952_vm3, %v2862_v29  ;;  %v2990_v29 = vld [vmem:[#allocation4 + $0x160] sm:$0xff] }
 0x3da   : > { %2938 = vst.msk [vmem:[#allocation5 + $0x48] sm:$0xff] %vm952_vm3, %v2852_v8  ;;  %v3043_v51 = vpop.permute.xlu0 %3042 }
 0x3db   : > { %3131 = vst.msk [vmem:[#allocation5 + $0x48] sm:$0xff] %vm1145_vm4, %v3045_v61  ;;  %v3161_v54 = vld [vmem:[#allocation5 + $0x38] sm:$0xff] }
 0x3dc   : > { %3130 = vst.msk [vmem:[#allocation5 + $0x40] sm:$0xff] %vm1145_vm4, %v3043_v51  ;;  %3931 = vmatmul.msk.f32.gmra.mxu2 %vm3193_vm12, %v3159_v10 }
 0x3dd   : > { %v5859_v38 = vld [vmem:[#allocation4 + $0x110] sm:$0xff] }
 0x3de   : > { %3062 = vrot.lane.b32.xlu2 %v5859_v38, %s6252_s27 }
 0x3e1   : > { %v3047_v58 = vpop.permute.xlu1 %3046 }
 0x3e2   : > { %v2577_v28 = vpop.f32.mrf.mxu1  ;;  %v2854_v34 = vpop.permute.xlu0 %2853  ;;  %v3163_v45 = vld [vmem:[#allocation5 + $0x48] sm:$0xff] }
 0x3e3   : > { %v2578_v35 = vadd.f32 %v5531_v33, %v2577_v28  ;;  %2939 = vst.msk [vmem:[#allocation5 + $0x50] sm:$0xff] %vm952_vm3, %v2854_v34  ;;  %v3162_v21 = vld [vmem:[#allocation5 + $0x40] sm:$0xff]  ;;  %v2988_v28 = vld [vmem:[#allocation4 + $0x150] sm:$0xff] }
 0x3e4   : > { %3132 = vst.msk [vmem:[#allocation5 + $0x50] sm:$0xff] %vm1145_vm4, %v3047_v58  ;;  %3932 = vmatmul.msk.f32.gmra.mxu2 %vm3193_vm12, %v3160_v47 }
 0x3e5   : > { %v2619_v37 = vmax.f32 %v2578_v35, 0.0 }
 0x3e6   : > { %2873 = vrot.lane.b32.xlu2 %v5720_v2, %s4150_s22 }
 0x3e7   : > { %2700 = vst.msk [vmem:[#allocation4 + $0x118] sm:$0xff] %vm613_vm1, %v2619_v37 }
 0x3e9   : > { %v2858_v53 = vpop.permute.xlu1 %2857 }
 0x3ea   : > { %2941 = vst.msk [vmem:[#allocation5 + $0x60] sm:$0xff] %vm952_vm3, %v2858_v53  ;;  %v3049_v15 = vpop.permute.xlu0 %3048 }
 0x3eb   : > { %3134 = vst.msk [vmem:[#allocation5 + $0x60] sm:$0xff] %vm1145_vm4, %v3051_v16  ;;  %v3164_v13 = vld [vmem:[#allocation5 + $0x50] sm:$0xff] }
 0x3ec   : > { %3133 = vst.msk [vmem:[#allocation5 + $0x58] sm:$0xff] %vm1145_vm4, %v3049_v15  ;;  %3933 = vmatmul.msk.f32.gmra.mxu2 %vm3193_vm12, %v3161_v54  ;;  %v2991_v54 = vld [vmem:[#allocation4 + $0x168] sm:$0xff] }
 0x3ee   : > { %v5874_v52 = vld [vmem:[#allocation4 + $0x118] sm:$0xff] }
 0x3ef   : > { %3064 = vrot.lane.b32.xlu1 %v5874_v52, %s6252_s27 }
 0x3f1   : > { %v3053_v55 = vpop.permute.xlu1 %3052 }
 0x3f2   : > { %v2860_v2 = vpop.permute.xlu0 %2859  ;;  %v3166_v62 = vld [vmem:[#allocation5 + $0x60] sm:$0xff] }
 0x3f3   : > { %2942 = vst.msk [vmem:[#allocation5 + $0x68] sm:$0xff] %vm952_vm3, %v2860_v2  ;;  %v3165_v60 = vld [vmem:[#allocation5 + $0x58] sm:$0xff] }
 0x3f4   : > { %3135 = vst.msk [vmem:[#allocation5 + $0x68] sm:$0xff] %vm1145_vm4, %v3053_v55  ;;  %3934 = vmatmul.msk.f32.gmra.mxu2 %vm3193_vm12, %v3162_v21 }
 0x3f7   : > { %2875 = vrot.lane.b32.xlu1 %v5746_v44, %s4150_s22 }
 0x3f9   : > { %v2580_v22 = vpop.f32.mrf.mxu1  ;;  %v2864_v19 = vpop.permute.xlu1 %2863 }
 0x3fa   : > { %v2581_v43 = vadd.f32 %v5531_v33, %v2580_v22  ;;  %2944 = vst.msk [vmem:[#allocation5 + $0x78] sm:$0xff] %vm952_vm3, %v2864_v19 }
 0x3fb   : > { %v3167_v26 = vld [vmem:[#allocation5 + $0x68] sm:$0xff] }
 0x3fc   : > { %v2620_v4 = vmax.f32 %v2581_v43, 0.0  ;;  %3935 = vmatmul.msk.f32.gmra.mxu2 %vm3193_vm12, %v3163_v45 }
 0x3fe   : > { %2701 = vst.msk [vmem:[#allocation4 + $0x120] sm:$0xff] %vm613_vm1, %v2620_v4 }
 0x400   : > { %v3057_v40 = vpop.permute.xlu2 %3056 }
 0x401   : > { %3137 = vst.msk [vmem:[#allocation5 + $0x78] sm:$0xff] %vm1145_vm4, %v3057_v40 }
 0x404   : > { %3936 = vmatmul.msk.f32.gmra.mxu2 %vm3193_vm12, %v3164_v13  ;;  %v2992_v13 = vld [vmem:[#allocation4 + $0x170] sm:$0xff] }
 0x405   : > { %v5889_v11 = vld [vmem:[#allocation4 + $0x120] sm:$0xff] }
 0x406   : > { %3066 = vrot.lane.b32.xlu0 %v5889_v11, %s6252_s27 }
 0x408   : > { %v2868_v44 = vpop.permute.xlu2 %2867  ;;  %v3055_v57 = vpop.permute.xlu0 %3054  ;;  %v3169_v5 = vld [vmem:[#allocation5 + $0x78] sm:$0xff] }
 0x409   : > { %2946 = vst.msk [vmem:[#allocation5 + $0x88] sm:$0xff] %vm952_vm3, %v2868_v44  ;;  %v2583_v46 = vpop.f32.mrf.mxu1 }
 0x40a   : > { %3136 = vst.msk [vmem:[#allocation5 + $0x70] sm:$0xff] %vm1145_vm4, %v3055_v57  ;;  %v2584_v48 = vadd.f32 %v5531_v33, %v2583_v46 }
 0x40c   : > { %v2621_v63 = vmax.f32 %v2584_v48, 0.0  ;;  %3937 = vmatmul.msk.f32.gmra.mxu2 %vm3193_vm12, %v3165_v60 }
 0x40e   : > { %2702 = vst.msk [vmem:[#allocation4 + $0x128] sm:$0xff] %vm613_vm1, %v2621_v63  ;;  %2877 = vrot.lane.b32.xlu0 %v5782_v39, %s4150_s22 }
 0x410   : > { %v2866_v36 = vpop.permute.xlu0 %2865 }
 0x411   : > { %2945 = vst.msk [vmem:[#allocation5 + $0x80] sm:$0xff] %vm952_vm3, %v2866_v36  ;;  %v3168_v50 = vld [vmem:[#allocation5 + $0x70] sm:$0xff] }
 0x414   : > { %3938 = vmatmul.msk.f32.gmra.mxu2 %vm3193_vm12, %v3166_v62 }
 0x415   : > { %v2983_v32 = vld [vmem:[#allocation4 + $0x128] sm:$0xff] }
 0x416   : > { %3068 = vrot.lane.b32.xlu2 %v2983_v32, %s6252_s27 }
 0x41a   : > { %v2586_v1 = vpop.f32.mrf.mxu1 }
 0x41b   : > { %v2587_v49 = vadd.f32 %v5531_v33, %v2586_v1 }
 0x41c   : > { %3939 = vmatmul.msk.f32.gmra.mxu2 %vm3193_vm12, %v3167_v26 }
 0x41d   : > { %v2622_v39 = vmax.f32 %v2587_v49, 0.0 }
 0x41e   : > { %2879 = vrot.lane.b32.xlu2 %v5800_v25, %s4150_s22 }
 0x41f   : > { %2703 = vst.msk [vmem:[#allocation4 + $0x130] sm:$0xff] %vm613_vm1, %v2622_v39 }
 0x424   : > { %3940 = vmatmul.msk.f32.gmra.mxu2 %vm3193_vm12, %v3168_v50 }
 0x426   : > { %3074 = vrot.lane.b32.xlu2 %v2986_v30, %s6252_s27  ;;  %v2984_v61 = vld [vmem:[#allocation4 + $0x130] sm:$0xff] }
 0x427   : > { %3070 = vrot.lane.b32.xlu1 %v2984_v61, %s6252_s27 }
 0x429   : > { %v3059_v6 = vpop.permute.xlu1 %3058 }
 0x42a   : > { %3138 = vst.msk [vmem:[#allocation5 + $0x80] sm:$0xff] %vm1145_vm4, %v3059_v6 }
 0x42c   : > { %3941 = vmatmul.msk.f32.gmra.mxu2 %vm3193_vm12, %v3169_v5 }
 0x42e   : > { %2885 = vrot.lane.b32.xlu2 %v5859_v38, %s4150_s22 }
 0x42f   : > { %2881 = vrot.lane.b32.xlu1 %v5822_v0, %s4150_s22 }
 0x431   : > { %v2589_v25 = vpop.f32.mrf.mxu1  ;;  %v2870_v20 = vpop.permute.xlu1 %2869  ;;  %v3170_v14 = vld [vmem:[#allocation5 + $0x80] sm:$0xff] }
 0x432   : > { %v2590_v12 = vadd.f32 %v5531_v33, %v2589_v25  ;;  %2947 = vst.msk [vmem:[#allocation5 + $0x90] sm:$0xff] %vm952_vm3, %v2870_v20 }
 0x434   : > { %v2623_v18 = vmax.f32 %v2590_v12, 0.0  ;;  %3942 = vmatmul.msk.f32.gmra.mxu2 %vm3193_vm12, %v3170_v14 }
 0x436   : > { %2704 = vst.msk [vmem:[#allocation4 + $0x138] sm:$0xff] %vm613_vm1, %v2623_v18  ;;  %3080 = vrot.lane.b32.xlu2 %v2989_v7, %s6252_s27  ;;  %v3307_v0 = vpop.f32.mrf.mxu2 }
 0x437   : > { %v3308_v33 = vadd.f32 %v5925_v23, %v3307_v0  ;;  %3076 = vrot.lane.b32.xlu1 %v2987_v41, %s6252_s27 }
 0x438   : > { %v3063_v59 = vpop.permute.xlu2 %3062 }
 0x439   : > { %v3403_v16 = vmax.f32 %v3308_v33, 0.0  ;;  %3140 = vst.msk [vmem:[#allocation5 + $0x90] sm:$0xff] %vm1145_vm4, %v3063_v59 }
 0x43b   : > { %3958 = vmatmul.msk.f32.vlgmr.msra.gmra.mxu3 %vm613_vm1, %v3403_v16 }
 0x43d   : > { %v2985_v31 = vld [vmem:[#allocation4 + $0x138] sm:$0xff] }
 0x43e   : > { %3072 = vrot.lane.b32.xlu0 %v2985_v31, %s6252_s27  ;;  %2891 = vrot.lane.b32.xlu2 %v2983_v32, %s4150_s22 }
 0x43f   : > { %2887 = vrot.lane.b32.xlu1 %v5874_v52, %s4150_s22  ;;  %v3310_v27 = vpop.f32.mrf.mxu2  ;;  %v2993_v52 = vld [vmem:[#allocation4 + $0x178] sm:$0xff] }
 0x440   : > { %v3311_v9 = vadd.f32 %v5925_v23, %v3310_v27  ;;  %v3061_v3 = vpop.permute.xlu0 %3060  ;;  %v2874_v17 = vpop.permute.xlu2 %2873  ;;  %v3172_v35 = vld [vmem:[#allocation5 + $0x90] sm:$0xff] }
 0x441   : > { %3139 = vst.msk [vmem:[#allocation5 + $0x88] sm:$0xff] %vm1145_vm4, %v3061_v3 }
 0x442   : > { %v3404_v42 = vmax.f32 %v3311_v9, 0.0  ;;  %2949 = vst.msk [vmem:[#allocation5 + $0xa0] sm:$0xff] %vm952_vm3, %v2874_v17 }
 0x444   : > { %3959 = vmatmul.msk.f32.gmra.mxu3 %vm613_vm1, %v3404_v42 }
 0x446   : > { %2883 = vrot.lane.b32.xlu0 %v5843_v24, %s4150_s22  ;;  %3086 = vrot.lane.b32.xlu2 %v2992_v13, %s6252_s27 }
 0x447   : > { %3082 = vrot.lane.b32.xlu1 %v2990_v29, %s6252_s27  ;;  %v3313_v8 = vpop.f32.mrf.mxu2 }
 0x448   : > { %v3314_v51 = vadd.f32 %v5925_v23, %v3313_v8  ;;  %v2872_v10 = vpop.permute.xlu0 %2871  ;;  %v3171_v38 = vld [vmem:[#allocation5 + $0x88] sm:$0xff] }
 0x449   : > { %2948 = vst.msk [vmem:[#allocation5 + $0x98] sm:$0xff] %vm952_vm3, %v2872_v10  ;;  %3943 = vmatmul.msk.f32.gmra.mxu2 %vm3193_vm12, %v3171_v38 }
 0x44a   : > { %v3405_v58 = vmax.f32 %v3314_v51, 0.0 }
 0x44c   : > { %3960 = vmatmul.msk.f32.gmra.mxu3 %vm613_vm1, %v3405_v58 }
 0x44e   : > { %3078 = vrot.lane.b32.xlu0 %v2988_v28, %s6252_s27 }
 0x44f   : > { %2893 = vrot.lane.b32.xlu1 %v2984_v61, %s4150_s22  ;;  %v3316_v24 = vpop.f32.mrf.mxu2 }
 0x450   : > { %v3317_v34 = vadd.f32 %v5925_v23, %v3316_v24 }
 0x451   : > { %3944 = vmatmul.msk.f32.gmra.mxu2 %vm3193_vm12, %v3172_v35 }
 0x452   : > { %v3406_v47 = vmax.f32 %v3317_v34, 0.0 }
 0x454   : > { %3961 = vmatmul.msk.f32.gmra.mxu3 %vm613_vm1, %v3406_v47 }
 0x456   : > { %2889 = vrot.lane.b32.xlu0 %v5889_v11, %s4150_s22 }
 0x457   : > { %v3319_v37 = vpop.f32.mrf.mxu2  ;;  %3088 = vrot.lane.b32.xlu1 %v2993_v52, %s6252_s27 }
 0x458   : > { %v3320_v53 = vadd.f32 %v5925_v23, %v3319_v37 }
 0x45a   : > { %v3407_v15 = vmax.f32 %v3320_v53, 0.0  ;;  %v6009_v53 = vld [vmem:[%s6234_s8] ss:$0 sm:$0xff] }
 0x45c   : > { %3962 = vmatmul.msk.f32.gmra.mxu3 %vm613_vm1, %v3407_v15 }
 0x45e   : > { %3084 = vrot.lane.b32.xlu0 %v2991_v54, %s6252_s27  ;;  %s3792_s27 = sshll.u32 %s3789_s14, 4  ;;  %s3793_s27 = int_to_ptr.hbm [resolvable:$true] %s3792_s27 }
 0x45f   : > { %v3322_v55 = vpop.f32.mrf.mxu2  ;;  %s4099_s16 = sshra.s32 %s3793_s27, 4  ;;  %s4100_s16 = int_to_ptr.hbm [resolvable:$true] %s4099_s16 }
 0x460   : > { %v3323_v2 = vadd.f32 %v5925_v23, %v3322_v55  ;;  %s4101_s28 = scalar_lea.hbm %s4100_s16, 256  ;;  %p4106_p0 = scmp.lt.s32.totalorder %s4100_s16, %s6235_s9 }
 0x461   : > { %v3065_v21 = vpop.permute.xlu1 %3064  ;;  %p4102_p11 = scmp.ne.s32.totalorder %s4100_s16, %s4101_s28  ;;  %p4107_p1 = scmp.lt.s32.totalorder %s4105_s26, %s4101_s28 }
 0x462   : > { %v3408_v22 = vmax.f32 %v3323_v2, 0.0  ;;  %3141 = vst.msk [vmem:[#allocation5 + $0x98] sm:$0xff] %vm1145_vm4, %v3065_v21 }
 0x463   : > { %p4103_p12 = pnand %p4102_p11, %p4247_p5  ;;  %p4108_p2 = por %p4107_p1, %p4106_p0 }
 0x464   : > { %3963 = vmatmul.msk.f32.gmra.mxu3 %vm613_vm1, %v3408_v22  ;;  %v4053_v22 = vld [vmem:[%s4274_s21] sm:$0xff] }
 0x465   : > { %p4104_p13 = pneg %p4103_p12 }
 0x466   : > { %2895 = vrot.lane.b32.xlu0 %v2985_v31, %s4150_s22 }
 0x467   : > { %v3325_v19 = vpop.f32.mrf.mxu2  ;;  %p4109_p3 = pnand %p4108_p2, %p4104_p13 }
 0x468   : > { %v3326_v43 = vadd.f32 %v5925_v23, %v3325_v19 }
 0x469   : > { %v2876_v45 = vpop.permute.xlu1 %2875  ;;  %v3173_v4 = vld [vmem:[#allocation5 + $0x98] sm:$0xff] }
 0x46a   : > { %v3409_v40 = vmax.f32 %v3326_v43, 0.0  ;;  %2950 = vst.msk [vmem:[#allocation5 + $0xa8] sm:$0xff] %vm952_vm3, %v2876_v45  ;;  %3945 = vmatmul.msk.f32.gmra.mxu2 %vm3193_vm12, %v3173_v4 }
 0x46c   : > { %3964 = vmatmul.msk.f32.gmra.mxu3 %vm613_vm1, %v3409_v40 }
 0x46f   : > { %v3328_v11 = vpop.f32.mrf.mxu2 }
 0x470   : > { %v3329_v44 = vadd.f32 %v5925_v23, %v3328_v11  ;;  %v3069_v57 = vpop.permute.xlu2 %3068 }
 0x471   : > { %3143 = vst.msk [vmem:[#allocation5 + $0xa8] sm:$0xff] %vm1145_vm4, %v3069_v57  ;;  %v4054_v57 = vld [vmem:[%s4274_s21 + $0x8] sm:$0xff] }
 0x472   : > { %v3410_v46 = vmax.f32 %v3329_v44, 0.0 }
 0x474   : > { %3965 = vmatmul.msk.f32.gmra.mxu3 %vm613_vm1, %v3410_v46 }
 0x477   : > { %v3331_v48 = vpop.f32.mrf.mxu2 }
 0x478   : > { %v3332_v60 = vadd.f32 %v5925_v23, %v3331_v48  ;;  %v3067_v63 = vpop.permute.xlu0 %3066  ;;  %v2880_v36 = vpop.permute.xlu2 %2879  ;;  %v3175_v6 = vld [vmem:[#allocation5 + $0xa8] sm:$0xff] }
 0x479   : > { %3142 = vst.msk [vmem:[#allocation5 + $0xa0] sm:$0xff] %vm1145_vm4, %v3067_v63 }
 0x47a   : > { %v3411_v62 = vmax.f32 %v3332_v60, 0.0  ;;  %2952 = vst.msk [vmem:[#allocation5 + $0xb8] sm:$0xff] %vm952_vm3, %v2880_v36 }
 0x47c   : > { %3966 = vmatmul.msk.f32.gmra.mxu3 %vm613_vm1, %v3411_v62 }
 0x47f   : > { %v3334_v32 = vpop.f32.mrf.mxu2 }
 0x480   : > { %v2878_v56 = vpop.permute.xlu0 %2877  ;;  %v3335_v1 = vadd.f32 %v5925_v23, %v3334_v32  ;;  %v3075_v49 = vpop.permute.xlu2 %3074  ;;  %v3174_v26 = vld [vmem:[#allocation5 + $0xa0] sm:$0xff] }
 0x481   : > { %2951 = vst.msk [vmem:[#allocation5 + $0xb0] sm:$0xff] %vm952_vm3, %v2878_v56  ;;  %3946 = vmatmul.msk.f32.gmra.mxu2 %vm3193_vm12, %v3174_v26  ;;  %v4055_v26 = vld [vmem:[%s4274_s21 + $0x10] sm:$0xff] }
 0x482   : > { %v3412_v39 = vmax.f32 %v3335_v1, 0.0 }
 0x484   : > { %3967 = vmatmul.msk.f32.gmra.mxu3 %vm613_vm1, %v3412_v39 }
 0x487   : > { %v3337_v50 = vpop.f32.mrf.mxu2 }
 0x488   : > { %v3338_v30 = vadd.f32 %v5925_v23, %v3337_v50  ;;  %v2886_v61 = vpop.permute.xlu2 %2885 }
 0x489   : > { %2955 = vst.msk [vmem:[#allocation5 + $0xd0] sm:$0xff] %vm952_vm3, %v2886_v61  ;;  %3947 = vmatmul.msk.f32.gmra.mxu2 %vm3193_vm12, %v3175_v6 }
 0x48a   : > { %v3413_v5 = vmax.f32 %v3338_v30, 0.0 }
 0x48c   : > { %3968 = vmatmul.msk.f32.gmra.mxu3 %vm613_vm1, %v3413_v5 }
 0x48f   : > { %v3340_v25 = vpop.f32.mrf.mxu2 }
 0x490   : > { %v3341_v20 = vadd.f32 %v5925_v23, %v3340_v25  ;;  %v3081_v12 = vpop.permute.xlu2 %3080 }
 0x492   : > { %v3414_v14 = vmax.f32 %v3341_v20, 0.0 }
 0x494   : > { %3969 = vmatmul.msk.f32.gmra.mxu3 %vm613_vm1, %v3414_v14 }
 0x497   : > { %v3343_v7 = vpop.f32.mrf.mxu2 }
 0x498   : > { %v3344_v18 = vadd.f32 %v5925_v23, %v3343_v7  ;;  %v2892_v41 = vpop.permute.xlu2 %2891 }
 0x499   : > { %2958 = vst.msk [vmem:[#allocation5 + $0xe8] sm:$0xff] %vm952_vm3, %v2892_v41  ;;  %v3071_v0 = vpop.permute.xlu1 %3070 }
 0x49a   : > { %v3415_v33 = vmax.f32 %v3344_v18, 0.0  ;;  %3144 = vst.msk [vmem:[#allocation5 + $0xb0] sm:$0xff] %vm1145_vm4, %v3071_v0  ;;  %v4056_v18 = vld [vmem:[%s4274_s21 + $0x18] sm:$0xff] }
 0x49c   : > { %3970 = vmatmul.msk.f32.gmra.mxu3 %vm613_vm1, %v3415_v33 }
 0x49f   : > { %v3346_v59 = vpop.f32.mrf.mxu2 }
 0x4a0   : > { %v3347_v16 = vadd.f32 %v5925_v23, %v3346_v59  ;;  %v3087_v11 = vpop.permute.xlu2 %3086 }
 0x4a1   : > { %v2882_v31 = vpop.permute.xlu1 %2881  ;;  %v3176_v27 = vld [vmem:[#allocation5 + $0xb0] sm:$0xff] }
 0x4a2   : > { %v3416_v9 = vmax.f32 %v3347_v16, 0.0  ;;  %2953 = vst.msk [vmem:[#allocation5 + $0xc0] sm:$0xff] %vm952_vm3, %v2882_v31  ;;  %3948 = vmatmul.msk.f32.gmra.mxu2 %vm3193_vm12, %v3176_v27  ;;  %v4057_v27 = vld [vmem:[%s4274_s21 + $0x20] sm:$0xff] }
 0x4a3   : > { %3146 = vst.msk [vmem:[#allocation5 + $0xc0] sm:$0xff] %vm1145_vm4, %v3075_v49 }
 0x4a4   : > { %3971 = vmatmul.msk.f32.gmra.mxu3 %vm613_vm1, %v3416_v9 }
 0x4a7   : > { %v3349_v3 = vpop.f32.mrf.mxu2 }
 0x4a8   : > { %v3350_v17 = vadd.f32 %v5925_v23, %v3349_v3 }
 0x4a9   : > { %v3077_v42 = vpop.permute.xlu1 %3076 }
 0x4aa   : > { %v3417_v29 = vmax.f32 %v3350_v17, 0.0  ;;  %v3178_v54 = vld [vmem:[#allocation5 + $0xc0] sm:$0xff] }
 0x4ac   : > { %3972 = vmatmul.msk.f32.gmra.mxu3 %vm613_vm1, %v3417_v29 }
 0x4af   : > { %v3352_v8 = vpop.f32.mrf.mxu2 }
 0x4b0   : > { %v3073_v51 = vpop.permute.xlu0 %3072  ;;  %v3353_v10 = vadd.f32 %v5925_v23, %v3352_v8 }
 0x4b1   : > { %3145 = vst.msk [vmem:[#allocation5 + $0xb8] sm:$0xff] %vm1145_vm4, %v3073_v51  ;;  %v2888_v38 = vpop.permute.xlu1 %2887  ;;  %v4058_v51 = vld [vmem:[%s4274_s21 + $0x28] sm:$0xff] }
 0x4b2   : > { %v3418_v58 = vmax.f32 %v3353_v10, 0.0  ;;  %2956 = vst.msk [vmem:[#allocation5 + $0xd8] sm:$0xff] %vm952_vm3, %v2888_v38 }
 0x4b3   : > { %3149 = vst.msk [vmem:[#allocation5 + $0xd8] sm:$0xff] %vm1145_vm4, %v3081_v12 }
 0x4b4   : > { %3973 = vmatmul.msk.f32.gmra.mxu3 %vm613_vm1, %v3418_v58 }
 0x4b7   : > { %v3355_v28 = vpop.f32.mrf.mxu2 }
 0x4b8   : > { %v2884_v24 = vpop.permute.xlu0 %2883  ;;  %v3356_v34 = vadd.f32 %v5925_v23, %v3355_v28  ;;  %v3177_v35 = vld [vmem:[#allocation5 + $0xb8] sm:$0xff] }
 0x4b9   : > { %2954 = vst.msk [vmem:[#allocation5 + $0xc8] sm:$0xff] %vm952_vm3, %v2884_v24  ;;  %3949 = vmatmul.msk.f32.gmra.mxu2 %vm3193_vm12, %v3177_v35  ;;  %v3083_v47 = vpop.permute.xlu1 %3082 }
 0x4ba   : > { %3147 = vst.msk [vmem:[#allocation5 + $0xc8] sm:$0xff] %vm1145_vm4, %v3077_v42  ;;  %v3419_v37 = vmax.f32 %v3356_v34, 0.0  ;;  %v3181_v6 = vld [vmem:[#allocation5 + $0xd8] sm:$0xff] }
 0x4bc   : > { %3974 = vmatmul.msk.f32.gmra.mxu3 %vm613_vm1, %v3419_v37 }
 0x4be   : > { %v3553_v15 = vpop.f32.mrf.mxu3 }
 0x4bf   : > { %v3554_v52 = vadd.f32 %v6009_v53, %v3553_v15  ;;  %v4059_v15 = vld [vmem:[%s4274_s21 + $0x30] sm:$0xff] }
 0x4c0   : > { %v3079_v55 = vpop.permute.xlu0 %3078 }
 0x4c1   : > { %v3649_v2 = vmax.f32 %v3554_v52, 0.0  ;;  %3148 = vst.msk [vmem:[#allocation5 + $0xd0] sm:$0xff] %vm1145_vm4, %v3079_v55  ;;  %3950 = vmatmul.msk.f32.gmra.mxu2 %vm3193_vm12, %v3178_v54  ;;  %v2894_v21 = vpop.permute.xlu1 %2893  ;;  %v3179_v45 = vld [vmem:[#allocation5 + $0xc8] sm:$0xff] }
 0x4c2   : > { %2959 = vst.msk [vmem:[#allocation5 + $0xf0] sm:$0xff] %vm952_vm3, %v2894_v21 }
 0x4c3   : > { %v3681_v19 = vadd.f32 %v4053_v22, %v3649_v2  ;;  %3152 = vst.msk [vmem:[#allocation5 + $0xf0] sm:$0xff] %vm1145_vm4, %v3087_v11  ;;  %v4061_v11 = vld [vmem:[%s4274_s21 + $0x40] sm:$0xff] }
 0x4c5   : > { %v3713_v43 = vmax.f32 %v3681_v19, 0.0  ;;  %v4060_v19 = vld [vmem:[%s4274_s21 + $0x38] sm:$0xff] }
 0x4c7   : > { %3745 = vst.msk [vmem:[%s6020_s23] sm:$0xff] %vm371_vm0, %v3713_v43  ;;  %v3556_v4 = vpop.f32.mrf.mxu3 }
 0x4c8   : > { %v3557_v40 = vadd.f32 %v6009_v53, %v3556_v4  ;;  %v2890_v13 = vpop.permute.xlu0 %2889  ;;  %v3180_v36 = vld [vmem:[#allocation5 + $0xd0] sm:$0xff] }
 0x4c9   : > { %2957 = vst.msk [vmem:[#allocation5 + $0xe0] sm:$0xff] %vm952_vm3, %v2890_v13  ;;  %3951 = vmatmul.msk.f32.gmra.mxu2 %vm3193_vm12, %v3179_v45  ;;  %v3089_v20 = vpop.permute.xlu1 %3088 }
 0x4ca   : > { %v3650_v44 = vmax.f32 %v3557_v40, 0.0  ;;  %3150 = vst.msk [vmem:[#allocation5 + $0xe0] sm:$0xff] %vm1145_vm4, %v3083_v47  ;;  %v3184_v24 = vld [vmem:[#allocation5 + $0xf0] sm:$0xff] }
 0x4cc   : > { %v3682_v46 = vadd.f32 %v4054_v57, %v3650_v44  ;;  %v3358_v48 = vpop.f32.mrf.mxu2 }
 0x4cd   : > { %v3359_v60 = vadd.f32 %v5925_v23, %v3358_v48 }
 0x4ce   : > { %v3714_v63 = vmax.f32 %v3682_v46, 0.0 }
 0x4cf   : > { %v3420_v62 = vmax.f32 %v3359_v60, 0.0  ;;  %v3559_v32 = vpop.f32.mrf.mxu3 }
 0x4d0   : > { %3746 = vst.msk [vmem:[%s6020_s23 + $0x8] sm:$0xff] %vm371_vm0, %v3714_v63  ;;  %v3560_v56 = vadd.f32 %v6009_v53, %v3559_v32  ;;  %v3085_v1 = vpop.permute.xlu0 %3084  ;;  %v4062_v32 = vld [vmem:[%s4274_s21 + $0x48] sm:$0xff] }
 0x4d1   : > { %3151 = vst.msk [vmem:[#allocation5 + $0xe8] sm:$0xff] %vm1145_vm4, %v3085_v1  ;;  %3952 = vmatmul.msk.f32.gmra.mxu2 %vm3193_vm12, %v3180_v36  ;;  %3975 = vmatmul.msk.f32.gmra.mxu3 %vm613_vm1, %v3420_v62  ;;  %v3182_v33 = vld [vmem:[#allocation5 + $0xe0] sm:$0xff] }
 0x4d2   : > { %v3651_v49 = vmax.f32 %v3560_v56, 0.0 }
 0x4d4   : > { %v3683_v39 = vadd.f32 %v4055_v26, %v3651_v49  ;;  %v3361_v50 = vpop.f32.mrf.mxu2 }
 0x4d5   : > { %v3362_v30 = vadd.f32 %v5925_v23, %v3361_v50 }
 0x4d6   : > { %v3715_v61 = vmax.f32 %v3683_v39, 0.0 }
 0x4d7   : > { %v3421_v5 = vmax.f32 %v3362_v30, 0.0  ;;  %v3562_v25 = vpop.f32.mrf.mxu3 }
 0x4d8   : > { %3747 = vst.msk [vmem:[%s6020_s23 + $0x10] sm:$0xff] %vm371_vm0, %v3715_v61  ;;  %v3563_v12 = vadd.f32 %v6009_v53, %v3562_v25  ;;  %v2896_v14 = vpop.permute.xlu0 %2895  ;;  %v3183_v17 = vld [vmem:[#allocation5 + $0xe8] sm:$0xff] }
 0x4d9   : > { %2960 = vst.msk [vmem:[#allocation5 + $0xf8] sm:$0xff] %vm952_vm3, %v2896_v14  ;;  %3953 = vmatmul.msk.f32.gmra.mxu2 %vm3193_vm12, %v3181_v6  ;;  %3976 = vmatmul.msk.f32.gmra.mxu3 %vm613_vm1, %v3421_v5  ;;  %v4063_v6 = vld [vmem:[%s4274_s21 + $0x50] sm:$0xff] }
 0x4da   : > { %v3652_v7 = vmax.f32 %v3563_v12, 0.0  ;;  %3153 = vst.msk [vmem:[#allocation5 + $0xf8] sm:$0xff] %vm1145_vm4, %v3089_v20 }
 0x4dc   : > { %v3684_v41 = vadd.f32 %v4056_v18, %v3652_v7  ;;  %v4064_v7 = vld [vmem:[%s4274_s21 + $0x58] sm:$0xff] }
 0x4de   : > { %v3716_v0 = vmax.f32 %v3684_v41, 0.0 }
 0x4df   : > { %v3565_v59 = vpop.f32.mrf.mxu3 }
 0x4e0   : > { %3748 = vst.msk [vmem:[%s6020_s23 + $0x18] sm:$0xff] %vm371_vm0, %v3716_v0  ;;  %v3566_v16 = vadd.f32 %v6009_v53, %v3565_v59 }
 0x4e1   : > { %3954 = vmatmul.msk.f32.gmra.mxu2 %vm3193_vm12, %v3182_v33  ;;  %v3185_v55 = vld [vmem:[#allocation5 + $0xf8] sm:$0xff] }
 0x4e2   : > { %v3653_v31 = vmax.f32 %v3566_v16, 0.0  ;;  %v4065_v16 = vld [vmem:[%s4274_s21 + $0x60] sm:$0xff] }
 0x4e4   : > { %v3685_v9 = vadd.f32 %v4057_v27, %v3653_v31 }
 0x4e6   : > { %v3717_v3 = vmax.f32 %v3685_v9, 0.0 }
 0x4e7   : > { %v3568_v42 = vpop.f32.mrf.mxu3 }
 0x4e8   : > { %3749 = vst.msk [vmem:[%s6020_s23 + $0x20] sm:$0xff] %vm371_vm0, %v3717_v3  ;;  %v3569_v29 = vadd.f32 %v6009_v53, %v3568_v42 }
 0x4e9   : > { %3955 = vmatmul.msk.f32.gmra.mxu2 %vm3193_vm12, %v3183_v17 }
 0x4ea   : > { %v3654_v8 = vmax.f32 %v3569_v29, 0.0 }
 0x4ec   : > { %v3686_v10 = vadd.f32 %v4058_v51, %v3654_v8  ;;  %v4066_v51 = vld [vmem:[%s4274_s21 + $0x68] sm:$0xff] }
 0x4ed   : > { %v3364_v38 = vpop.f32.mrf.mxu2 }
 0x4ee   : > { %v3718_v58 = vmax.f32 %v3686_v10, 0.0  ;;  %v3365_v28 = vadd.f32 %v5925_v23, %v3364_v38 }
 0x4ef   : > { %v3571_v34 = vpop.f32.mrf.mxu3 }
 0x4f0   : > { %3750 = vst.msk [vmem:[%s6020_s23 + $0x28] sm:$0xff] %vm371_vm0, %v3718_v58  ;;  %v3422_v35 = vmax.f32 %v3365_v28, 0.0  ;;  %v3572_v47 = vadd.f32 %v6009_v53, %v3571_v34  ;;  %v4067_v34 = vld [vmem:[%s4274_s21 + $0x70] sm:$0xff] }
 0x4f1   : > { %3956 = vmatmul.msk.f32.gmra.mxu2 %vm3193_vm12, %v3184_v24 }
 0x4f2   : > { %v3655_v37 = vmax.f32 %v3572_v47, 0.0  ;;  %3977 = vmatmul.msk.f32.gmra.mxu3 %vm613_vm1, %v3422_v35 }
 0x4f4   : > { %v3687_v54 = vadd.f32 %v4059_v15, %v3655_v37 }
 0x4f6   : > { %v3719_v52 = vmax.f32 %v3687_v54, 0.0 }
 0x4f7   : > { %v3574_v2 = vpop.f32.mrf.mxu3 }
 0x4f8   : > { %3751 = vst.msk [vmem:[%s6020_s23 + $0x30] sm:$0xff] %vm371_vm0, %v3719_v52  ;;  %v3575_v21 = vadd.f32 %v6009_v53, %v3574_v2  ;;  %v4068_v52 = vld [vmem:[%s4274_s21 + $0x78] sm:$0xff] }
 0x4f9   : > { %3957 = vmatmul.msk.f32.gmra.mxu2 %vm3193_vm12, %v3185_v55 }
 0x4fa   : > { %v3656_v22 = vmax.f32 %v3575_v21, 0.0 }
 0x4fc   : > { %v3688_v43 = vadd.f32 %v4060_v19, %v3656_v22 }
 0x4fe   : > { %v3720_v45 = vmax.f32 %v3688_v43, 0.0 }
 0x4ff   : > { %v3577_v4 = vpop.f32.mrf.mxu3 }
 0x500   : > { %3752 = vst.msk [vmem:[%s6020_s23 + $0x38] sm:$0xff] %vm371_vm0, %v3720_v45  ;;  %v3578_v40 = vadd.f32 %v6009_v53, %v3577_v4 }
 0x502   : > { %v3657_v13 = vmax.f32 %v3578_v40, 0.0  ;;  %v4069_v40 = vld [vmem:[%s4274_s21 + $0x80] sm:$0xff] }
 0x504   : > { %v3689_v44 = vadd.f32 %v4061_v11, %v3657_v13  ;;  %v3367_v57 = vpop.f32.mrf.mxu2 }
 0x505   : > { %v3368_v46 = vadd.f32 %v5925_v23, %v3367_v57 }
 0x506   : > { %v3721_v48 = vmax.f32 %v3689_v44, 0.0 }
 0x507   : > { %v3423_v60 = vmax.f32 %v3368_v46, 0.0  ;;  %v3580_v63 = vpop.f32.mrf.mxu3 }
 0x508   : > { %3753 = vst.msk [vmem:[%s6020_s23 + $0x40] sm:$0xff] %vm371_vm0, %v3721_v48  ;;  %v3581_v36 = vadd.f32 %v6009_v53, %v3580_v63 }
 0x509   : > { %3978 = vmatmul.msk.f32.gmra.mxu3 %vm613_vm1, %v3423_v60 }
 0x50a   : > { %v3658_v62 = vmax.f32 %v3581_v36, 0.0 }
 0x50c   : > { %v3690_v56 = vadd.f32 %v4062_v32, %v3658_v62  ;;  %v3370_v1 = vpop.f32.mrf.mxu2 }
 0x50d   : > { %v3371_v49 = vadd.f32 %v5925_v23, %v3370_v1 }
 0x50e   : > { %v3722_v26 = vmax.f32 %v3690_v56, 0.0 }
 0x50f   : > { %v3424_v39 = vmax.f32 %v3371_v49, 0.0  ;;  %v3583_v50 = vpop.f32.mrf.mxu3 }
 0x510   : > { %3754 = vst.msk [vmem:[%s6020_s23 + $0x48] sm:$0xff] %vm371_vm0, %v3722_v26  ;;  %v3584_v30 = vadd.f32 %v6009_v53, %v3583_v50  ;;  %v4070_v26 = vld [vmem:[%s4274_s21 + $0x88] sm:$0xff] }
 0x511   : > { %3979 = vmatmul.msk.f32.gmra.mxu3 %vm613_vm1, %v3424_v39 }
 0x512   : > { %v3659_v61 = vmax.f32 %v3584_v30, 0.0 }
 0x514   : > { %v3691_v5 = vadd.f32 %v4063_v6, %v3659_v61 }
 0x516   : > { %v3723_v25 = vmax.f32 %v3691_v5, 0.0 }
 0x517   : > { %v3586_v20 = vpop.f32.mrf.mxu3 }
 0x518   : > { %3755 = vst.msk [vmem:[%s6020_s23 + $0x50] sm:$0xff] %vm371_vm0, %v3723_v25  ;;  %v3587_v12 = vadd.f32 %v6009_v53, %v3586_v20 }
 0x51a   : > { %v3660_v14 = vmax.f32 %v3587_v12, 0.0  ;;  %v4071_v12 = vld [vmem:[%s4274_s21 + $0x90] sm:$0xff] }
 0x51c   : > { %v3692_v18 = vadd.f32 %v4064_v7, %v3660_v14 }
 0x51e   : > { %v3724_v41 = vmax.f32 %v3692_v18, 0.0 }
 0x51f   : > { %v3589_v0 = vpop.f32.mrf.mxu3 }
 0x520   : > { %3756 = vst.msk [vmem:[%s6020_s23 + $0x58] sm:$0xff] %vm371_vm0, %v3724_v41  ;;  %v3590_v33 = vadd.f32 %v6009_v53, %v3589_v0 }
 0x522   : > { %v3661_v59 = vmax.f32 %v3590_v33, 0.0 }
 0x524   : > { %v3693_v31 = vadd.f32 %v4065_v16, %v3661_v59 }
 0x525   : > { %v3373_v27 = vpop.f32.mrf.mxu2 }
 0x526   : > { %v3725_v9 = vmax.f32 %v3693_v31, 0.0  ;;  %v3374_v3 = vadd.f32 %v5925_v23, %v3373_v27 }
 0x527   : > { %v3592_v17 = vpop.f32.mrf.mxu3 }
 0x528   : > { %3757 = vst.msk [vmem:[%s6020_s23 + $0x60] sm:$0xff] %vm371_vm0, %v3725_v9  ;;  %v3425_v42 = vmax.f32 %v3374_v3, 0.0  ;;  %v3593_v29 = vadd.f32 %v6009_v53, %v3592_v17 }
 0x52a   : > { %v3662_v8 = vmax.f32 %v3593_v29, 0.0  ;;  %3980 = vmatmul.msk.f32.gmra.mxu3 %vm613_vm1, %v3425_v42  ;;  %v4072_v29 = vld [vmem:[%s4274_s21 + $0x98] sm:$0xff] }
 0x52c   : > { %v3694_v10 = vadd.f32 %v4066_v51, %v3662_v8 }
 0x52e   : > { %v3726_v38 = vmax.f32 %v3694_v10, 0.0 }
 0x52f   : > { %v3595_v58 = vpop.f32.mrf.mxu3 }
 0x530   : > { %3758 = vst.msk [vmem:[%s6020_s23 + $0x68] sm:$0xff] %vm371_vm0, %v3726_v38  ;;  %v3596_v28 = vadd.f32 %v6009_v53, %v3595_v58 }
 0x532   : > { %v3663_v24 = vmax.f32 %v3596_v28, 0.0 }
 0x534   : > { %v3695_v35 = vadd.f32 %v4067_v34, %v3663_v24 }
 0x536   : > { %v3727_v47 = vmax.f32 %v3695_v35, 0.0  ;;  %v4073_v35 = vld [vmem:[%s4274_s21 + $0xa0] sm:$0xff] }
 0x537   : > { %v3598_v37 = vpop.f32.mrf.mxu3 }
 0x538   : > { %3759 = vst.msk [vmem:[%s6020_s23 + $0x70] sm:$0xff] %vm371_vm0, %v3727_v47  ;;  %v3599_v15 = vadd.f32 %v6009_v53, %v3598_v37 }
 0x53a   : > { %v3664_v54 = vmax.f32 %v3599_v15, 0.0 }
 0x53c   : > { %v3696_v55 = vadd.f32 %v4068_v52, %v3664_v54  ;;  %v3376_v2 = vpop.f32.mrf.mxu2  ;;  %v4074_v52 = vld [vmem:[%s4274_s21 + $0xa8] sm:$0xff] }
 0x53d   : > { %v3377_v21 = vadd.f32 %v5925_v23, %v3376_v2 }
 0x53e   : > { %v3728_v22 = vmax.f32 %v3696_v55, 0.0 }
 0x53f   : > { %v3426_v19 = vmax.f32 %v3377_v21, 0.0  ;;  %v3601_v43 = vpop.f32.mrf.mxu3 }
 0x540   : > { %3760 = vst.msk [vmem:[%s6020_s23 + $0x78] sm:$0xff] %vm371_vm0, %v3728_v22  ;;  %v3602_v45 = vadd.f32 %v6009_v53, %v3601_v43  ;;  %v4075_v43 = vld [vmem:[%s4274_s21 + $0xb0] sm:$0xff] }
 0x541   : > { %3981 = vmatmul.msk.f32.gmra.mxu3 %vm613_vm1, %v3426_v19 }
 0x542   : > { %v3665_v4 = vmax.f32 %v3602_v45, 0.0 }
 0x544   : > { %v3697_v13 = vadd.f32 %v4069_v40, %v3665_v4  ;;  %v3379_v11 = vpop.f32.mrf.mxu2 }
 0x545   : > { %v3380_v44 = vadd.f32 %v5925_v23, %v3379_v11 }
 0x546   : > { %v3729_v57 = vmax.f32 %v3697_v13, 0.0 }
 0x547   : > { %v3427_v46 = vmax.f32 %v3380_v44, 0.0  ;;  %v4076_v44 = vld [vmem:[%s4274_s21 + $0xb8] sm:$0xff] }
 0x548   : > { %3761 = vst.msk [vmem:[%s6020_s23 + $0x80] sm:$0xff] %vm371_vm0, %v3729_v57 }
 0x549   : > { %3982 = vmatmul.msk.f32.gmra.mxu3 %vm613_vm1, %v3427_v46 }
 0x54c   : > { %v3382_v48 = vpop.f32.mrf.mxu2 }
 0x54d   : > { %v3383_v60 = vadd.f32 %v5925_v23, %v3382_v48 }
 0x54f   : > { %v3428_v63 = vmax.f32 %v3383_v60, 0.0 }
 0x551   : > { %3983 = vmatmul.msk.f32.gmra.mxu3 %vm613_vm1, %v3428_v63 }
 0x554   : > { %v3385_v36 = vpop.f32.mrf.mxu2  ;;  %v3604_v62 = vpop.f32.mrf.mxu3 }
 0x555   : > { %v3386_v32 = vadd.f32 %v5925_v23, %v3385_v36  ;;  %v3605_v56 = vadd.f32 %v6009_v53, %v3604_v62  ;;  %v4077_v36 = vld [vmem:[%s4274_s21 + $0xc0] sm:$0xff] }
 0x557   : > { %v3429_v1 = vmax.f32 %v3386_v32, 0.0  ;;  %v3666_v49 = vmax.f32 %v3605_v56, 0.0 }
 0x559   : > { %v3698_v39 = vadd.f32 %v4070_v26, %v3666_v49  ;;  %3984 = vmatmul.msk.f32.gmra.mxu3 %vm613_vm1, %v3429_v1  ;;  %v4078_v26 = vld [vmem:[%s4274_s21 + $0xc8] sm:$0xff] }
 0x55b   : > { %v3730_v50 = vmax.f32 %v3698_v39, 0.0 }
 0x55c   : > { %v3388_v30 = vpop.f32.mrf.mxu2  ;;  %v3607_v61 = vpop.f32.mrf.mxu3 }
 0x55d   : > { %3762 = vst.msk [vmem:[%s6020_s23 + $0x88] sm:$0xff] %vm371_vm0, %v3730_v50  ;;  %v3389_v6 = vadd.f32 %v5925_v23, %v3388_v30  ;;  %v3608_v5 = vadd.f32 %v6009_v53, %v3607_v61 }
 0x55f   : > { %v3430_v25 = vmax.f32 %v3389_v6, 0.0  ;;  %v3667_v20 = vmax.f32 %v3608_v5, 0.0  ;;  %v4079_v5 = vld [vmem:[%s4274_s21 + $0xd0] sm:$0xff] }
 0x561   : > { %v3699_v14 = vadd.f32 %v4071_v12, %v3667_v20  ;;  %3985 = vmatmul.msk.f32.gmra.mxu3 %vm613_vm1, %v3430_v25 }
 0x563   : > { %v3731_v7 = vmax.f32 %v3699_v14, 0.0 }
 0x564   : > { %v3391_v18 = vpop.f32.mrf.mxu2 }
 0x565   : > { %3763 = vst.msk [vmem:[%s6020_s23 + $0x90] sm:$0xff] %vm371_vm0, %v3731_v7  ;;  %v3392_v41 = vadd.f32 %v5925_v23, %v3391_v18  ;;  %v4080_v18 = vld [vmem:[%s4274_s21 + $0xd8] sm:$0xff] }
 0x567   : > { %v3431_v0 = vmax.f32 %v3392_v41, 0.0 }
 0x569   : > { %3986 = vmatmul.msk.f32.gmra.mxu3 %vm613_vm1, %v3431_v0 }
 0x56c   : > { %v3394_v33 = vpop.f32.mrf.mxu2 }
 0x56d   : > { %v3395_v59 = vadd.f32 %v5925_v23, %v3394_v33 }
 0x56f   : > { %v3432_v16 = vmax.f32 %v3395_v59, 0.0 }
 0x571   : > { %3987 = vmatmul.msk.f32.gmra.mxu3 %vm613_vm1, %v3432_v16 }
 0x574   : > { %v3397_v31 = vpop.f32.mrf.mxu2 }
 0x575   : > { %v3398_v27 = vadd.f32 %v5925_v23, %v3397_v31  ;;  %v3610_v9 = vpop.f32.mrf.mxu3  ;;  %v4081_v31 = vld [vmem:[%s4274_s21 + $0xe0] sm:$0xff] }
 0x576   : > { %v3611_v3 = vadd.f32 %v6009_v53, %v3610_v9 }
 0x577   : > { %v3433_v17 = vmax.f32 %v3398_v27, 0.0 }
 0x578   : > { %v3668_v42 = vmax.f32 %v3611_v3, 0.0 }
 0x579   : > { %3988 = vmatmul.msk.f32.gmra.mxu3 %vm613_vm1, %v3433_v17 }
 0x57a   : > { %v3700_v8 = vadd.f32 %v4072_v29, %v3668_v42  ;;  %v4082_v29 = vld [vmem:[%s4274_s21 + $0xe8] sm:$0xff] }
 0x57c   : > { %v3732_v51 = vmax.f32 %v3700_v8, 0.0  ;;  %v3400_v10 = vpop.f32.mrf.mxu2 }
 0x57d   : > { %v3401_v38 = vadd.f32 %v5925_v23, %v3400_v10 }
 0x57e   : > { %3764 = vst.msk [vmem:[%s6020_s23 + $0x98] sm:$0xff] %vm371_vm0, %v3732_v51 }
 0x57f   : > { %v3434_v58 = vmax.f32 %v3401_v38, 0.0 }
 0x581   : > { %3989 = vmatmul.msk.f32.gmra.mxu3 %vm613_vm1, %v3434_v58 }
 0x58c   : > { %v3613_v28 = vpop.f32.mrf.mxu3 }
 0x58d   : > { %v3614_v24 = vadd.f32 %v6009_v53, %v3613_v28  ;;  %v4083_v28 = vld [vmem:[%s4274_s21 + $0xf0] sm:$0xff] }
 0x58f   : > { %v3669_v34 = vmax.f32 %v3614_v24, 0.0 }
 0x591   : > { %v3701_v47 = vadd.f32 %v4073_v35, %v3669_v34 }
 0x593   : > { %v3733_v37 = vmax.f32 %v3701_v47, 0.0 }
 0x594   : > { %v3616_v15 = vpop.f32.mrf.mxu3 }
 0x595   : > { %3765 = vst.msk [vmem:[%s6020_s23 + $0xa0] sm:$0xff] %vm371_vm0, %v3733_v37  ;;  %v3617_v23 = vadd.f32 %v6009_v53, %v3616_v15  ;;  %v4084_v15 = vld [vmem:[%s4274_s21 + $0xf8] sm:$0xff] }
 0x597   : > { %v3670_v54 = vmax.f32 %v3617_v23, 0.0 }
 0x599   : > { %v3702_v55 = vadd.f32 %v4074_v52, %v3670_v54 }
 0x59b   : > { %v3734_v2 = vmax.f32 %v3702_v55, 0.0 }
 0x59d   : > { %3766 = vst.msk [vmem:[%s6020_s23 + $0xa8] sm:$0xff] %vm371_vm0, %v3734_v2 }
 0x5ad   : > { %v3619_v21 = vpop.f32.mrf.mxu3 }
 0x5ae   : > { %v3620_v22 = vadd.f32 %v6009_v53, %v3619_v21 }
 0x5b0   : > { %v3671_v19 = vmax.f32 %v3620_v22, 0.0 }
 0x5b2   : > { %v3703_v45 = vadd.f32 %v4075_v43, %v3671_v19 }
 0x5b4   : > { %v3735_v4 = vmax.f32 %v3703_v45, 0.0 }
 0x5b6   : > { %3767 = vst.msk [vmem:[%s6020_s23 + $0xb0] sm:$0xff] %vm371_vm0, %v3735_v4 }
 0x5c4   : > { %v3622_v40 = vpop.f32.mrf.mxu3 }
 0x5c5   : > { %v3623_v13 = vadd.f32 %v6009_v53, %v3622_v40 }
 0x5c7   : > { %v3672_v11 = vmax.f32 %v3623_v13, 0.0 }
 0x5c9   : > { %v3704_v57 = vadd.f32 %v4076_v44, %v3672_v11 }
 0x5cb   : > { %v3736_v46 = vmax.f32 %v3704_v57, 0.0 }
 0x5cc   : > { %v3625_v48 = vpop.f32.mrf.mxu3 }
 0x5cd   : > { %3768 = vst.msk [vmem:[%s6020_s23 + $0xb8] sm:$0xff] %vm371_vm0, %v3736_v46  ;;  %v3626_v60 = vadd.f32 %v6009_v53, %v3625_v48 }
 0x5cf   : > { %v3673_v63 = vmax.f32 %v3626_v60, 0.0 }
 0x5d1   : > { %v3705_v62 = vadd.f32 %v4077_v36, %v3673_v63 }
 0x5d3   : > { %v3737_v32 = vmax.f32 %v3705_v62, 0.0 }
 0x5d4   : > { %v3628_v56 = vpop.f32.mrf.mxu3 }
 0x5d5   : > { %3769 = vst.msk [vmem:[%s6020_s23 + $0xc0] sm:$0xff] %vm371_vm0, %v3737_v32  ;;  %v3629_v1 = vadd.f32 %v6009_v53, %v3628_v56 }
 0x5d7   : > { %v3674_v49 = vmax.f32 %v3629_v1, 0.0 }
 0x5d9   : > { %v3706_v39 = vadd.f32 %v4078_v26, %v3674_v49 }
 0x5db   : > { %v3738_v50 = vmax.f32 %v3706_v39, 0.0 }
 0x5dc   : > { %v3631_v30 = vpop.f32.mrf.mxu3 }
 0x5dd   : > { %3770 = vst.msk [vmem:[%s6020_s23 + $0xc8] sm:$0xff] %vm371_vm0, %v3738_v50  ;;  %v3632_v61 = vadd.f32 %v6009_v53, %v3631_v30 }
 0x5df   : > { %v3675_v6 = vmax.f32 %v3632_v61, 0.0 }
 0x5e1   : > { %v3707_v25 = vadd.f32 %v4079_v5, %v3675_v6 }
 0x5e3   : > { %v3739_v20 = vmax.f32 %v3707_v25, 0.0 }
 0x5e4   : > { %v3634_v12 = vpop.f32.mrf.mxu3 }
 0x5e5   : > { %3771 = vst.msk [vmem:[%s6020_s23 + $0xd0] sm:$0xff] %vm371_vm0, %v3739_v20  ;;  %v3635_v14 = vadd.f32 %v6009_v53, %v3634_v12 }
 0x5e7   : > { %v3676_v7 = vmax.f32 %v3635_v14, 0.0 }
 0x5e9   : > { %v3708_v41 = vadd.f32 %v4080_v18, %v3676_v7 }
 0x5eb   : > { %v3740_v0 = vmax.f32 %v3708_v41, 0.0 }
 0x5ec   : > { %v3637_v33 = vpop.f32.mrf.mxu3 }
 0x5ed   : > { %3772 = vst.msk [vmem:[%s6020_s23 + $0xd8] sm:$0xff] %vm371_vm0, %v3740_v0  ;;  %v3638_v59 = vadd.f32 %v6009_v53, %v3637_v33 }
 0x5ef   : > { %v3677_v16 = vmax.f32 %v3638_v59, 0.0 }
 0x5f1   : > { %v3709_v27 = vadd.f32 %v4081_v31, %v3677_v16 }
 0x5f3   : > { %v3741_v9 = vmax.f32 %v3709_v27, 0.0 }
 0x5f4   : > { %v3640_v3 = vpop.f32.mrf.mxu3 }
 0x5f5   : > { %3773 = vst.msk [vmem:[%s6020_s23 + $0xe0] sm:$0xff] %vm371_vm0, %v3741_v9  ;;  %v3641_v17 = vadd.f32 %v6009_v53, %v3640_v3 }
 0x5f7   : > { %v3678_v42 = vmax.f32 %v3641_v17, 0.0 }
 0x5f9   : > { %v3710_v8 = vadd.f32 %v4082_v29, %v3678_v42 }
 0x5fb   : > { %v3742_v51 = vmax.f32 %v3710_v8, 0.0 }
 0x5fc   : > { %v3643_v10 = vpop.f32.mrf.mxu3 }
 0x5fd   : > { %3774 = vst.msk [vmem:[%s6020_s23 + $0xe8] sm:$0xff] %vm371_vm0, %v3742_v51  ;;  %v3644_v38 = vadd.f32 %v6009_v53, %v3643_v10 }
 0x5ff   : > { %v3679_v58 = vmax.f32 %v3644_v38, 0.0 }
 0x601   : > { %v3711_v24 = vadd.f32 %v4083_v28, %v3679_v58 }
 0x603   : > { %v3743_v34 = vmax.f32 %v3711_v24, 0.0 }
 0x604   : > { %v3646_v35 = vpop.f32.mrf.mxu3 }
 0x605   : > { %3775 = vst.msk [vmem:[%s6020_s23 + $0xf0] sm:$0xff] %vm371_vm0, %v3743_v34  ;;  %v3647_v47 = vadd.f32 %v6009_v53, %v3646_v35 }
 0x607   : > { %v3680_v37 = vmax.f32 %v3647_v47, 0.0 }
 0x609   : > { %v3712_v23 = vadd.f32 %v4084_v15, %v3680_v37 }
 0x60b   : > { %v3744_v54 = vmax.f32 %v3712_v23, 0.0 }
 0x60d   : > { %3776 = vst.msk [vmem:[%s6020_s23 + $0xf8] sm:$0xff] %vm371_vm0, %v3744_v54 }
 0x60e   : > { %4112 = shalt.err (!%p4109_p3)
}
 0x60f   : > { %s4158_s17 = smov 128  }
 0x610   : > { %3997 = dma.vmem_to_hbm [thread:$0]  (%p4247_p5), %s3791_s29, 4096, %s3793_s27, %s3778_s13, %s4158_s17, %s4158_s17, %s4150_s22  }
 0x611 PF: > { %p4003_p4 = scmp.ge.s32.totalorder %s4147_s12, 2  ;;  %s3807_s23 = sand.u32 1, %s4135_s30  }
 0x612   : > { %s3808_s25 = scalar_lea.sflag [#allocation7], %s3807_s23 }
 0x613   : > { %p4000_p7 = pnand %p4003_p4, %p4251_p6 }
 0x615   : > { %p4001_p8 = pneg %p4000_p7 }
 0x617   : > { %4130 = dma.done.wait (%p4001_p8), %s3808_s25, 4096  }
 0x618   : > { %4132 = vsyncadd (%p4001_p8), %s3808_s25, 4294963200  ;;  %p19_p9 = scmp.ge.s32.totalorder %s4234_s15, 4   ;;  %s6256_s30 = smov %s4139_s10 }
 0x619   : > { %s6257_s10 = smov %s4143_s11  ;;  %s6258_s11 = smov %s4245_s18 }
 0x61a   : > { %s6259_s12 = smov %s4234_s15  ;;  %21 = sbr.rel (!%p19_p9) target bundleno = 3 (0x3), region = 95 }
 0x61f   :  { %3814 = vsyncpa [#allocation7], 1 }
 0x620   :  { %3816 = vsyncpa [#allocation7 + $0x1], 1 }

</bundles_post_ra>
